<compile_context>
chip_gen: v6e
topology: v6e:2x2x1
jax: 0.10.0
libtpu: 0.0.40
codegen_flags: <defaults>
</compile_context>

<pallas_src>
import functools

import jax
import jax.numpy as jnp
from jax import lax
from jax.experimental import pallas as pl
from jax.experimental.pallas import tpu as pltpu

KS = 7            # SpatialAttention kernel_size
PAD = KS // 2
BN_EPS = 1e-5
_NEG_LARGE = -3.0e38   # effectively -inf for masked maxes (avoids inf arithmetic)


def _sigmoid(x):
    # sigmoid(x) = 0.5*(1 + tanh(x/2)); one EUP transcendental, no VALU Newton steps.
    return 0.5 * jnp.tanh(0.5 * x) + 0.5


def _sigmoid_ref(x):
    return 1.0 / (1.0 + jnp.exp(-x))


def _hs_attention_kernel(y_ref, w1_ref, w2_ref, bn_ref, mask_ref, cw_ref,
                         o_ref, pooled_ref, ca_ref, pad_ref, sa_ref, *,
                         C, CH, WC, Bt, conv_chunk, carry_pass2):
    """Processes Bt batch elements.  y_ref block: (Bt, Hc, WCp), flat plane lane-dense."""
    f32 = jnp.float32
    Hc = y_ref.shape[1]
    WCp = y_ref.shape[2]
    PADF = PAD * C + PAD                      # flat zero-pad on each side
    NCH = Hc // CH
    n_chunks = WCp // conv_chunk
    inv_wc = 1.0 / WC
    inv_hc = 1.0 / Hc
    # vreg-aware partial unroll: each unrolled chunk keeps a (CH, WCp) f32 tile live.
    unroll = max(1, min(NCH, 32768 // max(CH * WCp, 1)))

    # Large-negative bias on the padding lanes so the pass-1 max ignores them.
    if WCp != WC:
        lane = lax.broadcasted_iota(jnp.int32, (1, WCp), 1)
        neg_bias = jnp.where(lane < WC, 0.0, _NEG_LARGE).astype(f32)
    else:
        neg_bias = None

    # Zero only the pad border, once per grid step (scratch is per-core and persists;
    # the interior [PADF, PADF+WCp) is fully overwritten for every batch element).
    pad_ref[:, 0:PADF] = jnp.zeros((2, PADF), f32)
    pad_ref[:, PADF + WCp:] = jnp.zeros((2, PADF), f32)

    for bt in range(Bt):          # static loop: Bt batch elements packed per grid step
        # ---- Pass 1: per-"channel" (original H axis) mean / max over the plane ----
        def p1(i, carry):
            h0 = pl.multiple_of(i * CH, CH)
            yc = y_ref[bt, pl.ds(h0, CH), :].astype(f32)               # (CH, WCp)
            pooled_ref[pl.ds(h0, CH), 0:1] = (
                jnp.sum(yc, axis=1, keepdims=True) * inv_wc)           # true-WC mean
            ym = yc if neg_bias is None else yc + neg_bias
            pooled_ref[pl.ds(h0, CH), 1:2] = jnp.max(ym, axis=1, keepdims=True)
            return carry
        lax.fori_loop(0, NCH, p1, 0, unroll=unroll)

        # ---- ChannelAttention: shared MLP batched over the [avg, max] pair ----
        pooled = pooled_ref[...]                                       # (Hc, 2)
        h = jnp.maximum(jnp.dot(w1_ref[...], pooled,
                                preferred_element_type=f32), 0.0)      # (Hr, 2)
        z = jnp.dot(w2_ref[...], h, preferred_element_type=f32)        # (Hc, 2)
        ca_ref[...] = _sigmoid(z[:, 0:1] + z[:, 1:2])                  # (Hc, 1)

        # ---- Pass 2: spatial avg/max pools of y1 = y * ca (never materialized) ----
        if carry_pass2:
            # Carry (CH, WCp) partials; single sublane reduction after the loop
            # (2 XLU reductions total instead of 2*NCH; frees the XLU for the conv).
            def p2(i, carry):
                ps, pm = carry
                h0 = pl.multiple_of(i * CH, CH)
                yc = y_ref[bt, pl.ds(h0, CH), :].astype(f32)
                t = yc * ca_ref[pl.ds(h0, CH), :]
                return ps + t, jnp.maximum(pm, t)
            ps, pm = lax.fori_loop(
                0, NCH, p2,
                (jnp.zeros((CH, WCp), f32), jnp.full((CH, WCp), _NEG_LARGE, f32)),
                unroll=unroll)
            s_sum = jnp.sum(ps, axis=0, keepdims=True)
            s_max = jnp.max(pm, axis=0, keepdims=True)
        else:
            def p2(i, carry):
                s_sum, s_max = carry
                h0 = pl.multiple_of(i * CH, CH)
                yc = y_ref[bt, pl.ds(h0, CH), :].astype(f32)
                t = yc * ca_ref[pl.ds(h0, CH), :]
                return (s_sum + jnp.sum(t, axis=0, keepdims=True),
                        jnp.maximum(s_max, jnp.max(t, axis=0, keepdims=True)))
            s_sum, s_max = lax.fori_loop(
                0, NCH, p2,
                (jnp.zeros((1, WCp), f32), jnp.full((1, WCp), _NEG_LARGE, f32)),
                unroll=unroll)
        s_avg = s_sum * inv_hc

        # Padding lanes of s_avg / s_max are exactly 0 (input is zero padded), so the
        # conv's zero-pad contract beyond the true WC region still holds.
        pad_ref[0:1, PADF:PADF + WCp] = s_avg
        pad_ref[1:2, PADF:PADF + WCp] = s_max

        # ---- SpatialAttention: 7x7 conv (2 -> 1 channels) on the flat plane ----
        # One (2, chunk) shifted load per tap (49 misaligned loads, not 98); 7 per-dw
        # accumulator chains tree-summed; lane-tiled so accumulators fit the vreg file.
        sa_val = None
        for cc in range(n_chunks):
            c0 = cc * conv_chunk
            parts = []
            for dw in range(-PAD, PAD + 1):
                acc = jnp.zeros((1, conv_chunk), f32)
                for dh in range(-PAD, PAD + 1):
                    off = PADF + dh * C + dw + c0
                    t = pad_ref[:, off:off + conv_chunk]          # (2, chunk), 1 load
                    w_avg = cw_ref[(dh + PAD) * KS + (dw + PAD)]
                    w_max = cw_ref[KS * KS + (dh + PAD) * KS + (dw + PAD)]
                    acc = acc + w_avg * t[0:1, :] + w_max * t[1:2, :]
                parts.append(acc * mask_ref[dw + PAD:dw + PAD + 1,
                                            c0:c0 + conv_chunk])
            while len(parts) > 1:
                nxt = [parts[k] + parts[k + 1] for k in range(0, len(parts) - 1, 2)]
                if len(parts) % 2:
                    nxt.append(parts[-1])
                parts = nxt
            if n_chunks == 1:
                sa_val = _sigmoid(parts[0])                       # keep in vregs
            else:
                sa_ref[0:1, c0:c0 + conv_chunk] = _sigmoid(parts[0])
        sa = sa_val if n_chunks == 1 else sa_ref[0:1, :]          # (1, WCp)

        # ---- Pass 3: fused (y*ca)*sa -> BatchNorm(inference) -> ReLU -> store ----
        def p3(i, carry):
            h0 = pl.multiple_of(i * CH, CH)
            yc = y_ref[bt, pl.ds(h0, CH), :].astype(f32)               # (CH, WCp)
            m = ca_ref[pl.ds(h0, CH), :] * bn_ref[pl.ds(h0, CH), 0:1]  # ca * bn_scale
            shift = bn_ref[pl.ds(h0, CH), 1:2]
            out = jnp.maximum((yc * sa) * m + shift, 0.0)
            o_ref[bt, pl.ds(h0, CH), :] = out.astype(o_ref.dtype)      # lane-dense
            return carry
        lax.fori_loop(0, NCH, p3, 0, unroll=unroll)


def hs_attention_forward(x, params):
    """x: (B, C, W, H) float32 (NCHW, as in PyTorch).  Returns (B, C, W, H)."""
    B, C, W, H = x.shape
    Hc = H                                    # == in_planes (BN / CA channel dim)
    WC = W * C
    WCp = ((WC + 127) // 128) * 128           # lane-dense padded flat width
    w1, w2, conv_w, bn = params
    Hr = w1.shape[0]
    PADF = PAD * C + PAD
    CH = 8 if Hc % 8 == 0 else Hc             # 8-row (one-vreg) chunks when possible

    # Raw reinterpretation (torch.reshape semantics) + zero-pad the flat axis to 128n.
    y2d = x.reshape(B, Hc, WC)
    if WCp != WC:
        y2d = jnp.pad(y2d, ((0, 0), (0, 0), (0, WCp - WC)))

    # Fold BatchNorm (inference) into a single per-channel scale / shift.
    gamma, beta, mean, var = bn[:, 0], bn[:, 1], bn[:, 2], bn[:, 3]
    scale = gamma / jnp.sqrt(var + BN_EPS)
    bn2 = jnp.stack([scale, beta - mean * scale], axis=1).astype(jnp.float32)

    # Per-dw column-validity masks for the flat 7x7 conv (C boundary); padding lanes 0.
    col = jnp.arange(WCp, dtype=jnp.int32) % C
    lane_valid = jnp.arange(WCp, dtype=jnp.int32) < WC
    dws = jnp.arange(-PAD, PAD + 1, dtype=jnp.int32)[:, None]
    colmask = (((col[None, :] + dws >= 0) & (col[None, :] + dws < C))
               & lane_valid[None, :]).astype(jnp.float32)              # (7, WCp)

    cw_flat = conv_w.reshape(-1).astype(jnp.float32)                   # (2*7*7,) scalars

    # Pack several batch elements per grid step for small problems (amortizes the
    # ~0.35us fixed per-step overhead); cap so double-buffered slabs stay small.
    slab_b = Hc * WCp * 4
    Bt = 1
    for cand in range(1, min(B, 4) + 1):
        if B % cand == 0 and cand * slab_b * 4 <= (4 << 20):
            Bt = cand

    # Lane-tile the conv so the 7 per-dw accumulators never exceed ~28 vregs.
    if WCp <= 512:
        conv_chunk = WCp
    else:
        conv_chunk = 128
        for d in (4, 2):
            if (WCp // 128) % d == 0:
                conv_chunk = 128 * d
                break

    # Carry full (CH, WCp) pass-2 partials only while they fit the vreg budget.
    carry_pass2 = CH * WCp <= 8192

    kernel = functools.partial(_hs_attention_kernel, C=C, CH=CH, WC=WC, Bt=Bt,
                               conv_chunk=conv_chunk, carry_pass2=carry_pass2)
    out = pl.pallas_call(
        kernel,
        out_shape=jax.ShapeDtypeStruct((B, Hc, WCp), x.dtype),
        grid=(B // Bt,),
        in_specs=[
            pl.BlockSpec((Bt, Hc, WCp), lambda b: (b, 0, 0)),          # y (lane-dense)
            pl.BlockSpec((Hr, Hc), lambda b: (0, 0)),                  # CA fc1
            pl.BlockSpec((Hc, Hr), lambda b: (0, 0)),                  # CA fc2
            pl.BlockSpec((Hc, 2), lambda b: (0, 0)),                   # BN scale / shift
            pl.BlockSpec((KS, WCp), lambda b: (0, 0)),                 # conv col masks
            pl.BlockSpec(memory_space=pltpu.MemorySpace.SMEM),         # conv weights
        ],
        out_specs=pl.BlockSpec((Bt, Hc, WCp), lambda b: (b, 0, 0)),
        scratch_shapes=[
            pltpu.VMEM((Hc, 2), jnp.float32),                          # pooled [avg,max]
            pltpu.VMEM((Hc, 1), jnp.float32),                          # channel attention
            pltpu.VMEM((2, WCp + 2 * PADF), jnp.float32),              # padded conv planes
            pltpu.VMEM((1, WCp), jnp.float32),                         # sa (multi-chunk)
        ],
        # Per-step VMEM = 2x double-buffered (Bt, Hc, WCp) in + out blocks + tiny
        # scratch; kept under a 4 MiB budget by the Bt cap above, well inside the
        # scoped default on v5e/v6e/v7x.
        compiler_params=pltpu.CompilerParams(dimension_semantics=("parallel",)),
    )(y2d, w1, w2, bn2, colmask, cw_flat)
    return out[:, :, :WC].reshape(B, C, W, H)


def hs_attention_reference(x, params):
    """Pure-JAX reference mirroring the PyTorch forward (pattern=0, eval-mode BN)."""
    B, C, W, H = x.shape
    w1, w2, conv_w, bn = params
    y = x.reshape(B, H, W, C).astype(jnp.float32)
    # channel attention
    avg = jnp.mean(y, axis=(2, 3))                    # (B, H)
    mx = jnp.max(y, axis=(2, 3))                      # (B, H)

    def mlp(v):
        return jnp.maximum(v @ w1.T, 0.0) @ w2.T

    ca = _sigmoid_ref(mlp(avg) + mlp(mx))[:, :, None, None]
    y1 = y * ca
    # spatial attention
    s = jnp.stack([jnp.mean(y1, axis=1), jnp.max(y1, axis=1)], axis=1)  # (B, 2, W, C)
    conv = lax.conv_general_dilated(
        s, conv_w, window_strides=(1, 1), padding=[(PAD, PAD), (PAD, PAD)],
        dimension_numbers=("NCHW", "OIHW", "NCHW"))
    sa = _sigmoid_ref(conv)                           # (B, 1, W, C)
    y2 = y1 * sa
    gamma = bn[:, 0][None, :, None, None]
    beta = bn[:, 1][None, :, None, None]
    mean = bn[:, 2][None, :, None, None]
    var = bn[:, 3][None, :, None, None]
    y3 = (y2 - mean) * gamma / jnp.sqrt(var + BN_EPS) + beta
    return jnp.maximum(y3, 0.0).reshape(B, C, W, H)


if __name__ == "__main__":
    B, C, W, H = 2, 4, 16, 16
    in_planes = H                                     # required: BN/CA channel dim == H
    ratio = 8
    Hr = max(in_planes // ratio, 1)

    key = jax.random.PRNGKey(0)
    kx, k1, k2, k3, k4, k5, k6, k7 = jax.random.split(key, 8)
    x = jax.random.normal(kx, (B, C, W, H), jnp.float32)

    # Deterministic synthetic parameters (not a checkpoint load).
    w1 = 0.2 * jax.random.normal(k1, (Hr, in_planes), jnp.float32)      # CA fc1
    w2 = 0.2 * jax.random.normal(k2, (in_planes, Hr), jnp.float32)      # CA fc2
    conv_w = 0.05 * jax.random.normal(k3, (1, 2, KS, KS), jnp.float32)  # SA conv, no bias
    gamma = 1.0 + 0.1 * jax.random.normal(k4, (in_planes,), jnp.float32)
    beta = 0.1 * jax.random.normal(k5, (in_planes,), jnp.float32)
    r_mean = 0.05 * jax.random.normal(k6, (in_planes,), jnp.float32)
    r_var = 1.0 + 0.1 * jax.random.uniform(k7, (in_planes,), jnp.float32)
    bn = jnp.stack([gamma, beta, r_mean, r_var], axis=1)                # (in_planes, 4)

    params = (w1, w2, conv_w, bn)
    out = hs_attention_forward(x, params)
    jax.block_until_ready(out)

    ref = hs_attention_reference(x, params)
    assert out.shape == (B, C, W, H)
    err = float(jnp.max(jnp.abs(out - ref)))
    assert jnp.allclose(out, ref, atol=2e-3, rtol=2e-3), f"max abs err {err}"
    print("KERNEL_OK")
</pallas_src>

<mosaic_0001>
module attributes {stable_mosaic.version = 11 : i64} {
  func.func @_hs_attention_kernel(%arg0: i32, %arg1: memref<2x16x128xf32, #tpu.memory_space<vmem>>, %arg2: memref<2x16xf32, #tpu.memory_space<vmem>>, %arg3: memref<16x2xf32, #tpu.memory_space<vmem>>, %arg4: memref<16x2xf32, #tpu.memory_space<vmem>>, %arg5: memref<7x128xf32, #tpu.memory_space<vmem>>, %arg6: memref<98xf32, #tpu.memory_space<smem>>, %arg7: memref<2x16x128xf32, #tpu.memory_space<vmem>>, %arg8: memref<16x2xf32, #tpu.memory_space<vmem>>, %arg9: memref<16x1xf32, #tpu.memory_space<vmem>>, %arg10: memref<2x158xf32, #tpu.memory_space<vmem>>, %arg11: memref<1x128xf32, #tpu.memory_space<vmem>>) attributes {dimension_semantics = [#tpu.dimension_semantics<parallel>], iteration_bounds = array<i64: 1>, scalar_prefetch = 0 : i64, scratch_operands = 4 : i64, tpu.core_type = #tpu.core_type<tc>, window_params = [{transform_indices = @transform_0, window_bounds = array<i64: 2, 16, 128>}, {pipeline_mode = #tpu.pipeline_mode<synchronous>, transform_indices = @transform_1, window_bounds = array<i64: 2, 16>}, {pipeline_mode = #tpu.pipeline_mode<synchronous>, transform_indices = @transform_2, window_bounds = array<i64: 16, 2>}, {pipeline_mode = #tpu.pipeline_mode<synchronous>, transform_indices = @transform_3, window_bounds = array<i64: 16, 2>}, {pipeline_mode = #tpu.pipeline_mode<synchronous>, transform_indices = @transform_4, window_bounds = array<i64: 7, 128>}, {transform_indices = @transform_5, window_bounds = array<i64: 98>}, {transform_indices = @transform_6, window_bounds = array<i64: 2, 16, 128>}]} {
    %0 = tpu.iota {dimensions = array<i32: 1>} : vector<1x128xi32>
    %c64_i32 = arith.constant 64 : i32
    %1 = vector.broadcast %c64_i32 : i32 to vector<1x128xi32>
    %2 = arith.cmpi slt, %0, %1 : vector<1x128xi32>
    %cst = arith.constant 0.000000e+00 : f32
    %cst_0 = arith.constant -3.000000e+38 : f32
    %3 = vector.broadcast %cst : f32 to vector<1x128xf32>
    %4 = vector.broadcast %cst_0 : f32 to vector<1x128xf32>
    %5 = arith.select %2, %3, %4 : vector<1x128xi1>, vector<1x128xf32>
    %cst_1 = arith.constant 0.000000e+00 : f32
    %6 = vector.broadcast %cst_1 : f32 to vector<2x15xf32>
    %c0 = arith.constant 0 : index
    %c0_2 = arith.constant 0 : index
    %7 = vector.load %arg10[%c0, %c0_2] : memref<2x158xf32, #tpu.memory_space<vmem>>, vector<2x15xf32>
    tpu.vector_store %arg10[%c0, %c0_2], %6 {strides = array<i32>} : memref<2x158xf32, #tpu.memory_space<vmem>>, vector<2x15xf32>,
    %cst_3 = arith.constant 0.000000e+00 : f32
    %8 = vector.broadcast %cst_3 : f32 to vector<2x15xf32>
    %c0_4 = arith.constant 0 : index
    %c143 = arith.constant 143 : index
    %9 = vector.load %arg10[%c0_4, %c143] : memref<2x158xf32, #tpu.memory_space<vmem>>, vector<2x15xf32>
    tpu.vector_store %arg10[%c0_4, %c143], %8 {strides = array<i32>} : memref<2x158xf32, #tpu.memory_space<vmem>>, vector<2x15xf32>,
    %c0_i32 = arith.constant 0 : i32
    %c8_i32 = arith.constant 8 : i32
    %10 = arith.muli %c0_i32, %c8_i32 : i32
    %11 = tpu.assume_multiple %10, 8 : i32
    %c0_5 = arith.constant 0 : index
    %12 = arith.index_cast %11 : i32 to index
    %c0_6 = arith.constant 0 : index
    %13 = vector.load %arg1[%c0_5, %12, %c0_6] : memref<2x16x128xf32, #tpu.memory_space<vmem>>, vector<1x8x128xf32>
    %14 = vector.shape_cast %13 : vector<1x8x128xf32> to vector<8x128xf32>
    %cst_7 = arith.constant dense<0.000000e+00> : vector<8xf32>
    %15 = vector.multi_reduction <add>, %14, %cst_7 [1] : vector<8x128xf32> to vector<8xf32>
    %16 = vector.shape_cast %15 : vector<8xf32> to vector<8x1xf32>
    %cst_8 = arith.constant 1.562500e-02 : f32
    %17 = vector.broadcast %cst_8 : f32 to vector<8x1xf32>
    %18 = arith.mulf %16, %17 : vector<8x1xf32>
    %19 = arith.index_cast %11 : i32 to index
    %c0_9 = arith.constant 0 : index
    %20 = vector.load %arg8[%19, %c0_9] : memref<16x2xf32, #tpu.memory_space<vmem>>, vector<8x1xf32>
    tpu.vector_store %arg8[%19, %c0_9], %18 {strides = array<i32>} : memref<16x2xf32, #tpu.memory_space<vmem>>, vector<8x1xf32>,
    %21 = vector.broadcast %5 : vector<1x128xf32> to vector<8x128xf32>
    %22 = arith.addf %14, %21 : vector<8x128xf32>
    %cst_10 = arith.constant dense<0xFF800000> : vector<8xf32>
    %23 = vector.multi_reduction <maximumf>, %22, %cst_10 [1] : vector<8x128xf32> to vector<8xf32>
    %24 = vector.shape_cast %23 : vector<8xf32> to vector<8x1xf32>
    %25 = arith.index_cast %11 : i32 to index
    %c1 = arith.constant 1 : index
    %26 = vector.load %arg8[%25, %c1] : memref<16x2xf32, #tpu.memory_space<vmem>>, vector<8x1xf32>
    tpu.vector_store %arg8[%25, %c1], %24 {strides = array<i32>} : memref<16x2xf32, #tpu.memory_space<vmem>>, vector<8x1xf32>,
    %c1_i32 = arith.constant 1 : i32
    %c8_i32_11 = arith.constant 8 : i32
    %27 = arith.muli %c1_i32, %c8_i32_11 : i32
    %28 = tpu.assume_multiple %27, 8 : i32
    %c0_12 = arith.constant 0 : index
    %29 = arith.index_cast %28 : i32 to index
    %c0_13 = arith.constant 0 : index
    %30 = vector.load %arg1[%c0_12, %29, %c0_13] : memref<2x16x128xf32, #tpu.memory_space<vmem>>, vector<1x8x128xf32>
    %31 = vector.shape_cast %30 : vector<1x8x128xf32> to vector<8x128xf32>
    %cst_14 = arith.constant dense<0.000000e+00> : vector<8xf32>
    %32 = vector.multi_reduction <add>, %31, %cst_14 [1] : vector<8x128xf32> to vector<8xf32>
    %33 = vector.shape_cast %32 : vector<8xf32> to vector<8x1xf32>
    %cst_15 = arith.constant 1.562500e-02 : f32
    %34 = vector.broadcast %cst_15 : f32 to vector<8x1xf32>
    %35 = arith.mulf %33, %34 : vector<8x1xf32>
    %36 = arith.index_cast %28 : i32 to index
    %c0_16 = arith.constant 0 : index
    %37 = vector.load %arg8[%36, %c0_16] : memref<16x2xf32, #tpu.memory_space<vmem>>, vector<8x1xf32>
    tpu.vector_store %arg8[%36, %c0_16], %35 {strides = array<i32>} : memref<16x2xf32, #tpu.memory_space<vmem>>, vector<8x1xf32>,
    %38 = vector.broadcast %5 : vector<1x128xf32> to vector<8x128xf32>
    %39 = arith.addf %31, %38 : vector<8x128xf32>
    %cst_17 = arith.constant dense<0xFF800000> : vector<8xf32>
    %40 = vector.multi_reduction <maximumf>, %39, %cst_17 [1] : vector<8x128xf32> to vector<8xf32>
    %41 = vector.shape_cast %40 : vector<8xf32> to vector<8x1xf32>
    %42 = arith.index_cast %28 : i32 to index
    %c1_18 = arith.constant 1 : index
    %43 = vector.load %arg8[%42, %c1_18] : memref<16x2xf32, #tpu.memory_space<vmem>>, vector<8x1xf32>
    tpu.vector_store %arg8[%42, %c1_18], %41 {strides = array<i32>} : memref<16x2xf32, #tpu.memory_space<vmem>>, vector<8x1xf32>,
    %c2_i32 = arith.constant 2 : i32
    %c0_19 = arith.constant 0 : index
    %c0_20 = arith.constant 0 : index
    %44 = vector.load %arg8[%c0_19, %c0_20] : memref<16x2xf32, #tpu.memory_space<vmem>>, vector<16x2xf32>
    %c0_21 = arith.constant 0 : index
    %c0_22 = arith.constant 0 : index
    %45 = vector.load %arg2[%c0_21, %c0_22] : memref<2x16xf32, #tpu.memory_space<vmem>>, vector<2x16xf32>
    %cst_23 = arith.constant dense<0.000000e+00> : vector<2x2xf32>
    %46 = tpu.matmul %45, %44, %cst_23 {dimension_numbers = #tpu.dot_dimension_numbers<[1], [0], [0], [1], [0, 0, 1, 1], [], []>} : vector<2x16xf32>, vector<16x2xf32>, vector<2x2xf32> -> vector<2x2xf32>
    %cst_24 = arith.constant 0.000000e+00 : f32
    %47 = vector.broadcast %cst_24 : f32 to vector<2x2xf32>
    %48 = arith.maximumf %46, %47 : vector<2x2xf32>
    %c0_25 = arith.constant 0 : index
    %c0_26 = arith.constant 0 : index
    %49 = vector.load %arg3[%c0_25, %c0_26] : memref<16x2xf32, #tpu.memory_space<vmem>>, vector<16x2xf32>
    %cst_27 = arith.constant dense<0.000000e+00> : vector<16x2xf32>
    %50 = tpu.matmul %49, %48, %cst_27 {dimension_numbers = #tpu.dot_dimension_numbers<[1], [0], [0], [1], [0, 0, 1, 1], [], []>} : vector<16x2xf32>, vector<2x2xf32>, vector<16x2xf32> -> vector<16x2xf32>
    %51 = vector.extract_strided_slice %50 {offsets = [0, 0], sizes = [16, 1], strides = [1, 1]} : vector<16x2xf32> to vector<16x1xf32>
    %52 = vector.extract_strided_slice %50 {offsets = [0, 1], sizes = [16, 1], strides = [1, 1]} : vector<16x2xf32> to vector<16x1xf32>
    %53 = arith.addf %51, %52 : vector<16x1xf32>
    %cst_28 = arith.constant 5.000000e-01 : f32
    %54 = vector.broadcast %cst_28 : f32 to vector<16x1xf32>
    %55 = arith.mulf %54, %53 : vector<16x1xf32>
    %56 = math.tanh %55 : vector<16x1xf32>
    %cst_29 = arith.constant 5.000000e-01 : f32
    %57 = vector.broadcast %cst_29 : f32 to vector<16x1xf32>
    %58 = arith.mulf %57, %56 : vector<16x1xf32>
    %cst_30 = arith.constant 5.000000e-01 : f32
    %59 = vector.broadcast %cst_30 : f32 to vector<16x1xf32>
    %60 = arith.addf %58, %59 : vector<16x1xf32>
    %c0_31 = arith.constant 0 : index
    %c0_32 = arith.constant 0 : index
    %61 = vector.load %arg9[%c0_31, %c0_32] : memref<16x1xf32, #tpu.memory_space<vmem>>, vector<16x1xf32>
    tpu.vector_store %arg9[%c0_31, %c0_32], %60 {strides = array<i32>} : memref<16x1xf32, #tpu.memory_space<vmem>>, vector<16x1xf32>,
    %cst_33 = arith.constant 0.000000e+00 : f32
    %62 = vector.broadcast %cst_33 : f32 to vector<8x128xf32>
    %cst_34 = arith.constant -3.000000e+38 : f32
    %63 = vector.broadcast %cst_34 : f32 to vector<8x128xf32>
    %c0_i32_35 = arith.constant 0 : i32
    %c8_i32_36 = arith.constant 8 : i32
    %64 = arith.muli %c0_i32_35, %c8_i32_36 : i32
    %65 = tpu.assume_multiple %64, 8 : i32
    %c0_37 = arith.constant 0 : index
    %66 = arith.index_cast %65 : i32 to index
    %c0_38 = arith.constant 0 : index
    %67 = vector.load %arg1[%c0_37, %66, %c0_38] : memref<2x16x128xf32, #tpu.memory_space<vmem>>, vector<1x8x128xf32>
    %68 = vector.shape_cast %67 : vector<1x8x128xf32> to vector<8x128xf32>
    %69 = arith.index_cast %65 : i32 to index
    %c0_39 = arith.constant 0 : index
    %70 = vector.load %arg9[%69, %c0_39] : memref<16x1xf32, #tpu.memory_space<vmem>>, vector<8x1xf32>
    %71 = vector.broadcast %70 : vector<8x1xf32> to vector<8x128xf32>
    %72 = arith.mulf %68, %71 : vector<8x128xf32>
    %73 = arith.addf %62, %72 : vector<8x128xf32>
    %74 = arith.maximumf %63, %72 : vector<8x128xf32>
    %c1_i32_40 = arith.constant 1 : i32
    %c8_i32_41 = arith.constant 8 : i32
    %75 = arith.muli %c1_i32_40, %c8_i32_41 : i32
    %76 = tpu.assume_multiple %75, 8 : i32
    %c0_42 = arith.constant 0 : index
    %77 = arith.index_cast %76 : i32 to index
    %c0_43 = arith.constant 0 : index
    %78 = vector.load %arg1[%c0_42, %77, %c0_43] : memref<2x16x128xf32, #tpu.memory_space<vmem>>, vector<1x8x128xf32>
    %79 = vector.shape_cast %78 : vector<1x8x128xf32> to vector<8x128xf32>
    %80 = arith.index_cast %76 : i32 to index
    %c0_44 = arith.constant 0 : index
    %81 = vector.load %arg9[%80, %c0_44] : memref<16x1xf32, #tpu.memory_space<vmem>>, vector<8x1xf32>
    %82 = vector.broadcast %81 : vector<8x1xf32> to vector<8x128xf32>
    %83 = arith.mulf %79, %82 : vector<8x128xf32>
    %84 = arith.addf %73, %83 : vector<8x128xf32>
    %85 = arith.maximumf %74, %83 : vector<8x128xf32>
    %c2_i32_45 = arith.constant 2 : i32
    %cst_46 = arith.constant dense<0.000000e+00> : vector<128xf32>
    %86 = vector.multi_reduction <add>, %84, %cst_46 [0] : vector<8x128xf32> to vector<128xf32>
    %87 = vector.shape_cast %86 : vector<128xf32> to vector<1x128xf32>
    %cst_47 = arith.constant dense<0xFF800000> : vector<128xf32>
    %88 = vector.multi_reduction <maximumf>, %85, %cst_47 [0] : vector<8x128xf32> to vector<128xf32>
    %89 = vector.shape_cast %88 : vector<128xf32> to vector<1x128xf32>
    %cst_48 = arith.constant 6.250000e-02 : f32
    %90 = vector.broadcast %cst_48 : f32 to vector<1x128xf32>
    %91 = arith.mulf %87, %90 : vector<1x128xf32>
    %c0_49 = arith.constant 0 : index
    %c15 = arith.constant 15 : index
    %92 = vector.load %arg10[%c0_49, %c15] : memref<2x158xf32, #tpu.memory_space<vmem>>, vector<1x128xf32>
    tpu.vector_store %arg10[%c0_49, %c15], %91 {strides = array<i32>} : memref<2x158xf32, #tpu.memory_space<vmem>>, vector<1x128xf32>,
    %c1_50 = arith.constant 1 : index
    %c15_51 = arith.constant 15 : index
    %93 = vector.load %arg10[%c1_50, %c15_51] : memref<2x158xf32, #tpu.memory_space<vmem>>, vector<1x128xf32>
    tpu.vector_store %arg10[%c1_50, %c15_51], %89 {strides = array<i32>} : memref<2x158xf32, #tpu.memory_space<vmem>>, vector<1x128xf32>,
    %cst_52 = arith.constant 0.000000e+00 : f32
    %94 = vector.broadcast %cst_52 : f32 to vector<1x128xf32>
    %c0_53 = arith.constant 0 : index
    %c0_54 = arith.constant 0 : index
    %95 = vector.load %arg10[%c0_53, %c0_54] : memref<2x158xf32, #tpu.memory_space<vmem>>, vector<2x128xf32>
    %c0_55 = arith.constant 0 : index
    %96 = memref.load %arg6[%c0_55] : memref<98xf32, #tpu.memory_space<smem>>
    %c49 = arith.constant 49 : index
    %97 = memref.load %arg6[%c49] : memref<98xf32, #tpu.memory_space<smem>>
    %98 = vector.extract_strided_slice %95 {offsets = [0, 0], sizes = [1, 128], strides = [1, 1]} : vector<2x128xf32> to vector<1x128xf32>
    %99 = vector.broadcast %96 : f32 to vector<1x128xf32>
    %100 = arith.mulf %99, %98 : vector<1x128xf32>
    %101 = arith.addf %94, %100 : vector<1x128xf32>
    %102 = vector.extract_strided_slice %95 {offsets = [1, 0], sizes = [1, 128], strides = [1, 1]} : vector<2x128xf32> to vector<1x128xf32>
    %103 = vector.broadcast %97 : f32 to vector<1x128xf32>
    %104 = arith.mulf %103, %102 : vector<1x128xf32>
    %105 = arith.addf %101, %104 : vector<1x128xf32>
    %c0_56 = arith.constant 0 : index
    %c4 = arith.constant 4 : index
    %106 = vector.load %arg10[%c0_56, %c4] : memref<2x158xf32, #tpu.memory_space<vmem>>, vector<2x128xf32>
    %c7 = arith.constant 7 : index
    %107 = memref.load %arg6[%c7] : memref<98xf32, #tpu.memory_space<smem>>
    %c56 = arith.constant 56 : index
    %108 = memref.load %arg6[%c56] : memref<98xf32, #tpu.memory_space<smem>>
    %109 = vector.extract_strided_slice %106 {offsets = [0, 0], sizes = [1, 128], strides = [1, 1]} : vector<2x128xf32> to vector<1x128xf32>
    %110 = vector.broadcast %107 : f32 to vector<1x128xf32>
    %111 = arith.mulf %110, %109 : vector<1x128xf32>
    %112 = arith.addf %105, %111 : vector<1x128xf32>
    %113 = vector.extract_strided_slice %106 {offsets = [1, 0], sizes = [1, 128], strides = [1, 1]} : vector<2x128xf32> to vector<1x128xf32>
    %114 = vector.broadcast %108 : f32 to vector<1x128xf32>
    %115 = arith.mulf %114, %113 : vector<1x128xf32>
    %116 = arith.addf %112, %115 : vector<1x128xf32>
    %c0_57 = arith.constant 0 : index
    %c8 = arith.constant 8 : index
    %117 = vector.load %arg10[%c0_57, %c8] : memref<2x158xf32, #tpu.memory_space<vmem>>, vector<2x128xf32>
    %c14 = arith.constant 14 : index
    %118 = memref.load %arg6[%c14] : memref<98xf32, #tpu.memory_space<smem>>
    %c63 = arith.constant 63 : index
    %119 = memref.load %arg6[%c63] : memref<98xf32, #tpu.memory_space<smem>>
    %120 = vector.extract_strided_slice %117 {offsets = [0, 0], sizes = [1, 128], strides = [1, 1]} : vector<2x128xf32> to vector<1x128xf32>
    %121 = vector.broadcast %118 : f32 to vector<1x128xf32>
    %122 = arith.mulf %121, %120 : vector<1x128xf32>
    %123 = arith.addf %116, %122 : vector<1x128xf32>
    %124 = vector.extract_strided_slice %117 {offsets = [1, 0], sizes = [1, 128], strides = [1, 1]} : vector<2x128xf32> to vector<1x128xf32>
    %125 = vector.broadcast %119 : f32 to vector<1x128xf32>
    %126 = arith.mulf %125, %124 : vector<1x128xf32>
    %127 = arith.addf %123, %126 : vector<1x128xf32>
    %c0_58 = arith.constant 0 : index
    %c12 = arith.constant 12 : index
    %128 = vector.load %arg10[%c0_58, %c12] : memref<2x158xf32, #tpu.memory_space<vmem>>, vector<2x128xf32>
    %c21 = arith.constant 21 : index
    %129 = memref.load %arg6[%c21] : memref<98xf32, #tpu.memory_space<smem>>
    %c70 = arith.constant 70 : index
    %130 = memref.load %arg6[%c70] : memref<98xf32, #tpu.memory_space<smem>>
    %131 = vector.extract_strided_slice %128 {offsets = [0, 0], sizes = [1, 128], strides = [1, 1]} : vector<2x128xf32> to vector<1x128xf32>
    %132 = vector.broadcast %129 : f32 to vector<1x128xf32>
    %133 = arith.mulf %132, %131 : vector<1x128xf32>
    %134 = arith.addf %127, %133 : vector<1x128xf32>
    %135 = vector.extract_strided_slice %128 {offsets = [1, 0], sizes = [1, 128], strides = [1, 1]} : vector<2x128xf32> to vector<1x128xf32>
    %136 = vector.broadcast %130 : f32 to vector<1x128xf32>
    %137 = arith.mulf %136, %135 : vector<1x128xf32>
    %138 = arith.addf %134, %137 : vector<1x128xf32>
    %c0_59 = arith.constant 0 : index
    %c16 = arith.constant 16 : index
    %139 = vector.load %arg10[%c0_59, %c16] : memref<2x158xf32, #tpu.memory_space<vmem>>, vector<2x128xf32>
    %c28 = arith.constant 28 : index
    %140 = memref.load %arg6[%c28] : memref<98xf32, #tpu.memory_space<smem>>
    %c77 = arith.constant 77 : index
    %141 = memref.load %arg6[%c77] : memref<98xf32, #tpu.memory_space<smem>>
    %142 = vector.extract_strided_slice %139 {offsets = [0, 0], sizes = [1, 128], strides = [1, 1]} : vector<2x128xf32> to vector<1x128xf32>
    %143 = vector.broadcast %140 : f32 to vector<1x128xf32>
    %144 = arith.mulf %143, %142 : vector<1x128xf32>
    %145 = arith.addf %138, %144 : vector<1x128xf32>
    %146 = vector.extract_strided_slice %139 {offsets = [1, 0], sizes = [1, 128], strides = [1, 1]} : vector<2x128xf32> to vector<1x128xf32>
    %147 = vector.broadcast %141 : f32 to vector<1x128xf32>
    %148 = arith.mulf %147, %146 : vector<1x128xf32>
    %149 = arith.addf %145, %148 : vector<1x128xf32>
    %c0_60 = arith.constant 0 : index
    %c20 = arith.constant 20 : index
    %150 = vector.load %arg10[%c0_60, %c20] : memref<2x158xf32, #tpu.memory_space<vmem>>, vector<2x128xf32>
    %c35 = arith.constant 35 : index
    %151 = memref.load %arg6[%c35] : memref<98xf32, #tpu.memory_space<smem>>
    %c84 = arith.constant 84 : index
    %152 = memref.load %arg6[%c84] : memref<98xf32, #tpu.memory_space<smem>>
    %153 = vector.extract_strided_slice %150 {offsets = [0, 0], sizes = [1, 128], strides = [1, 1]} : vector<2x128xf32> to vector<1x128xf32>
    %154 = vector.broadcast %151 : f32 to vector<1x128xf32>
    %155 = arith.mulf %154, %153 : vector<1x128xf32>
    %156 = arith.addf %149, %155 : vector<1x128xf32>
    %157 = vector.extract_strided_slice %150 {offsets = [1, 0], sizes = [1, 128], strides = [1, 1]} : vector<2x128xf32> to vector<1x128xf32>
    %158 = vector.broadcast %152 : f32 to vector<1x128xf32>
    %159 = arith.mulf %158, %157 : vector<1x128xf32>
    %160 = arith.addf %156, %159 : vector<1x128xf32>
    %c0_61 = arith.constant 0 : index
    %c24 = arith.constant 24 : index
    %161 = vector.load %arg10[%c0_61, %c24] : memref<2x158xf32, #tpu.memory_space<vmem>>, vector<2x128xf32>
    %c42 = arith.constant 42 : index
    %162 = memref.load %arg6[%c42] : memref<98xf32, #tpu.memory_space<smem>>
    %c91 = arith.constant 91 : index
    %163 = memref.load %arg6[%c91] : memref<98xf32, #tpu.memory_space<smem>>
    %164 = vector.extract_strided_slice %161 {offsets = [0, 0], sizes = [1, 128], strides = [1, 1]} : vector<2x128xf32> to vector<1x128xf32>
    %165 = vector.broadcast %162 : f32 to vector<1x128xf32>
    %166 = arith.mulf %165, %164 : vector<1x128xf32>
    %167 = arith.addf %160, %166 : vector<1x128xf32>
    %168 = vector.extract_strided_slice %161 {offsets = [1, 0], sizes = [1, 128], strides = [1, 1]} : vector<2x128xf32> to vector<1x128xf32>
    %169 = vector.broadcast %163 : f32 to vector<1x128xf32>
    %170 = arith.mulf %169, %168 : vector<1x128xf32>
    %171 = arith.addf %167, %170 : vector<1x128xf32>
    %c0_62 = arith.constant 0 : index
    %c0_63 = arith.constant 0 : index
    %172 = vector.load %arg5[%c0_62, %c0_63] : memref<7x128xf32, #tpu.memory_space<vmem>>, vector<1x128xf32>
    %173 = arith.mulf %171, %172 : vector<1x128xf32>
    %cst_64 = arith.constant 0.000000e+00 : f32
    %174 = vector.broadcast %cst_64 : f32 to vector<1x128xf32>
    %c0_65 = arith.constant 0 : index
    %c1_66 = arith.constant 1 : index
    %175 = vector.load %arg10[%c0_65, %c1_66] : memref<2x158xf32, #tpu.memory_space<vmem>>, vector<2x128xf32>
    %c1_67 = arith.constant 1 : index
    %176 = memref.load %arg6[%c1_67] : memref<98xf32, #tpu.memory_space<smem>>
    %c50 = arith.constant 50 : index
    %177 = memref.load %arg6[%c50] : memref<98xf32, #tpu.memory_space<smem>>
    %178 = vector.extract_strided_slice %175 {offsets = [0, 0], sizes = [1, 128], strides = [1, 1]} : vector<2x128xf32> to vector<1x128xf32>
    %179 = vector.broadcast %176 : f32 to vector<1x128xf32>
    %180 = arith.mulf %179, %178 : vector<1x128xf32>
    %181 = arith.addf %174, %180 : vector<1x128xf32>
    %182 = vector.extract_strided_slice %175 {offsets = [1, 0], sizes = [1, 128], strides = [1, 1]} : vector<2x128xf32> to vector<1x128xf32>
    %183 = vector.broadcast %177 : f32 to vector<1x128xf32>
    %184 = arith.mulf %183, %182 : vector<1x128xf32>
    %185 = arith.addf %181, %184 : vector<1x128xf32>
    %c0_68 = arith.constant 0 : index
    %c5 = arith.constant 5 : index
    %186 = vector.load %arg10[%c0_68, %c5] : memref<2x158xf32, #tpu.memory_space<vmem>>, vector<2x128xf32>
    %c8_69 = arith.constant 8 : index
    %187 = memref.load %arg6[%c8_69] : memref<98xf32, #tpu.memory_space<smem>>
    %c57 = arith.constant 57 : index
    %188 = memref.load %arg6[%c57] : memref<98xf32, #tpu.memory_space<smem>>
    %189 = vector.extract_strided_slice %186 {offsets = [0, 0], sizes = [1, 128], strides = [1, 1]} : vector<2x128xf32> to vector<1x128xf32>
    %190 = vector.broadcast %187 : f32 to vector<1x128xf32>
    %191 = arith.mulf %190, %189 : vector<1x128xf32>
    %192 = arith.addf %185, %191 : vector<1x128xf32>
    %193 = vector.extract_strided_slice %186 {offsets = [1, 0], sizes = [1, 128], strides = [1, 1]} : vector<2x128xf32> to vector<1x128xf32>
    %194 = vector.broadcast %188 : f32 to vector<1x128xf32>
    %195 = arith.mulf %194, %193 : vector<1x128xf32>
    %196 = arith.addf %192, %195 : vector<1x128xf32>
    %c0_70 = arith.constant 0 : index
    %c9 = arith.constant 9 : index
    %197 = vector.load %arg10[%c0_70, %c9] : memref<2x158xf32, #tpu.memory_space<vmem>>, vector<2x128xf32>
    %c15_71 = arith.constant 15 : index
    %198 = memref.load %arg6[%c15_71] : memref<98xf32, #tpu.memory_space<smem>>
    %c64 = arith.constant 64 : index
    %199 = memref.load %arg6[%c64] : memref<98xf32, #tpu.memory_space<smem>>
    %200 = vector.extract_strided_slice %197 {offsets = [0, 0], sizes = [1, 128], strides = [1, 1]} : vector<2x128xf32> to vector<1x128xf32>
    %201 = vector.broadcast %198 : f32 to vector<1x128xf32>
    %202 = arith.mulf %201, %200 : vector<1x128xf32>
    %203 = arith.addf %196, %202 : vector<1x128xf32>
    %204 = vector.extract_strided_slice %197 {offsets = [1, 0], sizes = [1, 128], strides = [1, 1]} : vector<2x128xf32> to vector<1x128xf32>
    %205 = vector.broadcast %199 : f32 to vector<1x128xf32>
    %206 = arith.mulf %205, %204 : vector<1x128xf32>
    %207 = arith.addf %203, %206 : vector<1x128xf32>
    %c0_72 = arith.constant 0 : index
    %c13 = arith.constant 13 : index
    %208 = vector.load %arg10[%c0_72, %c13] : memref<2x158xf32, #tpu.memory_space<vmem>>, vector<2x128xf32>
    %c22 = arith.constant 22 : index
    %209 = memref.load %arg6[%c22] : memref<98xf32, #tpu.memory_space<smem>>
    %c71 = arith.constant 71 : index
    %210 = memref.load %arg6[%c71] : memref<98xf32, #tpu.memory_space<smem>>
    %211 = vector.extract_strided_slice %208 {offsets = [0, 0], sizes = [1, 128], strides = [1, 1]} : vector<2x128xf32> to vector<1x128xf32>
    %212 = vector.broadcast %209 : f32 to vector<1x128xf32>
    %213 = arith.mulf %212, %211 : vector<1x128xf32>
    %214 = arith.addf %207, %213 : vector<1x128xf32>
    %215 = vector.extract_strided_slice %208 {offsets = [1, 0], sizes = [1, 128], strides = [1, 1]} : vector<2x128xf32> to vector<1x128xf32>
    %216 = vector.broadcast %210 : f32 to vector<1x128xf32>
    %217 = arith.mulf %216, %215 : vector<1x128xf32>
    %218 = arith.addf %214, %217 : vector<1x128xf32>
    %c0_73 = arith.constant 0 : index
    %c17 = arith.constant 17 : index
    %219 = vector.load %arg10[%c0_73, %c17] : memref<2x158xf32, #tpu.memory_space<vmem>>, vector<2x128xf32>
    %c29 = arith.constant 29 : index
    %220 = memref.load %arg6[%c29] : memref<98xf32, #tpu.memory_space<smem>>
    %c78 = arith.constant 78 : index
    %221 = memref.load %arg6[%c78] : memref<98xf32, #tpu.memory_space<smem>>
    %222 = vector.extract_strided_slice %219 {offsets = [0, 0], sizes = [1, 128], strides = [1, 1]} : vector<2x128xf32> to vector<1x128xf32>
    %223 = vector.broadcast %220 : f32 to vector<1x128xf32>
    %224 = arith.mulf %223, %222 : vector<1x128xf32>
    %225 = arith.addf %218, %224 : vector<1x128xf32>
    %226 = vector.extract_strided_slice %219 {offsets = [1, 0], sizes = [1, 128], strides = [1, 1]} : vector<2x128xf32> to vector<1x128xf32>
    %227 = vector.broadcast %221 : f32 to vector<1x128xf32>
    %228 = arith.mulf %227, %226 : vector<1x128xf32>
    %229 = arith.addf %225, %228 : vector<1x128xf32>
    %c0_74 = arith.constant 0 : index
    %c21_75 = arith.constant 21 : index
    %230 = vector.load %arg10[%c0_74, %c21_75] : memref<2x158xf32, #tpu.memory_space<vmem>>, vector<2x128xf32>
    %c36 = arith.constant 36 : index
    %231 = memref.load %arg6[%c36] : memref<98xf32, #tpu.memory_space<smem>>
    %c85 = arith.constant 85 : index
    %232 = memref.load %arg6[%c85] : memref<98xf32, #tpu.memory_space<smem>>
    %233 = vector.extract_strided_slice %230 {offsets = [0, 0], sizes = [1, 128], strides = [1, 1]} : vector<2x128xf32> to vector<1x128xf32>
    %234 = vector.broadcast %231 : f32 to vector<1x128xf32>
    %235 = arith.mulf %234, %233 : vector<1x128xf32>
    %236 = arith.addf %229, %235 : vector<1x128xf32>
    %237 = vector.extract_strided_slice %230 {offsets = [1, 0], sizes = [1, 128], strides = [1, 1]} : vector<2x128xf32> to vector<1x128xf32>
    %238 = vector.broadcast %232 : f32 to vector<1x128xf32>
    %239 = arith.mulf %238, %237 : vector<1x128xf32>
    %240 = arith.addf %236, %239 : vector<1x128xf32>
    %c0_76 = arith.constant 0 : index
    %c25 = arith.constant 25 : index
    %241 = vector.load %arg10[%c0_76, %c25] : memref<2x158xf32, #tpu.memory_space<vmem>>, vector<2x128xf32>
    %c43 = arith.constant 43 : index
    %242 = memref.load %arg6[%c43] : memref<98xf32, #tpu.memory_space<smem>>
    %c92 = arith.constant 92 : index
    %243 = memref.load %arg6[%c92] : memref<98xf32, #tpu.memory_space<smem>>
    %244 = vector.extract_strided_slice %241 {offsets = [0, 0], sizes = [1, 128], strides = [1, 1]} : vector<2x128xf32> to vector<1x128xf32>
    %245 = vector.broadcast %242 : f32 to vector<1x128xf32>
    %246 = arith.mulf %245, %244 : vector<1x128xf32>
    %247 = arith.addf %240, %246 : vector<1x128xf32>
    %248 = vector.extract_strided_slice %241 {offsets = [1, 0], sizes = [1, 128], strides = [1, 1]} : vector<2x128xf32> to vector<1x128xf32>
    %249 = vector.broadcast %243 : f32 to vector<1x128xf32>
    %250 = arith.mulf %249, %248 : vector<1x128xf32>
    %251 = arith.addf %247, %250 : vector<1x128xf32>
    %c1_77 = arith.constant 1 : index
    %c0_78 = arith.constant 0 : index
    %252 = vector.load %arg5[%c1_77, %c0_78] : memref<7x128xf32, #tpu.memory_space<vmem>>, vector<1x128xf32>
    %253 = arith.mulf %251, %252 : vector<1x128xf32>
    %cst_79 = arith.constant 0.000000e+00 : f32
    %254 = vector.broadcast %cst_79 : f32 to vector<1x128xf32>
    %c0_80 = arith.constant 0 : index
    %c2 = arith.constant 2 : index
    %255 = vector.load %arg10[%c0_80, %c2] : memref<2x158xf32, #tpu.memory_space<vmem>>, vector<2x128xf32>
    %c2_81 = arith.constant 2 : index
    %256 = memref.load %arg6[%c2_81] : memref<98xf32, #tpu.memory_space<smem>>
    %c51 = arith.constant 51 : index
    %257 = memref.load %arg6[%c51] : memref<98xf32, #tpu.memory_space<smem>>
    %258 = vector.extract_strided_slice %255 {offsets = [0, 0], sizes = [1, 128], strides = [1, 1]} : vector<2x128xf32> to vector<1x128xf32>
    %259 = vector.broadcast %256 : f32 to vector<1x128xf32>
    %260 = arith.mulf %259, %258 : vector<1x128xf32>
    %261 = arith.addf %254, %260 : vector<1x128xf32>
    %262 = vector.extract_strided_slice %255 {offsets = [1, 0], sizes = [1, 128], strides = [1, 1]} : vector<2x128xf32> to vector<1x128xf32>
    %263 = vector.broadcast %257 : f32 to vector<1x128xf32>
    %264 = arith.mulf %263, %262 : vector<1x128xf32>
    %265 = arith.addf %261, %264 : vector<1x128xf32>
    %c0_82 = arith.constant 0 : index
    %c6 = arith.constant 6 : index
    %266 = vector.load %arg10[%c0_82, %c6] : memref<2x158xf32, #tpu.memory_space<vmem>>, vector<2x128xf32>
    %c9_83 = arith.constant 9 : index
    %267 = memref.load %arg6[%c9_83] : memref<98xf32, #tpu.memory_space<smem>>
    %c58 = arith.constant 58 : index
    %268 = memref.load %arg6[%c58] : memref<98xf32, #tpu.memory_space<smem>>
    %269 = vector.extract_strided_slice %266 {offsets = [0, 0], sizes = [1, 128], strides = [1, 1]} : vector<2x128xf32> to vector<1x128xf32>
    %270 = vector.broadcast %267 : f32 to vector<1x128xf32>
    %271 = arith.mulf %270, %269 : vector<1x128xf32>
    %272 = arith.addf %265, %271 : vector<1x128xf32>
    %273 = vector.extract_strided_slice %266 {offsets = [1, 0], sizes = [1, 128], strides = [1, 1]} : vector<2x128xf32> to vector<1x128xf32>
    %274 = vector.broadcast %268 : f32 to vector<1x128xf32>
    %275 = arith.mulf %274, %273 : vector<1x128xf32>
    %276 = arith.addf %272, %275 : vector<1x128xf32>
    %c0_84 = arith.constant 0 : index
    %c10 = arith.constant 10 : index
    %277 = vector.load %arg10[%c0_84, %c10] : memref<2x158xf32, #tpu.memory_space<vmem>>, vector<2x128xf32>
    %c16_85 = arith.constant 16 : index
    %278 = memref.load %arg6[%c16_85] : memref<98xf32, #tpu.memory_space<smem>>
    %c65 = arith.constant 65 : index
    %279 = memref.load %arg6[%c65] : memref<98xf32, #tpu.memory_space<smem>>
    %280 = vector.extract_strided_slice %277 {offsets = [0, 0], sizes = [1, 128], strides = [1, 1]} : vector<2x128xf32> to vector<1x128xf32>
    %281 = vector.broadcast %278 : f32 to vector<1x128xf32>
    %282 = arith.mulf %281, %280 : vector<1x128xf32>
    %283 = arith.addf %276, %282 : vector<1x128xf32>
    %284 = vector.extract_strided_slice %277 {offsets = [1, 0], sizes = [1, 128], strides = [1, 1]} : vector<2x128xf32> to vector<1x128xf32>
    %285 = vector.broadcast %279 : f32 to vector<1x128xf32>
    %286 = arith.mulf %285, %284 : vector<1x128xf32>
    %287 = arith.addf %283, %286 : vector<1x128xf32>
    %c0_86 = arith.constant 0 : index
    %c14_87 = arith.constant 14 : index
    %288 = vector.load %arg10[%c0_86, %c14_87] : memref<2x158xf32, #tpu.memory_space<vmem>>, vector<2x128xf32>
    %c23 = arith.constant 23 : index
    %289 = memref.load %arg6[%c23] : memref<98xf32, #tpu.memory_space<smem>>
    %c72 = arith.constant 72 : index
    %290 = memref.load %arg6[%c72] : memref<98xf32, #tpu.memory_space<smem>>
    %291 = vector.extract_strided_slice %288 {offsets = [0, 0], sizes = [1, 128], strides = [1, 1]} : vector<2x128xf32> to vector<1x128xf32>
    %292 = vector.broadcast %289 : f32 to vector<1x128xf32>
    %293 = arith.mulf %292, %291 : vector<1x128xf32>
    %294 = arith.addf %287, %293 : vector<1x128xf32>
    %295 = vector.extract_strided_slice %288 {offsets = [1, 0], sizes = [1, 128], strides = [1, 1]} : vector<2x128xf32> to vector<1x128xf32>
    %296 = vector.broadcast %290 : f32 to vector<1x128xf32>
    %297 = arith.mulf %296, %295 : vector<1x128xf32>
    %298 = arith.addf %294, %297 : vector<1x128xf32>
    %c0_88 = arith.constant 0 : index
    %c18 = arith.constant 18 : index
    %299 = vector.load %arg10[%c0_88, %c18] : memref<2x158xf32, #tpu.memory_space<vmem>>, vector<2x128xf32>
    %c30 = arith.constant 30 : index
    %300 = memref.load %arg6[%c30] : memref<98xf32, #tpu.memory_space<smem>>
    %c79 = arith.constant 79 : index
    %301 = memref.load %arg6[%c79] : memref<98xf32, #tpu.memory_space<smem>>
    %302 = vector.extract_strided_slice %299 {offsets = [0, 0], sizes = [1, 128], strides = [1, 1]} : vector<2x128xf32> to vector<1x128xf32>
    %303 = vector.broadcast %300 : f32 to vector<1x128xf32>
    %304 = arith.mulf %303, %302 : vector<1x128xf32>
    %305 = arith.addf %298, %304 : vector<1x128xf32>
    %306 = vector.extract_strided_slice %299 {offsets = [1, 0], sizes = [1, 128], strides = [1, 1]} : vector<2x128xf32> to vector<1x128xf32>
    %307 = vector.broadcast %301 : f32 to vector<1x128xf32>
    %308 = arith.mulf %307, %306 : vector<1x128xf32>
    %309 = arith.addf %305, %308 : vector<1x128xf32>
    %c0_89 = arith.constant 0 : index
    %c22_90 = arith.constant 22 : index
    %310 = vector.load %arg10[%c0_89, %c22_90] : memref<2x158xf32, #tpu.memory_space<vmem>>, vector<2x128xf32>
    %c37 = arith.constant 37 : index
    %311 = memref.load %arg6[%c37] : memref<98xf32, #tpu.memory_space<smem>>
    %c86 = arith.constant 86 : index
    %312 = memref.load %arg6[%c86] : memref<98xf32, #tpu.memory_space<smem>>
    %313 = vector.extract_strided_slice %310 {offsets = [0, 0], sizes = [1, 128], strides = [1, 1]} : vector<2x128xf32> to vector<1x128xf32>
    %314 = vector.broadcast %311 : f32 to vector<1x128xf32>
    %315 = arith.mulf %314, %313 : vector<1x128xf32>
    %316 = arith.addf %309, %315 : vector<1x128xf32>
    %317 = vector.extract_strided_slice %310 {offsets = [1, 0], sizes = [1, 128], strides = [1, 1]} : vector<2x128xf32> to vector<1x128xf32>
    %318 = vector.broadcast %312 : f32 to vector<1x128xf32>
    %319 = arith.mulf %318, %317 : vector<1x128xf32>
    %320 = arith.addf %316, %319 : vector<1x128xf32>
    %c0_91 = arith.constant 0 : index
    %c26 = arith.constant 26 : index
    %321 = vector.load %arg10[%c0_91, %c26] : memref<2x158xf32, #tpu.memory_space<vmem>>, vector<2x128xf32>
    %c44 = arith.constant 44 : index
    %322 = memref.load %arg6[%c44] : memref<98xf32, #tpu.memory_space<smem>>
    %c93 = arith.constant 93 : index
    %323 = memref.load %arg6[%c93] : memref<98xf32, #tpu.memory_space<smem>>
    %324 = vector.extract_strided_slice %321 {offsets = [0, 0], sizes = [1, 128], strides = [1, 1]} : vector<2x128xf32> to vector<1x128xf32>
    %325 = vector.broadcast %322 : f32 to vector<1x128xf32>
    %326 = arith.mulf %325, %324 : vector<1x128xf32>
    %327 = arith.addf %320, %326 : vector<1x128xf32>
    %328 = vector.extract_strided_slice %321 {offsets = [1, 0], sizes = [1, 128], strides = [1, 1]} : vector<2x128xf32> to vector<1x128xf32>
    %329 = vector.broadcast %323 : f32 to vector<1x128xf32>
    %330 = arith.mulf %329, %328 : vector<1x128xf32>
    %331 = arith.addf %327, %330 : vector<1x128xf32>
    %c2_92 = arith.constant 2 : index
    %c0_93 = arith.constant 0 : index
    %332 = vector.load %arg5[%c2_92, %c0_93] : memref<7x128xf32, #tpu.memory_space<vmem>>, vector<1x128xf32>
    %333 = arith.mulf %331, %332 : vector<1x128xf32>
    %cst_94 = arith.constant 0.000000e+00 : f32
    %334 = vector.broadcast %cst_94 : f32 to vector<1x128xf32>
    %c0_95 = arith.constant 0 : index
    %c3 = arith.constant 3 : index
    %335 = vector.load %arg10[%c0_95, %c3] : memref<2x158xf32, #tpu.memory_space<vmem>>, vector<2x128xf32>
    %c3_96 = arith.constant 3 : index
    %336 = memref.load %arg6[%c3_96] : memref<98xf32, #tpu.memory_space<smem>>
    %c52 = arith.constant 52 : index
    %337 = memref.load %arg6[%c52] : memref<98xf32, #tpu.memory_space<smem>>
    %338 = vector.extract_strided_slice %335 {offsets = [0, 0], sizes = [1, 128], strides = [1, 1]} : vector<2x128xf32> to vector<1x128xf32>
    %339 = vector.broadcast %336 : f32 to vector<1x128xf32>
    %340 = arith.mulf %339, %338 : vector<1x128xf32>
    %341 = arith.addf %334, %340 : vector<1x128xf32>
    %342 = vector.extract_strided_slice %335 {offsets = [1, 0], sizes = [1, 128], strides = [1, 1]} : vector<2x128xf32> to vector<1x128xf32>
    %343 = vector.broadcast %337 : f32 to vector<1x128xf32>
    %344 = arith.mulf %343, %342 : vector<1x128xf32>
    %345 = arith.addf %341, %344 : vector<1x128xf32>
    %c0_97 = arith.constant 0 : index
    %c7_98 = arith.constant 7 : index
    %346 = vector.load %arg10[%c0_97, %c7_98] : memref<2x158xf32, #tpu.memory_space<vmem>>, vector<2x128xf32>
    %c10_99 = arith.constant 10 : index
    %347 = memref.load %arg6[%c10_99] : memref<98xf32, #tpu.memory_space<smem>>
    %c59 = arith.constant 59 : index
    %348 = memref.load %arg6[%c59] : memref<98xf32, #tpu.memory_space<smem>>
    %349 = vector.extract_strided_slice %346 {offsets = [0, 0], sizes = [1, 128], strides = [1, 1]} : vector<2x128xf32> to vector<1x128xf32>
    %350 = vector.broadcast %347 : f32 to vector<1x128xf32>
    %351 = arith.mulf %350, %349 : vector<1x128xf32>
    %352 = arith.addf %345, %351 : vector<1x128xf32>
    %353 = vector.extract_strided_slice %346 {offsets = [1, 0], sizes = [1, 128], strides = [1, 1]} : vector<2x128xf32> to vector<1x128xf32>
    %354 = vector.broadcast %348 : f32 to vector<1x128xf32>
    %355 = arith.mulf %354, %353 : vector<1x128xf32>
    %356 = arith.addf %352, %355 : vector<1x128xf32>
    %c0_100 = arith.constant 0 : index
    %c11 = arith.constant 11 : index
    %357 = vector.load %arg10[%c0_100, %c11] : memref<2x158xf32, #tpu.memory_space<vmem>>, vector<2x128xf32>
    %c17_101 = arith.constant 17 : index
    %358 = memref.load %arg6[%c17_101] : memref<98xf32, #tpu.memory_space<smem>>
    %c66 = arith.constant 66 : index
    %359 = memref.load %arg6[%c66] : memref<98xf32, #tpu.memory_space<smem>>
    %360 = vector.extract_strided_slice %357 {offsets = [0, 0], sizes = [1, 128], strides = [1, 1]} : vector<2x128xf32> to vector<1x128xf32>
    %361 = vector.broadcast %358 : f32 to vector<1x128xf32>
    %362 = arith.mulf %361, %360 : vector<1x128xf32>
    %363 = arith.addf %356, %362 : vector<1x128xf32>
    %364 = vector.extract_strided_slice %357 {offsets = [1, 0], sizes = [1, 128], strides = [1, 1]} : vector<2x128xf32> to vector<1x128xf32>
    %365 = vector.broadcast %359 : f32 to vector<1x128xf32>
    %366 = arith.mulf %365, %364 : vector<1x128xf32>
    %367 = arith.addf %363, %366 : vector<1x128xf32>
    %c0_102 = arith.constant 0 : index
    %c15_103 = arith.constant 15 : index
    %368 = vector.load %arg10[%c0_102, %c15_103] : memref<2x158xf32, #tpu.memory_space<vmem>>, vector<2x128xf32>
    %c24_104 = arith.constant 24 : index
    %369 = memref.load %arg6[%c24_104] : memref<98xf32, #tpu.memory_space<smem>>
    %c73 = arith.constant 73 : index
    %370 = memref.load %arg6[%c73] : memref<98xf32, #tpu.memory_space<smem>>
    %371 = vector.extract_strided_slice %368 {offsets = [0, 0], sizes = [1, 128], strides = [1, 1]} : vector<2x128xf32> to vector<1x128xf32>
    %372 = vector.broadcast %369 : f32 to vector<1x128xf32>
    %373 = arith.mulf %372, %371 : vector<1x128xf32>
    %374 = arith.addf %367, %373 : vector<1x128xf32>
    %375 = vector.extract_strided_slice %368 {offsets = [1, 0], sizes = [1, 128], strides = [1, 1]} : vector<2x128xf32> to vector<1x128xf32>
    %376 = vector.broadcast %370 : f32 to vector<1x128xf32>
    %377 = arith.mulf %376, %375 : vector<1x128xf32>
    %378 = arith.addf %374, %377 : vector<1x128xf32>
    %c0_105 = arith.constant 0 : index
    %c19 = arith.constant 19 : index
    %379 = vector.load %arg10[%c0_105, %c19] : memref<2x158xf32, #tpu.memory_space<vmem>>, vector<2x128xf32>
    %c31 = arith.constant 31 : index
    %380 = memref.load %arg6[%c31] : memref<98xf32, #tpu.memory_space<smem>>
    %c80 = arith.constant 80 : index
    %381 = memref.load %arg6[%c80] : memref<98xf32, #tpu.memory_space<smem>>
    %382 = vector.extract_strided_slice %379 {offsets = [0, 0], sizes = [1, 128], strides = [1, 1]} : vector<2x128xf32> to vector<1x128xf32>
    %383 = vector.broadcast %380 : f32 to vector<1x128xf32>
    %384 = arith.mulf %383, %382 : vector<1x128xf32>
    %385 = arith.addf %378, %384 : vector<1x128xf32>
    %386 = vector.extract_strided_slice %379 {offsets = [1, 0], sizes = [1, 128], strides = [1, 1]} : vector<2x128xf32> to vector<1x128xf32>
    %387 = vector.broadcast %381 : f32 to vector<1x128xf32>
    %388 = arith.mulf %387, %386 : vector<1x128xf32>
    %389 = arith.addf %385, %388 : vector<1x128xf32>
    %c0_106 = arith.constant 0 : index
    %c23_107 = arith.constant 23 : index
    %390 = vector.load %arg10[%c0_106, %c23_107] : memref<2x158xf32, #tpu.memory_space<vmem>>, vector<2x128xf32>
    %c38 = arith.constant 38 : index
    %391 = memref.load %arg6[%c38] : memref<98xf32, #tpu.memory_space<smem>>
    %c87 = arith.constant 87 : index
    %392 = memref.load %arg6[%c87] : memref<98xf32, #tpu.memory_space<smem>>
    %393 = vector.extract_strided_slice %390 {offsets = [0, 0], sizes = [1, 128], strides = [1, 1]} : vector<2x128xf32> to vector<1x128xf32>
    %394 = vector.broadcast %391 : f32 to vector<1x128xf32>
    %395 = arith.mulf %394, %393 : vector<1x128xf32>
    %396 = arith.addf %389, %395 : vector<1x128xf32>
    %397 = vector.extract_strided_slice %390 {offsets = [1, 0], sizes = [1, 128], strides = [1, 1]} : vector<2x128xf32> to vector<1x128xf32>
    %398 = vector.broadcast %392 : f32 to vector<1x128xf32>
    %399 = arith.mulf %398, %397 : vector<1x128xf32>
    %400 = arith.addf %396, %399 : vector<1x128xf32>
    %c0_108 = arith.constant 0 : index
    %c27 = arith.constant 27 : index
    %401 = vector.load %arg10[%c0_108, %c27] : memref<2x158xf32, #tpu.memory_space<vmem>>, vector<2x128xf32>
    %c45 = arith.constant 45 : index
    %402 = memref.load %arg6[%c45] : memref<98xf32, #tpu.memory_space<smem>>
    %c94 = arith.constant 94 : index
    %403 = memref.load %arg6[%c94] : memref<98xf32, #tpu.memory_space<smem>>
    %404 = vector.extract_strided_slice %401 {offsets = [0, 0], sizes = [1, 128], strides = [1, 1]} : vector<2x128xf32> to vector<1x128xf32>
    %405 = vector.broadcast %402 : f32 to vector<1x128xf32>
    %406 = arith.mulf %405, %404 : vector<1x128xf32>
    %407 = arith.addf %400, %406 : vector<1x128xf32>
    %408 = vector.extract_strided_slice %401 {offsets = [1, 0], sizes = [1, 128], strides = [1, 1]} : vector<2x128xf32> to vector<1x128xf32>
    %409 = vector.broadcast %403 : f32 to vector<1x128xf32>
    %410 = arith.mulf %409, %408 : vector<1x128xf32>
    %411 = arith.addf %407, %410 : vector<1x128xf32>
    %c3_109 = arith.constant 3 : index
    %c0_110 = arith.constant 0 : index
    %412 = vector.load %arg5[%c3_109, %c0_110] : memref<7x128xf32, #tpu.memory_space<vmem>>, vector<1x128xf32>
    %413 = arith.mulf %411, %412 : vector<1x128xf32>
    %cst_111 = arith.constant 0.000000e+00 : f32
    %414 = vector.broadcast %cst_111 : f32 to vector<1x128xf32>
    %c0_112 = arith.constant 0 : index
    %c4_113 = arith.constant 4 : index
    %415 = vector.load %arg10[%c0_112, %c4_113] : memref<2x158xf32, #tpu.memory_space<vmem>>, vector<2x128xf32>
    %c4_114 = arith.constant 4 : index
    %416 = memref.load %arg6[%c4_114] : memref<98xf32, #tpu.memory_space<smem>>
    %c53 = arith.constant 53 : index
    %417 = memref.load %arg6[%c53] : memref<98xf32, #tpu.memory_space<smem>>
    %418 = vector.extract_strided_slice %415 {offsets = [0, 0], sizes = [1, 128], strides = [1, 1]} : vector<2x128xf32> to vector<1x128xf32>
    %419 = vector.broadcast %416 : f32 to vector<1x128xf32>
    %420 = arith.mulf %419, %418 : vector<1x128xf32>
    %421 = arith.addf %414, %420 : vector<1x128xf32>
    %422 = vector.extract_strided_slice %415 {offsets = [1, 0], sizes = [1, 128], strides = [1, 1]} : vector<2x128xf32> to vector<1x128xf32>
    %423 = vector.broadcast %417 : f32 to vector<1x128xf32>
    %424 = arith.mulf %423, %422 : vector<1x128xf32>
    %425 = arith.addf %421, %424 : vector<1x128xf32>
    %c0_115 = arith.constant 0 : index
    %c8_116 = arith.constant 8 : index
    %426 = vector.load %arg10[%c0_115, %c8_116] : memref<2x158xf32, #tpu.memory_space<vmem>>, vector<2x128xf32>
    %c11_117 = arith.constant 11 : index
    %427 = memref.load %arg6[%c11_117] : memref<98xf32, #tpu.memory_space<smem>>
    %c60 = arith.constant 60 : index
    %428 = memref.load %arg6[%c60] : memref<98xf32, #tpu.memory_space<smem>>
    %429 = vector.extract_strided_slice %426 {offsets = [0, 0], sizes = [1, 128], strides = [1, 1]} : vector<2x128xf32> to vector<1x128xf32>
    %430 = vector.broadcast %427 : f32 to vector<1x128xf32>
    %431 = arith.mulf %430, %429 : vector<1x128xf32>
    %432 = arith.addf %425, %431 : vector<1x128xf32>
    %433 = vector.extract_strided_slice %426 {offsets = [1, 0], sizes = [1, 128], strides = [1, 1]} : vector<2x128xf32> to vector<1x128xf32>
    %434 = vector.broadcast %428 : f32 to vector<1x128xf32>
    %435 = arith.mulf %434, %433 : vector<1x128xf32>
    %436 = arith.addf %432, %435 : vector<1x128xf32>
    %c0_118 = arith.constant 0 : index
    %c12_119 = arith.constant 12 : index
    %437 = vector.load %arg10[%c0_118, %c12_119] : memref<2x158xf32, #tpu.memory_space<vmem>>, vector<2x128xf32>
    %c18_120 = arith.constant 18 : index
    %438 = memref.load %arg6[%c18_120] : memref<98xf32, #tpu.memory_space<smem>>
    %c67 = arith.constant 67 : index
    %439 = memref.load %arg6[%c67] : memref<98xf32, #tpu.memory_space<smem>>
    %440 = vector.extract_strided_slice %437 {offsets = [0, 0], sizes = [1, 128], strides = [1, 1]} : vector<2x128xf32> to vector<1x128xf32>
    %441 = vector.broadcast %438 : f32 to vector<1x128xf32>
    %442 = arith.mulf %441, %440 : vector<1x128xf32>
    %443 = arith.addf %436, %442 : vector<1x128xf32>
    %444 = vector.extract_strided_slice %437 {offsets = [1, 0], sizes = [1, 128], strides = [1, 1]} : vector<2x128xf32> to vector<1x128xf32>
    %445 = vector.broadcast %439 : f32 to vector<1x128xf32>
    %446 = arith.mulf %445, %444 : vector<1x128xf32>
    %447 = arith.addf %443, %446 : vector<1x128xf32>
    %c0_121 = arith.constant 0 : index
    %c16_122 = arith.constant 16 : index
    %448 = vector.load %arg10[%c0_121, %c16_122] : memref<2x158xf32, #tpu.memory_space<vmem>>, vector<2x128xf32>
    %c25_123 = arith.constant 25 : index
    %449 = memref.load %arg6[%c25_123] : memref<98xf32, #tpu.memory_space<smem>>
    %c74 = arith.constant 74 : index
    %450 = memref.load %arg6[%c74] : memref<98xf32, #tpu.memory_space<smem>>
    %451 = vector.extract_strided_slice %448 {offsets = [0, 0], sizes = [1, 128], strides = [1, 1]} : vector<2x128xf32> to vector<1x128xf32>
    %452 = vector.broadcast %449 : f32 to vector<1x128xf32>
    %453 = arith.mulf %452, %451 : vector<1x128xf32>
    %454 = arith.addf %447, %453 : vector<1x128xf32>
    %455 = vector.extract_strided_slice %448 {offsets = [1, 0], sizes = [1, 128], strides = [1, 1]} : vector<2x128xf32> to vector<1x128xf32>
    %456 = vector.broadcast %450 : f32 to vector<1x128xf32>
    %457 = arith.mulf %456, %455 : vector<1x128xf32>
    %458 = arith.addf %454, %457 : vector<1x128xf32>
    %c0_124 = arith.constant 0 : index
    %c20_125 = arith.constant 20 : index
    %459 = vector.load %arg10[%c0_124, %c20_125] : memref<2x158xf32, #tpu.memory_space<vmem>>, vector<2x128xf32>
    %c32 = arith.constant 32 : index
    %460 = memref.load %arg6[%c32] : memref<98xf32, #tpu.memory_space<smem>>
    %c81 = arith.constant 81 : index
    %461 = memref.load %arg6[%c81] : memref<98xf32, #tpu.memory_space<smem>>
    %462 = vector.extract_strided_slice %459 {offsets = [0, 0], sizes = [1, 128], strides = [1, 1]} : vector<2x128xf32> to vector<1x128xf32>
    %463 = vector.broadcast %460 : f32 to vector<1x128xf32>
    %464 = arith.mulf %463, %462 : vector<1x128xf32>
    %465 = arith.addf %458, %464 : vector<1x128xf32>
    %466 = vector.extract_strided_slice %459 {offsets = [1, 0], sizes = [1, 128], strides = [1, 1]} : vector<2x128xf32> to vector<1x128xf32>
    %467 = vector.broadcast %461 : f32 to vector<1x128xf32>
    %468 = arith.mulf %467, %466 : vector<1x128xf32>
    %469 = arith.addf %465, %468 : vector<1x128xf32>
    %c0_126 = arith.constant 0 : index
    %c24_127 = arith.constant 24 : index
    %470 = vector.load %arg10[%c0_126, %c24_127] : memref<2x158xf32, #tpu.memory_space<vmem>>, vector<2x128xf32>
    %c39 = arith.constant 39 : index
    %471 = memref.load %arg6[%c39] : memref<98xf32, #tpu.memory_space<smem>>
    %c88 = arith.constant 88 : index
    %472 = memref.load %arg6[%c88] : memref<98xf32, #tpu.memory_space<smem>>
    %473 = vector.extract_strided_slice %470 {offsets = [0, 0], sizes = [1, 128], strides = [1, 1]} : vector<2x128xf32> to vector<1x128xf32>
    %474 = vector.broadcast %471 : f32 to vector<1x128xf32>
    %475 = arith.mulf %474, %473 : vector<1x128xf32>
    %476 = arith.addf %469, %475 : vector<1x128xf32>
    %477 = vector.extract_strided_slice %470 {offsets = [1, 0], sizes = [1, 128], strides = [1, 1]} : vector<2x128xf32> to vector<1x128xf32>
    %478 = vector.broadcast %472 : f32 to vector<1x128xf32>
    %479 = arith.mulf %478, %477 : vector<1x128xf32>
    %480 = arith.addf %476, %479 : vector<1x128xf32>
    %c0_128 = arith.constant 0 : index
    %c28_129 = arith.constant 28 : index
    %481 = vector.load %arg10[%c0_128, %c28_129] : memref<2x158xf32, #tpu.memory_space<vmem>>, vector<2x128xf32>
    %c46 = arith.constant 46 : index
    %482 = memref.load %arg6[%c46] : memref<98xf32, #tpu.memory_space<smem>>
    %c95 = arith.constant 95 : index
    %483 = memref.load %arg6[%c95] : memref<98xf32, #tpu.memory_space<smem>>
    %484 = vector.extract_strided_slice %481 {offsets = [0, 0], sizes = [1, 128], strides = [1, 1]} : vector<2x128xf32> to vector<1x128xf32>
    %485 = vector.broadcast %482 : f32 to vector<1x128xf32>
    %486 = arith.mulf %485, %484 : vector<1x128xf32>
    %487 = arith.addf %480, %486 : vector<1x128xf32>
    %488 = vector.extract_strided_slice %481 {offsets = [1, 0], sizes = [1, 128], strides = [1, 1]} : vector<2x128xf32> to vector<1x128xf32>
    %489 = vector.broadcast %483 : f32 to vector<1x128xf32>
    %490 = arith.mulf %489, %488 : vector<1x128xf32>
    %491 = arith.addf %487, %490 : vector<1x128xf32>
    %c4_130 = arith.constant 4 : index
    %c0_131 = arith.constant 0 : index
    %492 = vector.load %arg5[%c4_130, %c0_131] : memref<7x128xf32, #tpu.memory_space<vmem>>, vector<1x128xf32>
    %493 = arith.mulf %491, %492 : vector<1x128xf32>
    %cst_132 = arith.constant 0.000000e+00 : f32
    %494 = vector.broadcast %cst_132 : f32 to vector<1x128xf32>
    %c0_133 = arith.constant 0 : index
    %c5_134 = arith.constant 5 : index
    %495 = vector.load %arg10[%c0_133, %c5_134] : memref<2x158xf32, #tpu.memory_space<vmem>>, vector<2x128xf32>
    %c5_135 = arith.constant 5 : index
    %496 = memref.load %arg6[%c5_135] : memref<98xf32, #tpu.memory_space<smem>>
    %c54 = arith.constant 54 : index
    %497 = memref.load %arg6[%c54] : memref<98xf32, #tpu.memory_space<smem>>
    %498 = vector.extract_strided_slice %495 {offsets = [0, 0], sizes = [1, 128], strides = [1, 1]} : vector<2x128xf32> to vector<1x128xf32>
    %499 = vector.broadcast %496 : f32 to vector<1x128xf32>
    %500 = arith.mulf %499, %498 : vector<1x128xf32>
    %501 = arith.addf %494, %500 : vector<1x128xf32>
    %502 = vector.extract_strided_slice %495 {offsets = [1, 0], sizes = [1, 128], strides = [1, 1]} : vector<2x128xf32> to vector<1x128xf32>
    %503 = vector.broadcast %497 : f32 to vector<1x128xf32>
    %504 = arith.mulf %503, %502 : vector<1x128xf32>
    %505 = arith.addf %501, %504 : vector<1x128xf32>
    %c0_136 = arith.constant 0 : index
    %c9_137 = arith.constant 9 : index
    %506 = vector.load %arg10[%c0_136, %c9_137] : memref<2x158xf32, #tpu.memory_space<vmem>>, vector<2x128xf32>
    %c12_138 = arith.constant 12 : index
    %507 = memref.load %arg6[%c12_138] : memref<98xf32, #tpu.memory_space<smem>>
    %c61 = arith.constant 61 : index
    %508 = memref.load %arg6[%c61] : memref<98xf32, #tpu.memory_space<smem>>
    %509 = vector.extract_strided_slice %506 {offsets = [0, 0], sizes = [1, 128], strides = [1, 1]} : vector<2x128xf32> to vector<1x128xf32>
    %510 = vector.broadcast %507 : f32 to vector<1x128xf32>
    %511 = arith.mulf %510, %509 : vector<1x128xf32>
    %512 = arith.addf %505, %511 : vector<1x128xf32>
    %513 = vector.extract_strided_slice %506 {offsets = [1, 0], sizes = [1, 128], strides = [1, 1]} : vector<2x128xf32> to vector<1x128xf32>
    %514 = vector.broadcast %508 : f32 to vector<1x128xf32>
    %515 = arith.mulf %514, %513 : vector<1x128xf32>
    %516 = arith.addf %512, %515 : vector<1x128xf32>
    %c0_139 = arith.constant 0 : index
    %c13_140 = arith.constant 13 : index
    %517 = vector.load %arg10[%c0_139, %c13_140] : memref<2x158xf32, #tpu.memory_space<vmem>>, vector<2x128xf32>
    %c19_141 = arith.constant 19 : index
    %518 = memref.load %arg6[%c19_141] : memref<98xf32, #tpu.memory_space<smem>>
    %c68 = arith.constant 68 : index
    %519 = memref.load %arg6[%c68] : memref<98xf32, #tpu.memory_space<smem>>
    %520 = vector.extract_strided_slice %517 {offsets = [0, 0], sizes = [1, 128], strides = [1, 1]} : vector<2x128xf32> to vector<1x128xf32>
    %521 = vector.broadcast %518 : f32 to vector<1x128xf32>
    %522 = arith.mulf %521, %520 : vector<1x128xf32>
    %523 = arith.addf %516, %522 : vector<1x128xf32>
    %524 = vector.extract_strided_slice %517 {offsets = [1, 0], sizes = [1, 128], strides = [1, 1]} : vector<2x128xf32> to vector<1x128xf32>
    %525 = vector.broadcast %519 : f32 to vector<1x128xf32>
    %526 = arith.mulf %525, %524 : vector<1x128xf32>
    %527 = arith.addf %523, %526 : vector<1x128xf32>
    %c0_142 = arith.constant 0 : index
    %c17_143 = arith.constant 17 : index
    %528 = vector.load %arg10[%c0_142, %c17_143] : memref<2x158xf32, #tpu.memory_space<vmem>>, vector<2x128xf32>
    %c26_144 = arith.constant 26 : index
    %529 = memref.load %arg6[%c26_144] : memref<98xf32, #tpu.memory_space<smem>>
    %c75 = arith.constant 75 : index
    %530 = memref.load %arg6[%c75] : memref<98xf32, #tpu.memory_space<smem>>
    %531 = vector.extract_strided_slice %528 {offsets = [0, 0], sizes = [1, 128], strides = [1, 1]} : vector<2x128xf32> to vector<1x128xf32>
    %532 = vector.broadcast %529 : f32 to vector<1x128xf32>
    %533 = arith.mulf %532, %531 : vector<1x128xf32>
    %534 = arith.addf %527, %533 : vector<1x128xf32>
    %535 = vector.extract_strided_slice %528 {offsets = [1, 0], sizes = [1, 128], strides = [1, 1]} : vector<2x128xf32> to vector<1x128xf32>
    %536 = vector.broadcast %530 : f32 to vector<1x128xf32>
    %537 = arith.mulf %536, %535 : vector<1x128xf32>
    %538 = arith.addf %534, %537 : vector<1x128xf32>
    %c0_145 = arith.constant 0 : index
    %c21_146 = arith.constant 21 : index
    %539 = vector.load %arg10[%c0_145, %c21_146] : memref<2x158xf32, #tpu.memory_space<vmem>>, vector<2x128xf32>
    %c33 = arith.constant 33 : index
    %540 = memref.load %arg6[%c33] : memref<98xf32, #tpu.memory_space<smem>>
    %c82 = arith.constant 82 : index
    %541 = memref.load %arg6[%c82] : memref<98xf32, #tpu.memory_space<smem>>
    %542 = vector.extract_strided_slice %539 {offsets = [0, 0], sizes = [1, 128], strides = [1, 1]} : vector<2x128xf32> to vector<1x128xf32>
    %543 = vector.broadcast %540 : f32 to vector<1x128xf32>
    %544 = arith.mulf %543, %542 : vector<1x128xf32>
    %545 = arith.addf %538, %544 : vector<1x128xf32>
    %546 = vector.extract_strided_slice %539 {offsets = [1, 0], sizes = [1, 128], strides = [1, 1]} : vector<2x128xf32> to vector<1x128xf32>
    %547 = vector.broadcast %541 : f32 to vector<1x128xf32>
    %548 = arith.mulf %547, %546 : vector<1x128xf32>
    %549 = arith.addf %545, %548 : vector<1x128xf32>
    %c0_147 = arith.constant 0 : index
    %c25_148 = arith.constant 25 : index
    %550 = vector.load %arg10[%c0_147, %c25_148] : memref<2x158xf32, #tpu.memory_space<vmem>>, vector<2x128xf32>
    %c40 = arith.constant 40 : index
    %551 = memref.load %arg6[%c40] : memref<98xf32, #tpu.memory_space<smem>>
    %c89 = arith.constant 89 : index
    %552 = memref.load %arg6[%c89] : memref<98xf32, #tpu.memory_space<smem>>
    %553 = vector.extract_strided_slice %550 {offsets = [0, 0], sizes = [1, 128], strides = [1, 1]} : vector<2x128xf32> to vector<1x128xf32>
    %554 = vector.broadcast %551 : f32 to vector<1x128xf32>
    %555 = arith.mulf %554, %553 : vector<1x128xf32>
    %556 = arith.addf %549, %555 : vector<1x128xf32>
    %557 = vector.extract_strided_slice %550 {offsets = [1, 0], sizes = [1, 128], strides = [1, 1]} : vector<2x128xf32> to vector<1x128xf32>
    %558 = vector.broadcast %552 : f32 to vector<1x128xf32>
    %559 = arith.mulf %558, %557 : vector<1x128xf32>
    %560 = arith.addf %556, %559 : vector<1x128xf32>
    %c0_149 = arith.constant 0 : index
    %c29_150 = arith.constant 29 : index
    %561 = vector.load %arg10[%c0_149, %c29_150] : memref<2x158xf32, #tpu.memory_space<vmem>>, vector<2x128xf32>
    %c47 = arith.constant 47 : index
    %562 = memref.load %arg6[%c47] : memref<98xf32, #tpu.memory_space<smem>>
    %c96 = arith.constant 96 : index
    %563 = memref.load %arg6[%c96] : memref<98xf32, #tpu.memory_space<smem>>
    %564 = vector.extract_strided_slice %561 {offsets = [0, 0], sizes = [1, 128], strides = [1, 1]} : vector<2x128xf32> to vector<1x128xf32>
    %565 = vector.broadcast %562 : f32 to vector<1x128xf32>
    %566 = arith.mulf %565, %564 : vector<1x128xf32>
    %567 = arith.addf %560, %566 : vector<1x128xf32>
    %568 = vector.extract_strided_slice %561 {offsets = [1, 0], sizes = [1, 128], strides = [1, 1]} : vector<2x128xf32> to vector<1x128xf32>
    %569 = vector.broadcast %563 : f32 to vector<1x128xf32>
    %570 = arith.mulf %569, %568 : vector<1x128xf32>
    %571 = arith.addf %567, %570 : vector<1x128xf32>
    %c5_151 = arith.constant 5 : index
    %c0_152 = arith.constant 0 : index
    %572 = vector.load %arg5[%c5_151, %c0_152] : memref<7x128xf32, #tpu.memory_space<vmem>>, vector<1x128xf32>
    %573 = arith.mulf %571, %572 : vector<1x128xf32>
    %cst_153 = arith.constant 0.000000e+00 : f32
    %574 = vector.broadcast %cst_153 : f32 to vector<1x128xf32>
    %c0_154 = arith.constant 0 : index
    %c6_155 = arith.constant 6 : index
    %575 = vector.load %arg10[%c0_154, %c6_155] : memref<2x158xf32, #tpu.memory_space<vmem>>, vector<2x128xf32>
    %c6_156 = arith.constant 6 : index
    %576 = memref.load %arg6[%c6_156] : memref<98xf32, #tpu.memory_space<smem>>
    %c55 = arith.constant 55 : index
    %577 = memref.load %arg6[%c55] : memref<98xf32, #tpu.memory_space<smem>>
    %578 = vector.extract_strided_slice %575 {offsets = [0, 0], sizes = [1, 128], strides = [1, 1]} : vector<2x128xf32> to vector<1x128xf32>
    %579 = vector.broadcast %576 : f32 to vector<1x128xf32>
    %580 = arith.mulf %579, %578 : vector<1x128xf32>
    %581 = arith.addf %574, %580 : vector<1x128xf32>
    %582 = vector.extract_strided_slice %575 {offsets = [1, 0], sizes = [1, 128], strides = [1, 1]} : vector<2x128xf32> to vector<1x128xf32>
    %583 = vector.broadcast %577 : f32 to vector<1x128xf32>
    %584 = arith.mulf %583, %582 : vector<1x128xf32>
    %585 = arith.addf %581, %584 : vector<1x128xf32>
    %c0_157 = arith.constant 0 : index
    %c10_158 = arith.constant 10 : index
    %586 = vector.load %arg10[%c0_157, %c10_158] : memref<2x158xf32, #tpu.memory_space<vmem>>, vector<2x128xf32>
    %c13_159 = arith.constant 13 : index
    %587 = memref.load %arg6[%c13_159] : memref<98xf32, #tpu.memory_space<smem>>
    %c62 = arith.constant 62 : index
    %588 = memref.load %arg6[%c62] : memref<98xf32, #tpu.memory_space<smem>>
    %589 = vector.extract_strided_slice %586 {offsets = [0, 0], sizes = [1, 128], strides = [1, 1]} : vector<2x128xf32> to vector<1x128xf32>
    %590 = vector.broadcast %587 : f32 to vector<1x128xf32>
    %591 = arith.mulf %590, %589 : vector<1x128xf32>
    %592 = arith.addf %585, %591 : vector<1x128xf32>
    %593 = vector.extract_strided_slice %586 {offsets = [1, 0], sizes = [1, 128], strides = [1, 1]} : vector<2x128xf32> to vector<1x128xf32>
    %594 = vector.broadcast %588 : f32 to vector<1x128xf32>
    %595 = arith.mulf %594, %593 : vector<1x128xf32>
    %596 = arith.addf %592, %595 : vector<1x128xf32>
    %c0_160 = arith.constant 0 : index
    %c14_161 = arith.constant 14 : index
    %597 = vector.load %arg10[%c0_160, %c14_161] : memref<2x158xf32, #tpu.memory_space<vmem>>, vector<2x128xf32>
    %c20_162 = arith.constant 20 : index
    %598 = memref.load %arg6[%c20_162] : memref<98xf32, #tpu.memory_space<smem>>
    %c69 = arith.constant 69 : index
    %599 = memref.load %arg6[%c69] : memref<98xf32, #tpu.memory_space<smem>>
    %600 = vector.extract_strided_slice %597 {offsets = [0, 0], sizes = [1, 128], strides = [1, 1]} : vector<2x128xf32> to vector<1x128xf32>
    %601 = vector.broadcast %598 : f32 to vector<1x128xf32>
    %602 = arith.mulf %601, %600 : vector<1x128xf32>
    %603 = arith.addf %596, %602 : vector<1x128xf32>
    %604 = vector.extract_strided_slice %597 {offsets = [1, 0], sizes = [1, 128], strides = [1, 1]} : vector<2x128xf32> to vector<1x128xf32>
    %605 = vector.broadcast %599 : f32 to vector<1x128xf32>
    %606 = arith.mulf %605, %604 : vector<1x128xf32>
    %607 = arith.addf %603, %606 : vector<1x128xf32>
    %c0_163 = arith.constant 0 : index
    %c18_164 = arith.constant 18 : index
    %608 = vector.load %arg10[%c0_163, %c18_164] : memref<2x158xf32, #tpu.memory_space<vmem>>, vector<2x128xf32>
    %c27_165 = arith.constant 27 : index
    %609 = memref.load %arg6[%c27_165] : memref<98xf32, #tpu.memory_space<smem>>
    %c76 = arith.constant 76 : index
    %610 = memref.load %arg6[%c76] : memref<98xf32, #tpu.memory_space<smem>>
    %611 = vector.extract_strided_slice %608 {offsets = [0, 0], sizes = [1, 128], strides = [1, 1]} : vector<2x128xf32> to vector<1x128xf32>
    %612 = vector.broadcast %609 : f32 to vector<1x128xf32>
    %613 = arith.mulf %612, %611 : vector<1x128xf32>
    %614 = arith.addf %607, %613 : vector<1x128xf32>
    %615 = vector.extract_strided_slice %608 {offsets = [1, 0], sizes = [1, 128], strides = [1, 1]} : vector<2x128xf32> to vector<1x128xf32>
    %616 = vector.broadcast %610 : f32 to vector<1x128xf32>
    %617 = arith.mulf %616, %615 : vector<1x128xf32>
    %618 = arith.addf %614, %617 : vector<1x128xf32>
    %c0_166 = arith.constant 0 : index
    %c22_167 = arith.constant 22 : index
    %619 = vector.load %arg10[%c0_166, %c22_167] : memref<2x158xf32, #tpu.memory_space<vmem>>, vector<2x128xf32>
    %c34 = arith.constant 34 : index
    %620 = memref.load %arg6[%c34] : memref<98xf32, #tpu.memory_space<smem>>
    %c83 = arith.constant 83 : index
    %621 = memref.load %arg6[%c83] : memref<98xf32, #tpu.memory_space<smem>>
    %622 = vector.extract_strided_slice %619 {offsets = [0, 0], sizes = [1, 128], strides = [1, 1]} : vector<2x128xf32> to vector<1x128xf32>
    %623 = vector.broadcast %620 : f32 to vector<1x128xf32>
    %624 = arith.mulf %623, %622 : vector<1x128xf32>
    %625 = arith.addf %618, %624 : vector<1x128xf32>
    %626 = vector.extract_strided_slice %619 {offsets = [1, 0], sizes = [1, 128], strides = [1, 1]} : vector<2x128xf32> to vector<1x128xf32>
    %627 = vector.broadcast %621 : f32 to vector<1x128xf32>
    %628 = arith.mulf %627, %626 : vector<1x128xf32>
    %629 = arith.addf %625, %628 : vector<1x128xf32>
    %c0_168 = arith.constant 0 : index
    %c26_169 = arith.constant 26 : index
    %630 = vector.load %arg10[%c0_168, %c26_169] : memref<2x158xf32, #tpu.memory_space<vmem>>, vector<2x128xf32>
    %c41 = arith.constant 41 : index
    %631 = memref.load %arg6[%c41] : memref<98xf32, #tpu.memory_space<smem>>
    %c90 = arith.constant 90 : index
    %632 = memref.load %arg6[%c90] : memref<98xf32, #tpu.memory_space<smem>>
    %633 = vector.extract_strided_slice %630 {offsets = [0, 0], sizes = [1, 128], strides = [1, 1]} : vector<2x128xf32> to vector<1x128xf32>
    %634 = vector.broadcast %631 : f32 to vector<1x128xf32>
    %635 = arith.mulf %634, %633 : vector<1x128xf32>
    %636 = arith.addf %629, %635 : vector<1x128xf32>
    %637 = vector.extract_strided_slice %630 {offsets = [1, 0], sizes = [1, 128], strides = [1, 1]} : vector<2x128xf32> to vector<1x128xf32>
    %638 = vector.broadcast %632 : f32 to vector<1x128xf32>
    %639 = arith.mulf %638, %637 : vector<1x128xf32>
    %640 = arith.addf %636, %639 : vector<1x128xf32>
    %c0_170 = arith.constant 0 : index
    %c30_171 = arith.constant 30 : index
    %641 = vector.load %arg10[%c0_170, %c30_171] : memref<2x158xf32, #tpu.memory_space<vmem>>, vector<2x128xf32>
    %c48 = arith.constant 48 : index
    %642 = memref.load %arg6[%c48] : memref<98xf32, #tpu.memory_space<smem>>
    %c97 = arith.constant 97 : index
    %643 = memref.load %arg6[%c97] : memref<98xf32, #tpu.memory_space<smem>>
    %644 = vector.extract_strided_slice %641 {offsets = [0, 0], sizes = [1, 128], strides = [1, 1]} : vector<2x128xf32> to vector<1x128xf32>
    %645 = vector.broadcast %642 : f32 to vector<1x128xf32>
    %646 = arith.mulf %645, %644 : vector<1x128xf32>
    %647 = arith.addf %640, %646 : vector<1x128xf32>
    %648 = vector.extract_strided_slice %641 {offsets = [1, 0], sizes = [1, 128], strides = [1, 1]} : vector<2x128xf32> to vector<1x128xf32>
    %649 = vector.broadcast %643 : f32 to vector<1x128xf32>
    %650 = arith.mulf %649, %648 : vector<1x128xf32>
    %651 = arith.addf %647, %650 : vector<1x128xf32>
    %c6_172 = arith.constant 6 : index
    %c0_173 = arith.constant 0 : index
    %652 = vector.load %arg5[%c6_172, %c0_173] : memref<7x128xf32, #tpu.memory_space<vmem>>, vector<1x128xf32>
    %653 = arith.mulf %651, %652 : vector<1x128xf32>
    %654 = arith.addf %173, %253 : vector<1x128xf32>
    %655 = arith.addf %333, %413 : vector<1x128xf32>
    %656 = arith.addf %493, %573 : vector<1x128xf32>
    %657 = arith.addf %654, %655 : vector<1x128xf32>
    %658 = arith.addf %656, %653 : vector<1x128xf32>
    %659 = arith.addf %657, %658 : vector<1x128xf32>
    %cst_174 = arith.constant 5.000000e-01 : f32
    %660 = vector.broadcast %cst_174 : f32 to vector<1x128xf32>
    %661 = arith.mulf %660, %659 : vector<1x128xf32>
    %662 = math.tanh %661 : vector<1x128xf32>
    %cst_175 = arith.constant 5.000000e-01 : f32
    %663 = vector.broadcast %cst_175 : f32 to vector<1x128xf32>
    %664 = arith.mulf %663, %662 : vector<1x128xf32>
    %cst_176 = arith.constant 5.000000e-01 : f32
    %665 = vector.broadcast %cst_176 : f32 to vector<1x128xf32>
    %666 = arith.addf %664, %665 : vector<1x128xf32>
    %c0_i32_177 = arith.constant 0 : i32
    %c8_i32_178 = arith.constant 8 : i32
    %667 = arith.muli %c0_i32_177, %c8_i32_178 : i32
    %668 = tpu.assume_multiple %667, 8 : i32
    %c0_179 = arith.constant 0 : index
    %669 = arith.index_cast %668 : i32 to index
    %c0_180 = arith.constant 0 : index
    %670 = vector.load %arg1[%c0_179, %669, %c0_180] : memref<2x16x128xf32, #tpu.memory_space<vmem>>, vector<1x8x128xf32>
    %671 = vector.shape_cast %670 : vector<1x8x128xf32> to vector<8x128xf32>
    %672 = arith.index_cast %668 : i32 to index
    %c0_181 = arith.constant 0 : index
    %673 = vector.load %arg9[%672, %c0_181] : memref<16x1xf32, #tpu.memory_space<vmem>>, vector<8x1xf32>
    %674 = arith.index_cast %668 : i32 to index
    %c0_182 = arith.constant 0 : index
    %675 = vector.load %arg4[%674, %c0_182] : memref<16x2xf32, #tpu.memory_space<vmem>>, vector<8x1xf32>
    %676 = arith.mulf %673, %675 : vector<8x1xf32>
    %677 = arith.index_cast %668 : i32 to index
    %c1_183 = arith.constant 1 : index
    %678 = vector.load %arg4[%677, %c1_183] : memref<16x2xf32, #tpu.memory_space<vmem>>, vector<8x1xf32>
    %679 = vector.broadcast %666 : vector<1x128xf32> to vector<8x128xf32>
    %680 = arith.mulf %671, %679 : vector<8x128xf32>
    %681 = vector.broadcast %676 : vector<8x1xf32> to vector<8x128xf32>
    %682 = arith.mulf %680, %681 : vector<8x128xf32>
    %683 = vector.broadcast %678 : vector<8x1xf32> to vector<8x128xf32>
    %684 = arith.addf %682, %683 : vector<8x128xf32>
    %cst_184 = arith.constant 0.000000e+00 : f32
    %685 = vector.broadcast %cst_184 : f32 to vector<8x128xf32>
    %686 = arith.maximumf %684, %685 : vector<8x128xf32>
    %c0_185 = arith.constant 0 : index
    %687 = arith.index_cast %668 : i32 to index
    %c0_186 = arith.constant 0 : index
    %688 = vector.load %arg7[%c0_185, %687, %c0_186] : memref<2x16x128xf32, #tpu.memory_space<vmem>>, vector<1x8x128xf32>
    %689 = vector.shape_cast %688 : vector<1x8x128xf32> to vector<8x128xf32>
    %690 = vector.shape_cast %686 : vector<8x128xf32> to vector<1x8x128xf32>
    tpu.vector_store %arg7[%c0_185, %687, %c0_186], %690 {strides = array<i32>} : memref<2x16x128xf32, #tpu.memory_space<vmem>>, vector<1x8x128xf32>,
    %c1_i32_187 = arith.constant 1 : i32
    %c8_i32_188 = arith.constant 8 : i32
    %691 = arith.muli %c1_i32_187, %c8_i32_188 : i32
    %692 = tpu.assume_multiple %691, 8 : i32
    %c0_189 = arith.constant 0 : index
    %693 = arith.index_cast %692 : i32 to index
    %c0_190 = arith.constant 0 : index
    %694 = vector.load %arg1[%c0_189, %693, %c0_190] : memref<2x16x128xf32, #tpu.memory_space<vmem>>, vector<1x8x128xf32>
    %695 = vector.shape_cast %694 : vector<1x8x128xf32> to vector<8x128xf32>
    %696 = arith.index_cast %692 : i32 to index
    %c0_191 = arith.constant 0 : index
    %697 = vector.load %arg9[%696, %c0_191] : memref<16x1xf32, #tpu.memory_space<vmem>>, vector<8x1xf32>
    %698 = arith.index_cast %692 : i32 to index
    %c0_192 = arith.constant 0 : index
    %699 = vector.load %arg4[%698, %c0_192] : memref<16x2xf32, #tpu.memory_space<vmem>>, vector<8x1xf32>
    %700 = arith.mulf %697, %699 : vector<8x1xf32>
    %701 = arith.index_cast %692 : i32 to index
    %c1_193 = arith.constant 1 : index
    %702 = vector.load %arg4[%701, %c1_193] : memref<16x2xf32, #tpu.memory_space<vmem>>, vector<8x1xf32>
    %703 = vector.broadcast %666 : vector<1x128xf32> to vector<8x128xf32>
    %704 = arith.mulf %695, %703 : vector<8x128xf32>
    %705 = vector.broadcast %700 : vector<8x1xf32> to vector<8x128xf32>
    %706 = arith.mulf %704, %705 : vector<8x128xf32>
    %707 = vector.broadcast %702 : vector<8x1xf32> to vector<8x128xf32>
    %708 = arith.addf %706, %707 : vector<8x128xf32>
    %cst_194 = arith.constant 0.000000e+00 : f32
    %709 = vector.broadcast %cst_194 : f32 to vector<8x128xf32>
    %710 = arith.maximumf %708, %709 : vector<8x128xf32>
    %c0_195 = arith.constant 0 : index
    %711 = arith.index_cast %692 : i32 to index
    %c0_196 = arith.constant 0 : index
    %712 = vector.load %arg7[%c0_195, %711, %c0_196] : memref<2x16x128xf32, #tpu.memory_space<vmem>>, vector<1x8x128xf32>
    %713 = vector.shape_cast %712 : vector<1x8x128xf32> to vector<8x128xf32>
    %714 = vector.shape_cast %710 : vector<8x128xf32> to vector<1x8x128xf32>
    tpu.vector_store %arg7[%c0_195, %711, %c0_196], %714 {strides = array<i32>} : memref<2x16x128xf32, #tpu.memory_space<vmem>>, vector<1x8x128xf32>,
    %c2_i32_197 = arith.constant 2 : i32
    %c0_i32_198 = arith.constant 0 : i32
    %c8_i32_199 = arith.constant 8 : i32
    %715 = arith.muli %c0_i32_198, %c8_i32_199 : i32
    %716 = tpu.assume_multiple %715, 8 : i32
    %c1_200 = arith.constant 1 : index
    %717 = arith.index_cast %716 : i32 to index
    %c0_201 = arith.constant 0 : index
    %718 = vector.load %arg1[%c1_200, %717, %c0_201] : memref<2x16x128xf32, #tpu.memory_space<vmem>>, vector<1x8x128xf32>
    %719 = vector.shape_cast %718 : vector<1x8x128xf32> to vector<8x128xf32>
    %cst_202 = arith.constant dense<0.000000e+00> : vector<8xf32>
    %720 = vector.multi_reduction <add>, %719, %cst_202 [1] : vector<8x128xf32> to vector<8xf32>
    %721 = vector.shape_cast %720 : vector<8xf32> to vector<8x1xf32>
    %cst_203 = arith.constant 1.562500e-02 : f32
    %722 = vector.broadcast %cst_203 : f32 to vector<8x1xf32>
    %723 = arith.mulf %721, %722 : vector<8x1xf32>
    %724 = arith.index_cast %716 : i32 to index
    %c0_204 = arith.constant 0 : index
    %725 = vector.load %arg8[%724, %c0_204] : memref<16x2xf32, #tpu.memory_space<vmem>>, vector<8x1xf32>
    tpu.vector_store %arg8[%724, %c0_204], %723 {strides = array<i32>} : memref<16x2xf32, #tpu.memory_space<vmem>>, vector<8x1xf32>,
    %726 = vector.broadcast %5 : vector<1x128xf32> to vector<8x128xf32>
    %727 = arith.addf %719, %726 : vector<8x128xf32>
    %cst_205 = arith.constant dense<0xFF800000> : vector<8xf32>
    %728 = vector.multi_reduction <maximumf>, %727, %cst_205 [1] : vector<8x128xf32> to vector<8xf32>
    %729 = vector.shape_cast %728 : vector<8xf32> to vector<8x1xf32>
    %730 = arith.index_cast %716 : i32 to index
    %c1_206 = arith.constant 1 : index
    %731 = vector.load %arg8[%730, %c1_206] : memref<16x2xf32, #tpu.memory_space<vmem>>, vector<8x1xf32>
    tpu.vector_store %arg8[%730, %c1_206], %729 {strides = array<i32>} : memref<16x2xf32, #tpu.memory_space<vmem>>, vector<8x1xf32>,
    %c1_i32_207 = arith.constant 1 : i32
    %c8_i32_208 = arith.constant 8 : i32
    %732 = arith.muli %c1_i32_207, %c8_i32_208 : i32
    %733 = tpu.assume_multiple %732, 8 : i32
    %c1_209 = arith.constant 1 : index
    %734 = arith.index_cast %733 : i32 to index
    %c0_210 = arith.constant 0 : index
    %735 = vector.load %arg1[%c1_209, %734, %c0_210] : memref<2x16x128xf32, #tpu.memory_space<vmem>>, vector<1x8x128xf32>
    %736 = vector.shape_cast %735 : vector<1x8x128xf32> to vector<8x128xf32>
    %cst_211 = arith.constant dense<0.000000e+00> : vector<8xf32>
    %737 = vector.multi_reduction <add>, %736, %cst_211 [1] : vector<8x128xf32> to vector<8xf32>
    %738 = vector.shape_cast %737 : vector<8xf32> to vector<8x1xf32>
    %cst_212 = arith.constant 1.562500e-02 : f32
    %739 = vector.broadcast %cst_212 : f32 to vector<8x1xf32>
    %740 = arith.mulf %738, %739 : vector<8x1xf32>
    %741 = arith.index_cast %733 : i32 to index
    %c0_213 = arith.constant 0 : index
    %742 = vector.load %arg8[%741, %c0_213] : memref<16x2xf32, #tpu.memory_space<vmem>>, vector<8x1xf32>
    tpu.vector_store %arg8[%741, %c0_213], %740 {strides = array<i32>} : memref<16x2xf32, #tpu.memory_space<vmem>>, vector<8x1xf32>,
    %743 = vector.broadcast %5 : vector<1x128xf32> to vector<8x128xf32>
    %744 = arith.addf %736, %743 : vector<8x128xf32>
    %cst_214 = arith.constant dense<0xFF800000> : vector<8xf32>
    %745 = vector.multi_reduction <maximumf>, %744, %cst_214 [1] : vector<8x128xf32> to vector<8xf32>
    %746 = vector.shape_cast %745 : vector<8xf32> to vector<8x1xf32>
    %747 = arith.index_cast %733 : i32 to index
    %c1_215 = arith.constant 1 : index
    %748 = vector.load %arg8[%747, %c1_215] : memref<16x2xf32, #tpu.memory_space<vmem>>, vector<8x1xf32>
    tpu.vector_store %arg8[%747, %c1_215], %746 {strides = array<i32>} : memref<16x2xf32, #tpu.memory_space<vmem>>, vector<8x1xf32>,
    %c2_i32_216 = arith.constant 2 : i32
    %c0_217 = arith.constant 0 : index
    %c0_218 = arith.constant 0 : index
    %749 = vector.load %arg8[%c0_217, %c0_218] : memref<16x2xf32, #tpu.memory_space<vmem>>, vector<16x2xf32>
    %c0_219 = arith.constant 0 : index
    %c0_220 = arith.constant 0 : index
    %750 = vector.load %arg2[%c0_219, %c0_220] : memref<2x16xf32, #tpu.memory_space<vmem>>, vector<2x16xf32>
    %cst_221 = arith.constant dense<0.000000e+00> : vector<2x2xf32>
    %751 = tpu.matmul %750, %749, %cst_221 {dimension_numbers = #tpu.dot_dimension_numbers<[1], [0], [0], [1], [0, 0, 1, 1], [], []>} : vector<2x16xf32>, vector<16x2xf32>, vector<2x2xf32> -> vector<2x2xf32>
    %cst_222 = arith.constant 0.000000e+00 : f32
    %752 = vector.broadcast %cst_222 : f32 to vector<2x2xf32>
    %753 = arith.maximumf %751, %752 : vector<2x2xf32>
    %c0_223 = arith.constant 0 : index
    %c0_224 = arith.constant 0 : index
    %754 = vector.load %arg3[%c0_223, %c0_224] : memref<16x2xf32, #tpu.memory_space<vmem>>, vector<16x2xf32>
    %cst_225 = arith.constant dense<0.000000e+00> : vector<16x2xf32>
    %755 = tpu.matmul %754, %753, %cst_225 {dimension_numbers = #tpu.dot_dimension_numbers<[1], [0], [0], [1], [0, 0, 1, 1], [], []>} : vector<16x2xf32>, vector<2x2xf32>, vector<16x2xf32> -> vector<16x2xf32>
    %756 = vector.extract_strided_slice %755 {offsets = [0, 0], sizes = [16, 1], strides = [1, 1]} : vector<16x2xf32> to vector<16x1xf32>
    %757 = vector.extract_strided_slice %755 {offsets = [0, 1], sizes = [16, 1], strides = [1, 1]} : vector<16x2xf32> to vector<16x1xf32>
    %758 = arith.addf %756, %757 : vector<16x1xf32>
    %cst_226 = arith.constant 5.000000e-01 : f32
    %759 = vector.broadcast %cst_226 : f32 to vector<16x1xf32>
    %760 = arith.mulf %759, %758 : vector<16x1xf32>
    %761 = math.tanh %760 : vector<16x1xf32>
    %cst_227 = arith.constant 5.000000e-01 : f32
    %762 = vector.broadcast %cst_227 : f32 to vector<16x1xf32>
    %763 = arith.mulf %762, %761 : vector<16x1xf32>
    %cst_228 = arith.constant 5.000000e-01 : f32
    %764 = vector.broadcast %cst_228 : f32 to vector<16x1xf32>
    %765 = arith.addf %763, %764 : vector<16x1xf32>
    %c0_229 = arith.constant 0 : index
    %c0_230 = arith.constant 0 : index
    %766 = vector.load %arg9[%c0_229, %c0_230] : memref<16x1xf32, #tpu.memory_space<vmem>>, vector<16x1xf32>
    tpu.vector_store %arg9[%c0_229, %c0_230], %765 {strides = array<i32>} : memref<16x1xf32, #tpu.memory_space<vmem>>, vector<16x1xf32>,
    %cst_231 = arith.constant 0.000000e+00 : f32
    %767 = vector.broadcast %cst_231 : f32 to vector<8x128xf32>
    %cst_232 = arith.constant -3.000000e+38 : f32
    %768 = vector.broadcast %cst_232 : f32 to vector<8x128xf32>
    %c0_i32_233 = arith.constant 0 : i32
    %c8_i32_234 = arith.constant 8 : i32
    %769 = arith.muli %c0_i32_233, %c8_i32_234 : i32
    %770 = tpu.assume_multiple %769, 8 : i32
    %c1_235 = arith.constant 1 : index
    %771 = arith.index_cast %770 : i32 to index
    %c0_236 = arith.constant 0 : index
    %772 = vector.load %arg1[%c1_235, %771, %c0_236] : memref<2x16x128xf32, #tpu.memory_space<vmem>>, vector<1x8x128xf32>
    %773 = vector.shape_cast %772 : vector<1x8x128xf32> to vector<8x128xf32>
    %774 = arith.index_cast %770 : i32 to index
    %c0_237 = arith.constant 0 : index
    %775 = vector.load %arg9[%774, %c0_237] : memref<16x1xf32, #tpu.memory_space<vmem>>, vector<8x1xf32>
    %776 = vector.broadcast %775 : vector<8x1xf32> to vector<8x128xf32>
    %777 = arith.mulf %773, %776 : vector<8x128xf32>
    %778 = arith.addf %767, %777 : vector<8x128xf32>
    %779 = arith.maximumf %768, %777 : vector<8x128xf32>
    %c1_i32_238 = arith.constant 1 : i32
    %c8_i32_239 = arith.constant 8 : i32
    %780 = arith.muli %c1_i32_238, %c8_i32_239 : i32
    %781 = tpu.assume_multiple %780, 8 : i32
    %c1_240 = arith.constant 1 : index
    %782 = arith.index_cast %781 : i32 to index
    %c0_241 = arith.constant 0 : index
    %783 = vector.load %arg1[%c1_240, %782, %c0_241] : memref<2x16x128xf32, #tpu.memory_space<vmem>>, vector<1x8x128xf32>
    %784 = vector.shape_cast %783 : vector<1x8x128xf32> to vector<8x128xf32>
    %785 = arith.index_cast %781 : i32 to index
    %c0_242 = arith.constant 0 : index
    %786 = vector.load %arg9[%785, %c0_242] : memref<16x1xf32, #tpu.memory_space<vmem>>, vector<8x1xf32>
    %787 = vector.broadcast %786 : vector<8x1xf32> to vector<8x128xf32>
    %788 = arith.mulf %784, %787 : vector<8x128xf32>
    %789 = arith.addf %778, %788 : vector<8x128xf32>
    %790 = arith.maximumf %779, %788 : vector<8x128xf32>
    %c2_i32_243 = arith.constant 2 : i32
    %cst_244 = arith.constant dense<0.000000e+00> : vector<128xf32>
    %791 = vector.multi_reduction <add>, %789, %cst_244 [0] : vector<8x128xf32> to vector<128xf32>
    %792 = vector.shape_cast %791 : vector<128xf32> to vector<1x128xf32>
    %cst_245 = arith.constant dense<0xFF800000> : vector<128xf32>
    %793 = vector.multi_reduction <maximumf>, %790, %cst_245 [0] : vector<8x128xf32> to vector<128xf32>
    %794 = vector.shape_cast %793 : vector<128xf32> to vector<1x128xf32>
    %cst_246 = arith.constant 6.250000e-02 : f32
    %795 = vector.broadcast %cst_246 : f32 to vector<1x128xf32>
    %796 = arith.mulf %792, %795 : vector<1x128xf32>
    %c0_247 = arith.constant 0 : index
    %c15_248 = arith.constant 15 : index
    %797 = vector.load %arg10[%c0_247, %c15_248] : memref<2x158xf32, #tpu.memory_space<vmem>>, vector<1x128xf32>
    tpu.vector_store %arg10[%c0_247, %c15_248], %796 {strides = array<i32>} : memref<2x158xf32, #tpu.memory_space<vmem>>, vector<1x128xf32>,
    %c1_249 = arith.constant 1 : index
    %c15_250 = arith.constant 15 : index
    %798 = vector.load %arg10[%c1_249, %c15_250] : memref<2x158xf32, #tpu.memory_space<vmem>>, vector<1x128xf32>
    tpu.vector_store %arg10[%c1_249, %c15_250], %794 {strides = array<i32>} : memref<2x158xf32, #tpu.memory_space<vmem>>, vector<1x128xf32>,
    %cst_251 = arith.constant 0.000000e+00 : f32
    %799 = vector.broadcast %cst_251 : f32 to vector<1x128xf32>
    %c0_252 = arith.constant 0 : index
    %c0_253 = arith.constant 0 : index
    %800 = vector.load %arg10[%c0_252, %c0_253] : memref<2x158xf32, #tpu.memory_space<vmem>>, vector<2x128xf32>
    %c0_254 = arith.constant 0 : index
    %801 = memref.load %arg6[%c0_254] : memref<98xf32, #tpu.memory_space<smem>>
    %c49_255 = arith.constant 49 : index
    %802 = memref.load %arg6[%c49_255] : memref<98xf32, #tpu.memory_space<smem>>
    %803 = vector.extract_strided_slice %800 {offsets = [0, 0], sizes = [1, 128], strides = [1, 1]} : vector<2x128xf32> to vector<1x128xf32>
    %804 = vector.broadcast %801 : f32 to vector<1x128xf32>
    %805 = arith.mulf %804, %803 : vector<1x128xf32>
    %806 = arith.addf %799, %805 : vector<1x128xf32>
    %807 = vector.extract_strided_slice %800 {offsets = [1, 0], sizes = [1, 128], strides = [1, 1]} : vector<2x128xf32> to vector<1x128xf32>
    %808 = vector.broadcast %802 : f32 to vector<1x128xf32>
    %809 = arith.mulf %808, %807 : vector<1x128xf32>
    %810 = arith.addf %806, %809 : vector<1x128xf32>
    %c0_256 = arith.constant 0 : index
    %c4_257 = arith.constant 4 : index
    %811 = vector.load %arg10[%c0_256, %c4_257] : memref<2x158xf32, #tpu.memory_space<vmem>>, vector<2x128xf32>
    %c7_258 = arith.constant 7 : index
    %812 = memref.load %arg6[%c7_258] : memref<98xf32, #tpu.memory_space<smem>>
    %c56_259 = arith.constant 56 : index
    %813 = memref.load %arg6[%c56_259] : memref<98xf32, #tpu.memory_space<smem>>
    %814 = vector.extract_strided_slice %811 {offsets = [0, 0], sizes = [1, 128], strides = [1, 1]} : vector<2x128xf32> to vector<1x128xf32>
    %815 = vector.broadcast %812 : f32 to vector<1x128xf32>
    %816 = arith.mulf %815, %814 : vector<1x128xf32>
    %817 = arith.addf %810, %816 : vector<1x128xf32>
    %818 = vector.extract_strided_slice %811 {offsets = [1, 0], sizes = [1, 128], strides = [1, 1]} : vector<2x128xf32> to vector<1x128xf32>
    %819 = vector.broadcast %813 : f32 to vector<1x128xf32>
    %820 = arith.mulf %819, %818 : vector<1x128xf32>
    %821 = arith.addf %817, %820 : vector<1x128xf32>
    %c0_260 = arith.constant 0 : index
    %c8_261 = arith.constant 8 : index
    %822 = vector.load %arg10[%c0_260, %c8_261] : memref<2x158xf32, #tpu.memory_space<vmem>>, vector<2x128xf32>
    %c14_262 = arith.constant 14 : index
    %823 = memref.load %arg6[%c14_262] : memref<98xf32, #tpu.memory_space<smem>>
    %c63_263 = arith.constant 63 : index
    %824 = memref.load %arg6[%c63_263] : memref<98xf32, #tpu.memory_space<smem>>
    %825 = vector.extract_strided_slice %822 {offsets = [0, 0], sizes = [1, 128], strides = [1, 1]} : vector<2x128xf32> to vector<1x128xf32>
    %826 = vector.broadcast %823 : f32 to vector<1x128xf32>
    %827 = arith.mulf %826, %825 : vector<1x128xf32>
    %828 = arith.addf %821, %827 : vector<1x128xf32>
    %829 = vector.extract_strided_slice %822 {offsets = [1, 0], sizes = [1, 128], strides = [1, 1]} : vector<2x128xf32> to vector<1x128xf32>
    %830 = vector.broadcast %824 : f32 to vector<1x128xf32>
    %831 = arith.mulf %830, %829 : vector<1x128xf32>
    %832 = arith.addf %828, %831 : vector<1x128xf32>
    %c0_264 = arith.constant 0 : index
    %c12_265 = arith.constant 12 : index
    %833 = vector.load %arg10[%c0_264, %c12_265] : memref<2x158xf32, #tpu.memory_space<vmem>>, vector<2x128xf32>
    %c21_266 = arith.constant 21 : index
    %834 = memref.load %arg6[%c21_266] : memref<98xf32, #tpu.memory_space<smem>>
    %c70_267 = arith.constant 70 : index
    %835 = memref.load %arg6[%c70_267] : memref<98xf32, #tpu.memory_space<smem>>
    %836 = vector.extract_strided_slice %833 {offsets = [0, 0], sizes = [1, 128], strides = [1, 1]} : vector<2x128xf32> to vector<1x128xf32>
    %837 = vector.broadcast %834 : f32 to vector<1x128xf32>
    %838 = arith.mulf %837, %836 : vector<1x128xf32>
    %839 = arith.addf %832, %838 : vector<1x128xf32>
    %840 = vector.extract_strided_slice %833 {offsets = [1, 0], sizes = [1, 128], strides = [1, 1]} : vector<2x128xf32> to vector<1x128xf32>
    %841 = vector.broadcast %835 : f32 to vector<1x128xf32>
    %842 = arith.mulf %841, %840 : vector<1x128xf32>
    %843 = arith.addf %839, %842 : vector<1x128xf32>
    %c0_268 = arith.constant 0 : index
    %c16_269 = arith.constant 16 : index
    %844 = vector.load %arg10[%c0_268, %c16_269] : memref<2x158xf32, #tpu.memory_space<vmem>>, vector<2x128xf32>
    %c28_270 = arith.constant 28 : index
    %845 = memref.load %arg6[%c28_270] : memref<98xf32, #tpu.memory_space<smem>>
    %c77_271 = arith.constant 77 : index
    %846 = memref.load %arg6[%c77_271] : memref<98xf32, #tpu.memory_space<smem>>
    %847 = vector.extract_strided_slice %844 {offsets = [0, 0], sizes = [1, 128], strides = [1, 1]} : vector<2x128xf32> to vector<1x128xf32>
    %848 = vector.broadcast %845 : f32 to vector<1x128xf32>
    %849 = arith.mulf %848, %847 : vector<1x128xf32>
    %850 = arith.addf %843, %849 : vector<1x128xf32>
    %851 = vector.extract_strided_slice %844 {offsets = [1, 0], sizes = [1, 128], strides = [1, 1]} : vector<2x128xf32> to vector<1x128xf32>
    %852 = vector.broadcast %846 : f32 to vector<1x128xf32>
    %853 = arith.mulf %852, %851 : vector<1x128xf32>
    %854 = arith.addf %850, %853 : vector<1x128xf32>
    %c0_272 = arith.constant 0 : index
    %c20_273 = arith.constant 20 : index
    %855 = vector.load %arg10[%c0_272, %c20_273] : memref<2x158xf32, #tpu.memory_space<vmem>>, vector<2x128xf32>
    %c35_274 = arith.constant 35 : index
    %856 = memref.load %arg6[%c35_274] : memref<98xf32, #tpu.memory_space<smem>>
    %c84_275 = arith.constant 84 : index
    %857 = memref.load %arg6[%c84_275] : memref<98xf32, #tpu.memory_space<smem>>
    %858 = vector.extract_strided_slice %855 {offsets = [0, 0], sizes = [1, 128], strides = [1, 1]} : vector<2x128xf32> to vector<1x128xf32>
    %859 = vector.broadcast %856 : f32 to vector<1x128xf32>
    %860 = arith.mulf %859, %858 : vector<1x128xf32>
    %861 = arith.addf %854, %860 : vector<1x128xf32>
    %862 = vector.extract_strided_slice %855 {offsets = [1, 0], sizes = [1, 128], strides = [1, 1]} : vector<2x128xf32> to vector<1x128xf32>
    %863 = vector.broadcast %857 : f32 to vector<1x128xf32>
    %864 = arith.mulf %863, %862 : vector<1x128xf32>
    %865 = arith.addf %861, %864 : vector<1x128xf32>
    %c0_276 = arith.constant 0 : index
    %c24_277 = arith.constant 24 : index
    %866 = vector.load %arg10[%c0_276, %c24_277] : memref<2x158xf32, #tpu.memory_space<vmem>>, vector<2x128xf32>
    %c42_278 = arith.constant 42 : index
    %867 = memref.load %arg6[%c42_278] : memref<98xf32, #tpu.memory_space<smem>>
    %c91_279 = arith.constant 91 : index
    %868 = memref.load %arg6[%c91_279] : memref<98xf32, #tpu.memory_space<smem>>
    %869 = vector.extract_strided_slice %866 {offsets = [0, 0], sizes = [1, 128], strides = [1, 1]} : vector<2x128xf32> to vector<1x128xf32>
    %870 = vector.broadcast %867 : f32 to vector<1x128xf32>
    %871 = arith.mulf %870, %869 : vector<1x128xf32>
    %872 = arith.addf %865, %871 : vector<1x128xf32>
    %873 = vector.extract_strided_slice %866 {offsets = [1, 0], sizes = [1, 128], strides = [1, 1]} : vector<2x128xf32> to vector<1x128xf32>
    %874 = vector.broadcast %868 : f32 to vector<1x128xf32>
    %875 = arith.mulf %874, %873 : vector<1x128xf32>
    %876 = arith.addf %872, %875 : vector<1x128xf32>
    %c0_280 = arith.constant 0 : index
    %c0_281 = arith.constant 0 : index
    %877 = vector.load %arg5[%c0_280, %c0_281] : memref<7x128xf32, #tpu.memory_space<vmem>>, vector<1x128xf32>
    %878 = arith.mulf %876, %877 : vector<1x128xf32>
    %cst_282 = arith.constant 0.000000e+00 : f32
    %879 = vector.broadcast %cst_282 : f32 to vector<1x128xf32>
    %c0_283 = arith.constant 0 : index
    %c1_284 = arith.constant 1 : index
    %880 = vector.load %arg10[%c0_283, %c1_284] : memref<2x158xf32, #tpu.memory_space<vmem>>, vector<2x128xf32>
    %c1_285 = arith.constant 1 : index
    %881 = memref.load %arg6[%c1_285] : memref<98xf32, #tpu.memory_space<smem>>
    %c50_286 = arith.constant 50 : index
    %882 = memref.load %arg6[%c50_286] : memref<98xf32, #tpu.memory_space<smem>>
    %883 = vector.extract_strided_slice %880 {offsets = [0, 0], sizes = [1, 128], strides = [1, 1]} : vector<2x128xf32> to vector<1x128xf32>
    %884 = vector.broadcast %881 : f32 to vector<1x128xf32>
    %885 = arith.mulf %884, %883 : vector<1x128xf32>
    %886 = arith.addf %879, %885 : vector<1x128xf32>
    %887 = vector.extract_strided_slice %880 {offsets = [1, 0], sizes = [1, 128], strides = [1, 1]} : vector<2x128xf32> to vector<1x128xf32>
    %888 = vector.broadcast %882 : f32 to vector<1x128xf32>
    %889 = arith.mulf %888, %887 : vector<1x128xf32>
    %890 = arith.addf %886, %889 : vector<1x128xf32>
    %c0_287 = arith.constant 0 : index
    %c5_288 = arith.constant 5 : index
    %891 = vector.load %arg10[%c0_287, %c5_288] : memref<2x158xf32, #tpu.memory_space<vmem>>, vector<2x128xf32>
    %c8_289 = arith.constant 8 : index
    %892 = memref.load %arg6[%c8_289] : memref<98xf32, #tpu.memory_space<smem>>
    %c57_290 = arith.constant 57 : index
    %893 = memref.load %arg6[%c57_290] : memref<98xf32, #tpu.memory_space<smem>>
    %894 = vector.extract_strided_slice %891 {offsets = [0, 0], sizes = [1, 128], strides = [1, 1]} : vector<2x128xf32> to vector<1x128xf32>
    %895 = vector.broadcast %892 : f32 to vector<1x128xf32>
    %896 = arith.mulf %895, %894 : vector<1x128xf32>
    %897 = arith.addf %890, %896 : vector<1x128xf32>
    %898 = vector.extract_strided_slice %891 {offsets = [1, 0], sizes = [1, 128], strides = [1, 1]} : vector<2x128xf32> to vector<1x128xf32>
    %899 = vector.broadcast %893 : f32 to vector<1x128xf32>
    %900 = arith.mulf %899, %898 : vector<1x128xf32>
    %901 = arith.addf %897, %900 : vector<1x128xf32>
    %c0_291 = arith.constant 0 : index
    %c9_292 = arith.constant 9 : index
    %902 = vector.load %arg10[%c0_291, %c9_292] : memref<2x158xf32, #tpu.memory_space<vmem>>, vector<2x128xf32>
    %c15_293 = arith.constant 15 : index
    %903 = memref.load %arg6[%c15_293] : memref<98xf32, #tpu.memory_space<smem>>
    %c64_294 = arith.constant 64 : index
    %904 = memref.load %arg6[%c64_294] : memref<98xf32, #tpu.memory_space<smem>>
    %905 = vector.extract_strided_slice %902 {offsets = [0, 0], sizes = [1, 128], strides = [1, 1]} : vector<2x128xf32> to vector<1x128xf32>
    %906 = vector.broadcast %903 : f32 to vector<1x128xf32>
    %907 = arith.mulf %906, %905 : vector<1x128xf32>
    %908 = arith.addf %901, %907 : vector<1x128xf32>
    %909 = vector.extract_strided_slice %902 {offsets = [1, 0], sizes = [1, 128], strides = [1, 1]} : vector<2x128xf32> to vector<1x128xf32>
    %910 = vector.broadcast %904 : f32 to vector<1x128xf32>
    %911 = arith.mulf %910, %909 : vector<1x128xf32>
    %912 = arith.addf %908, %911 : vector<1x128xf32>
    %c0_295 = arith.constant 0 : index
    %c13_296 = arith.constant 13 : index
    %913 = vector.load %arg10[%c0_295, %c13_296] : memref<2x158xf32, #tpu.memory_space<vmem>>, vector<2x128xf32>
    %c22_297 = arith.constant 22 : index
    %914 = memref.load %arg6[%c22_297] : memref<98xf32, #tpu.memory_space<smem>>
    %c71_298 = arith.constant 71 : index
    %915 = memref.load %arg6[%c71_298] : memref<98xf32, #tpu.memory_space<smem>>
    %916 = vector.extract_strided_slice %913 {offsets = [0, 0], sizes = [1, 128], strides = [1, 1]} : vector<2x128xf32> to vector<1x128xf32>
    %917 = vector.broadcast %914 : f32 to vector<1x128xf32>
    %918 = arith.mulf %917, %916 : vector<1x128xf32>
    %919 = arith.addf %912, %918 : vector<1x128xf32>
    %920 = vector.extract_strided_slice %913 {offsets = [1, 0], sizes = [1, 128], strides = [1, 1]} : vector<2x128xf32> to vector<1x128xf32>
    %921 = vector.broadcast %915 : f32 to vector<1x128xf32>
    %922 = arith.mulf %921, %920 : vector<1x128xf32>
    %923 = arith.addf %919, %922 : vector<1x128xf32>
    %c0_299 = arith.constant 0 : index
    %c17_300 = arith.constant 17 : index
    %924 = vector.load %arg10[%c0_299, %c17_300] : memref<2x158xf32, #tpu.memory_space<vmem>>, vector<2x128xf32>
    %c29_301 = arith.constant 29 : index
    %925 = memref.load %arg6[%c29_301] : memref<98xf32, #tpu.memory_space<smem>>
    %c78_302 = arith.constant 78 : index
    %926 = memref.load %arg6[%c78_302] : memref<98xf32, #tpu.memory_space<smem>>
    %927 = vector.extract_strided_slice %924 {offsets = [0, 0], sizes = [1, 128], strides = [1, 1]} : vector<2x128xf32> to vector<1x128xf32>
    %928 = vector.broadcast %925 : f32 to vector<1x128xf32>
    %929 = arith.mulf %928, %927 : vector<1x128xf32>
    %930 = arith.addf %923, %929 : vector<1x128xf32>
    %931 = vector.extract_strided_slice %924 {offsets = [1, 0], sizes = [1, 128], strides = [1, 1]} : vector<2x128xf32> to vector<1x128xf32>
    %932 = vector.broadcast %926 : f32 to vector<1x128xf32>
    %933 = arith.mulf %932, %931 : vector<1x128xf32>
    %934 = arith.addf %930, %933 : vector<1x128xf32>
    %c0_303 = arith.constant 0 : index
    %c21_304 = arith.constant 21 : index
    %935 = vector.load %arg10[%c0_303, %c21_304] : memref<2x158xf32, #tpu.memory_space<vmem>>, vector<2x128xf32>
    %c36_305 = arith.constant 36 : index
    %936 = memref.load %arg6[%c36_305] : memref<98xf32, #tpu.memory_space<smem>>
    %c85_306 = arith.constant 85 : index
    %937 = memref.load %arg6[%c85_306] : memref<98xf32, #tpu.memory_space<smem>>
    %938 = vector.extract_strided_slice %935 {offsets = [0, 0], sizes = [1, 128], strides = [1, 1]} : vector<2x128xf32> to vector<1x128xf32>
    %939 = vector.broadcast %936 : f32 to vector<1x128xf32>
    %940 = arith.mulf %939, %938 : vector<1x128xf32>
    %941 = arith.addf %934, %940 : vector<1x128xf32>
    %942 = vector.extract_strided_slice %935 {offsets = [1, 0], sizes = [1, 128], strides = [1, 1]} : vector<2x128xf32> to vector<1x128xf32>
    %943 = vector.broadcast %937 : f32 to vector<1x128xf32>
    %944 = arith.mulf %943, %942 : vector<1x128xf32>
    %945 = arith.addf %941, %944 : vector<1x128xf32>
    %c0_307 = arith.constant 0 : index
    %c25_308 = arith.constant 25 : index
    %946 = vector.load %arg10[%c0_307, %c25_308] : memref<2x158xf32, #tpu.memory_space<vmem>>, vector<2x128xf32>
    %c43_309 = arith.constant 43 : index
    %947 = memref.load %arg6[%c43_309] : memref<98xf32, #tpu.memory_space<smem>>
    %c92_310 = arith.constant 92 : index
    %948 = memref.load %arg6[%c92_310] : memref<98xf32, #tpu.memory_space<smem>>
    %949 = vector.extract_strided_slice %946 {offsets = [0, 0], sizes = [1, 128], strides = [1, 1]} : vector<2x128xf32> to vector<1x128xf32>
    %950 = vector.broadcast %947 : f32 to vector<1x128xf32>
    %951 = arith.mulf %950, %949 : vector<1x128xf32>
    %952 = arith.addf %945, %951 : vector<1x128xf32>
    %953 = vector.extract_strided_slice %946 {offsets = [1, 0], sizes = [1, 128], strides = [1, 1]} : vector<2x128xf32> to vector<1x128xf32>
    %954 = vector.broadcast %948 : f32 to vector<1x128xf32>
    %955 = arith.mulf %954, %953 : vector<1x128xf32>
    %956 = arith.addf %952, %955 : vector<1x128xf32>
    %c1_311 = arith.constant 1 : index
    %c0_312 = arith.constant 0 : index
    %957 = vector.load %arg5[%c1_311, %c0_312] : memref<7x128xf32, #tpu.memory_space<vmem>>, vector<1x128xf32>
    %958 = arith.mulf %956, %957 : vector<1x128xf32>
    %cst_313 = arith.constant 0.000000e+00 : f32
    %959 = vector.broadcast %cst_313 : f32 to vector<1x128xf32>
    %c0_314 = arith.constant 0 : index
    %c2_315 = arith.constant 2 : index
    %960 = vector.load %arg10[%c0_314, %c2_315] : memref<2x158xf32, #tpu.memory_space<vmem>>, vector<2x128xf32>
    %c2_316 = arith.constant 2 : index
    %961 = memref.load %arg6[%c2_316] : memref<98xf32, #tpu.memory_space<smem>>
    %c51_317 = arith.constant 51 : index
    %962 = memref.load %arg6[%c51_317] : memref<98xf32, #tpu.memory_space<smem>>
    %963 = vector.extract_strided_slice %960 {offsets = [0, 0], sizes = [1, 128], strides = [1, 1]} : vector<2x128xf32> to vector<1x128xf32>
    %964 = vector.broadcast %961 : f32 to vector<1x128xf32>
    %965 = arith.mulf %964, %963 : vector<1x128xf32>
    %966 = arith.addf %959, %965 : vector<1x128xf32>
    %967 = vector.extract_strided_slice %960 {offsets = [1, 0], sizes = [1, 128], strides = [1, 1]} : vector<2x128xf32> to vector<1x128xf32>
    %968 = vector.broadcast %962 : f32 to vector<1x128xf32>
    %969 = arith.mulf %968, %967 : vector<1x128xf32>
    %970 = arith.addf %966, %969 : vector<1x128xf32>
    %c0_318 = arith.constant 0 : index
    %c6_319 = arith.constant 6 : index
    %971 = vector.load %arg10[%c0_318, %c6_319] : memref<2x158xf32, #tpu.memory_space<vmem>>, vector<2x128xf32>
    %c9_320 = arith.constant 9 : index
    %972 = memref.load %arg6[%c9_320] : memref<98xf32, #tpu.memory_space<smem>>
    %c58_321 = arith.constant 58 : index
    %973 = memref.load %arg6[%c58_321] : memref<98xf32, #tpu.memory_space<smem>>
    %974 = vector.extract_strided_slice %971 {offsets = [0, 0], sizes = [1, 128], strides = [1, 1]} : vector<2x128xf32> to vector<1x128xf32>
    %975 = vector.broadcast %972 : f32 to vector<1x128xf32>
    %976 = arith.mulf %975, %974 : vector<1x128xf32>
    %977 = arith.addf %970, %976 : vector<1x128xf32>
    %978 = vector.extract_strided_slice %971 {offsets = [1, 0], sizes = [1, 128], strides = [1, 1]} : vector<2x128xf32> to vector<1x128xf32>
    %979 = vector.broadcast %973 : f32 to vector<1x128xf32>
    %980 = arith.mulf %979, %978 : vector<1x128xf32>
    %981 = arith.addf %977, %980 : vector<1x128xf32>
    %c0_322 = arith.constant 0 : index
    %c10_323 = arith.constant 10 : index
    %982 = vector.load %arg10[%c0_322, %c10_323] : memref<2x158xf32, #tpu.memory_space<vmem>>, vector<2x128xf32>
    %c16_324 = arith.constant 16 : index
    %983 = memref.load %arg6[%c16_324] : memref<98xf32, #tpu.memory_space<smem>>
    %c65_325 = arith.constant 65 : index
    %984 = memref.load %arg6[%c65_325] : memref<98xf32, #tpu.memory_space<smem>>
    %985 = vector.extract_strided_slice %982 {offsets = [0, 0], sizes = [1, 128], strides = [1, 1]} : vector<2x128xf32> to vector<1x128xf32>
    %986 = vector.broadcast %983 : f32 to vector<1x128xf32>
    %987 = arith.mulf %986, %985 : vector<1x128xf32>
    %988 = arith.addf %981, %987 : vector<1x128xf32>
    %989 = vector.extract_strided_slice %982 {offsets = [1, 0], sizes = [1, 128], strides = [1, 1]} : vector<2x128xf32> to vector<1x128xf32>
    %990 = vector.broadcast %984 : f32 to vector<1x128xf32>
    %991 = arith.mulf %990, %989 : vector<1x128xf32>
    %992 = arith.addf %988, %991 : vector<1x128xf32>
    %c0_326 = arith.constant 0 : index
    %c14_327 = arith.constant 14 : index
    %993 = vector.load %arg10[%c0_326, %c14_327] : memref<2x158xf32, #tpu.memory_space<vmem>>, vector<2x128xf32>
    %c23_328 = arith.constant 23 : index
    %994 = memref.load %arg6[%c23_328] : memref<98xf32, #tpu.memory_space<smem>>
    %c72_329 = arith.constant 72 : index
    %995 = memref.load %arg6[%c72_329] : memref<98xf32, #tpu.memory_space<smem>>
    %996 = vector.extract_strided_slice %993 {offsets = [0, 0], sizes = [1, 128], strides = [1, 1]} : vector<2x128xf32> to vector<1x128xf32>
    %997 = vector.broadcast %994 : f32 to vector<1x128xf32>
    %998 = arith.mulf %997, %996 : vector<1x128xf32>
    %999 = arith.addf %992, %998 : vector<1x128xf32>
    %1000 = vector.extract_strided_slice %993 {offsets = [1, 0], sizes = [1, 128], strides = [1, 1]} : vector<2x128xf32> to vector<1x128xf32>
    %1001 = vector.broadcast %995 : f32 to vector<1x128xf32>
    %1002 = arith.mulf %1001, %1000 : vector<1x128xf32>
    %1003 = arith.addf %999, %1002 : vector<1x128xf32>
    %c0_330 = arith.constant 0 : index
    %c18_331 = arith.constant 18 : index
    %1004 = vector.load %arg10[%c0_330, %c18_331] : memref<2x158xf32, #tpu.memory_space<vmem>>, vector<2x128xf32>
    %c30_332 = arith.constant 30 : index
    %1005 = memref.load %arg6[%c30_332] : memref<98xf32, #tpu.memory_space<smem>>
    %c79_333 = arith.constant 79 : index
    %1006 = memref.load %arg6[%c79_333] : memref<98xf32, #tpu.memory_space<smem>>
    %1007 = vector.extract_strided_slice %1004 {offsets = [0, 0], sizes = [1, 128], strides = [1, 1]} : vector<2x128xf32> to vector<1x128xf32>
    %1008 = vector.broadcast %1005 : f32 to vector<1x128xf32>
    %1009 = arith.mulf %1008, %1007 : vector<1x128xf32>
    %1010 = arith.addf %1003, %1009 : vector<1x128xf32>
    %1011 = vector.extract_strided_slice %1004 {offsets = [1, 0], sizes = [1, 128], strides = [1, 1]} : vector<2x128xf32> to vector<1x128xf32>
    %1012 = vector.broadcast %1006 : f32 to vector<1x128xf32>
    %1013 = arith.mulf %1012, %1011 : vector<1x128xf32>
    %1014 = arith.addf %1010, %1013 : vector<1x128xf32>
    %c0_334 = arith.constant 0 : index
    %c22_335 = arith.constant 22 : index
    %1015 = vector.load %arg10[%c0_334, %c22_335] : memref<2x158xf32, #tpu.memory_space<vmem>>, vector<2x128xf32>
    %c37_336 = arith.constant 37 : index
    %1016 = memref.load %arg6[%c37_336] : memref<98xf32, #tpu.memory_space<smem>>
    %c86_337 = arith.constant 86 : index
    %1017 = memref.load %arg6[%c86_337] : memref<98xf32, #tpu.memory_space<smem>>
    %1018 = vector.extract_strided_slice %1015 {offsets = [0, 0], sizes = [1, 128], strides = [1, 1]} : vector<2x128xf32> to vector<1x128xf32>
    %1019 = vector.broadcast %1016 : f32 to vector<1x128xf32>
    %1020 = arith.mulf %1019, %1018 : vector<1x128xf32>
    %1021 = arith.addf %1014, %1020 : vector<1x128xf32>
    %1022 = vector.extract_strided_slice %1015 {offsets = [1, 0], sizes = [1, 128], strides = [1, 1]} : vector<2x128xf32> to vector<1x128xf32>
    %1023 = vector.broadcast %1017 : f32 to vector<1x128xf32>
    %1024 = arith.mulf %1023, %1022 : vector<1x128xf32>
    %1025 = arith.addf %1021, %1024 : vector<1x128xf32>
    %c0_338 = arith.constant 0 : index
    %c26_339 = arith.constant 26 : index
    %1026 = vector.load %arg10[%c0_338, %c26_339] : memref<2x158xf32, #tpu.memory_space<vmem>>, vector<2x128xf32>
    %c44_340 = arith.constant 44 : index
    %1027 = memref.load %arg6[%c44_340] : memref<98xf32, #tpu.memory_space<smem>>
    %c93_341 = arith.constant 93 : index
    %1028 = memref.load %arg6[%c93_341] : memref<98xf32, #tpu.memory_space<smem>>
    %1029 = vector.extract_strided_slice %1026 {offsets = [0, 0], sizes = [1, 128], strides = [1, 1]} : vector<2x128xf32> to vector<1x128xf32>
    %1030 = vector.broadcast %1027 : f32 to vector<1x128xf32>
    %1031 = arith.mulf %1030, %1029 : vector<1x128xf32>
    %1032 = arith.addf %1025, %1031 : vector<1x128xf32>
    %1033 = vector.extract_strided_slice %1026 {offsets = [1, 0], sizes = [1, 128], strides = [1, 1]} : vector<2x128xf32> to vector<1x128xf32>
    %1034 = vector.broadcast %1028 : f32 to vector<1x128xf32>
    %1035 = arith.mulf %1034, %1033 : vector<1x128xf32>
    %1036 = arith.addf %1032, %1035 : vector<1x128xf32>
    %c2_342 = arith.constant 2 : index
    %c0_343 = arith.constant 0 : index
    %1037 = vector.load %arg5[%c2_342, %c0_343] : memref<7x128xf32, #tpu.memory_space<vmem>>, vector<1x128xf32>
    %1038 = arith.mulf %1036, %1037 : vector<1x128xf32>
    %cst_344 = arith.constant 0.000000e+00 : f32
    %1039 = vector.broadcast %cst_344 : f32 to vector<1x128xf32>
    %c0_345 = arith.constant 0 : index
    %c3_346 = arith.constant 3 : index
    %1040 = vector.load %arg10[%c0_345, %c3_346] : memref<2x158xf32, #tpu.memory_space<vmem>>, vector<2x128xf32>
    %c3_347 = arith.constant 3 : index
    %1041 = memref.load %arg6[%c3_347] : memref<98xf32, #tpu.memory_space<smem>>
    %c52_348 = arith.constant 52 : index
    %1042 = memref.load %arg6[%c52_348] : memref<98xf32, #tpu.memory_space<smem>>
    %1043 = vector.extract_strided_slice %1040 {offsets = [0, 0], sizes = [1, 128], strides = [1, 1]} : vector<2x128xf32> to vector<1x128xf32>
    %1044 = vector.broadcast %1041 : f32 to vector<1x128xf32>
    %1045 = arith.mulf %1044, %1043 : vector<1x128xf32>
    %1046 = arith.addf %1039, %1045 : vector<1x128xf32>
    %1047 = vector.extract_strided_slice %1040 {offsets = [1, 0], sizes = [1, 128], strides = [1, 1]} : vector<2x128xf32> to vector<1x128xf32>
    %1048 = vector.broadcast %1042 : f32 to vector<1x128xf32>
    %1049 = arith.mulf %1048, %1047 : vector<1x128xf32>
    %1050 = arith.addf %1046, %1049 : vector<1x128xf32>
    %c0_349 = arith.constant 0 : index
    %c7_350 = arith.constant 7 : index
    %1051 = vector.load %arg10[%c0_349, %c7_350] : memref<2x158xf32, #tpu.memory_space<vmem>>, vector<2x128xf32>
    %c10_351 = arith.constant 10 : index
    %1052 = memref.load %arg6[%c10_351] : memref<98xf32, #tpu.memory_space<smem>>
    %c59_352 = arith.constant 59 : index
    %1053 = memref.load %arg6[%c59_352] : memref<98xf32, #tpu.memory_space<smem>>
    %1054 = vector.extract_strided_slice %1051 {offsets = [0, 0], sizes = [1, 128], strides = [1, 1]} : vector<2x128xf32> to vector<1x128xf32>
    %1055 = vector.broadcast %1052 : f32 to vector<1x128xf32>
    %1056 = arith.mulf %1055, %1054 : vector<1x128xf32>
    %1057 = arith.addf %1050, %1056 : vector<1x128xf32>
    %1058 = vector.extract_strided_slice %1051 {offsets = [1, 0], sizes = [1, 128], strides = [1, 1]} : vector<2x128xf32> to vector<1x128xf32>
    %1059 = vector.broadcast %1053 : f32 to vector<1x128xf32>
    %1060 = arith.mulf %1059, %1058 : vector<1x128xf32>
    %1061 = arith.addf %1057, %1060 : vector<1x128xf32>
    %c0_353 = arith.constant 0 : index
    %c11_354 = arith.constant 11 : index
    %1062 = vector.load %arg10[%c0_353, %c11_354] : memref<2x158xf32, #tpu.memory_space<vmem>>, vector<2x128xf32>
    %c17_355 = arith.constant 17 : index
    %1063 = memref.load %arg6[%c17_355] : memref<98xf32, #tpu.memory_space<smem>>
    %c66_356 = arith.constant 66 : index
    %1064 = memref.load %arg6[%c66_356] : memref<98xf32, #tpu.memory_space<smem>>
    %1065 = vector.extract_strided_slice %1062 {offsets = [0, 0], sizes = [1, 128], strides = [1, 1]} : vector<2x128xf32> to vector<1x128xf32>
    %1066 = vector.broadcast %1063 : f32 to vector<1x128xf32>
    %1067 = arith.mulf %1066, %1065 : vector<1x128xf32>
    %1068 = arith.addf %1061, %1067 : vector<1x128xf32>
    %1069 = vector.extract_strided_slice %1062 {offsets = [1, 0], sizes = [1, 128], strides = [1, 1]} : vector<2x128xf32> to vector<1x128xf32>
    %1070 = vector.broadcast %1064 : f32 to vector<1x128xf32>
    %1071 = arith.mulf %1070, %1069 : vector<1x128xf32>
    %1072 = arith.addf %1068, %1071 : vector<1x128xf32>
    %c0_357 = arith.constant 0 : index
    %c15_358 = arith.constant 15 : index
    %1073 = vector.load %arg10[%c0_357, %c15_358] : memref<2x158xf32, #tpu.memory_space<vmem>>, vector<2x128xf32>
    %c24_359 = arith.constant 24 : index
    %1074 = memref.load %arg6[%c24_359] : memref<98xf32, #tpu.memory_space<smem>>
    %c73_360 = arith.constant 73 : index
    %1075 = memref.load %arg6[%c73_360] : memref<98xf32, #tpu.memory_space<smem>>
    %1076 = vector.extract_strided_slice %1073 {offsets = [0, 0], sizes = [1, 128], strides = [1, 1]} : vector<2x128xf32> to vector<1x128xf32>
    %1077 = vector.broadcast %1074 : f32 to vector<1x128xf32>
    %1078 = arith.mulf %1077, %1076 : vector<1x128xf32>
    %1079 = arith.addf %1072, %1078 : vector<1x128xf32>
    %1080 = vector.extract_strided_slice %1073 {offsets = [1, 0], sizes = [1, 128], strides = [1, 1]} : vector<2x128xf32> to vector<1x128xf32>
    %1081 = vector.broadcast %1075 : f32 to vector<1x128xf32>
    %1082 = arith.mulf %1081, %1080 : vector<1x128xf32>
    %1083 = arith.addf %1079, %1082 : vector<1x128xf32>
    %c0_361 = arith.constant 0 : index
    %c19_362 = arith.constant 19 : index
    %1084 = vector.load %arg10[%c0_361, %c19_362] : memref<2x158xf32, #tpu.memory_space<vmem>>, vector<2x128xf32>
    %c31_363 = arith.constant 31 : index
    %1085 = memref.load %arg6[%c31_363] : memref<98xf32, #tpu.memory_space<smem>>
    %c80_364 = arith.constant 80 : index
    %1086 = memref.load %arg6[%c80_364] : memref<98xf32, #tpu.memory_space<smem>>
    %1087 = vector.extract_strided_slice %1084 {offsets = [0, 0], sizes = [1, 128], strides = [1, 1]} : vector<2x128xf32> to vector<1x128xf32>
    %1088 = vector.broadcast %1085 : f32 to vector<1x128xf32>
    %1089 = arith.mulf %1088, %1087 : vector<1x128xf32>
    %1090 = arith.addf %1083, %1089 : vector<1x128xf32>
    %1091 = vector.extract_strided_slice %1084 {offsets = [1, 0], sizes = [1, 128], strides = [1, 1]} : vector<2x128xf32> to vector<1x128xf32>
    %1092 = vector.broadcast %1086 : f32 to vector<1x128xf32>
    %1093 = arith.mulf %1092, %1091 : vector<1x128xf32>
    %1094 = arith.addf %1090, %1093 : vector<1x128xf32>
    %c0_365 = arith.constant 0 : index
    %c23_366 = arith.constant 23 : index
    %1095 = vector.load %arg10[%c0_365, %c23_366] : memref<2x158xf32, #tpu.memory_space<vmem>>, vector<2x128xf32>
    %c38_367 = arith.constant 38 : index
    %1096 = memref.load %arg6[%c38_367] : memref<98xf32, #tpu.memory_space<smem>>
    %c87_368 = arith.constant 87 : index
    %1097 = memref.load %arg6[%c87_368] : memref<98xf32, #tpu.memory_space<smem>>
    %1098 = vector.extract_strided_slice %1095 {offsets = [0, 0], sizes = [1, 128], strides = [1, 1]} : vector<2x128xf32> to vector<1x128xf32>
    %1099 = vector.broadcast %1096 : f32 to vector<1x128xf32>
    %1100 = arith.mulf %1099, %1098 : vector<1x128xf32>
    %1101 = arith.addf %1094, %1100 : vector<1x128xf32>
    %1102 = vector.extract_strided_slice %1095 {offsets = [1, 0], sizes = [1, 128], strides = [1, 1]} : vector<2x128xf32> to vector<1x128xf32>
    %1103 = vector.broadcast %1097 : f32 to vector<1x128xf32>
    %1104 = arith.mulf %1103, %1102 : vector<1x128xf32>
    %1105 = arith.addf %1101, %1104 : vector<1x128xf32>
    %c0_369 = arith.constant 0 : index
    %c27_370 = arith.constant 27 : index
    %1106 = vector.load %arg10[%c0_369, %c27_370] : memref<2x158xf32, #tpu.memory_space<vmem>>, vector<2x128xf32>
    %c45_371 = arith.constant 45 : index
    %1107 = memref.load %arg6[%c45_371] : memref<98xf32, #tpu.memory_space<smem>>
    %c94_372 = arith.constant 94 : index
    %1108 = memref.load %arg6[%c94_372] : memref<98xf32, #tpu.memory_space<smem>>
    %1109 = vector.extract_strided_slice %1106 {offsets = [0, 0], sizes = [1, 128], strides = [1, 1]} : vector<2x128xf32> to vector<1x128xf32>
    %1110 = vector.broadcast %1107 : f32 to vector<1x128xf32>
    %1111 = arith.mulf %1110, %1109 : vector<1x128xf32>
    %1112 = arith.addf %1105, %1111 : vector<1x128xf32>
    %1113 = vector.extract_strided_slice %1106 {offsets = [1, 0], sizes = [1, 128], strides = [1, 1]} : vector<2x128xf32> to vector<1x128xf32>
    %1114 = vector.broadcast %1108 : f32 to vector<1x128xf32>
    %1115 = arith.mulf %1114, %1113 : vector<1x128xf32>
    %1116 = arith.addf %1112, %1115 : vector<1x128xf32>
    %c3_373 = arith.constant 3 : index
    %c0_374 = arith.constant 0 : index
    %1117 = vector.load %arg5[%c3_373, %c0_374] : memref<7x128xf32, #tpu.memory_space<vmem>>, vector<1x128xf32>
    %1118 = arith.mulf %1116, %1117 : vector<1x128xf32>
    %cst_375 = arith.constant 0.000000e+00 : f32
    %1119 = vector.broadcast %cst_375 : f32 to vector<1x128xf32>
    %c0_376 = arith.constant 0 : index
    %c4_377 = arith.constant 4 : index
    %1120 = vector.load %arg10[%c0_376, %c4_377] : memref<2x158xf32, #tpu.memory_space<vmem>>, vector<2x128xf32>
    %c4_378 = arith.constant 4 : index
    %1121 = memref.load %arg6[%c4_378] : memref<98xf32, #tpu.memory_space<smem>>
    %c53_379 = arith.constant 53 : index
    %1122 = memref.load %arg6[%c53_379] : memref<98xf32, #tpu.memory_space<smem>>
    %1123 = vector.extract_strided_slice %1120 {offsets = [0, 0], sizes = [1, 128], strides = [1, 1]} : vector<2x128xf32> to vector<1x128xf32>
    %1124 = vector.broadcast %1121 : f32 to vector<1x128xf32>
    %1125 = arith.mulf %1124, %1123 : vector<1x128xf32>
    %1126 = arith.addf %1119, %1125 : vector<1x128xf32>
    %1127 = vector.extract_strided_slice %1120 {offsets = [1, 0], sizes = [1, 128], strides = [1, 1]} : vector<2x128xf32> to vector<1x128xf32>
    %1128 = vector.broadcast %1122 : f32 to vector<1x128xf32>
    %1129 = arith.mulf %1128, %1127 : vector<1x128xf32>
    %1130 = arith.addf %1126, %1129 : vector<1x128xf32>
    %c0_380 = arith.constant 0 : index
    %c8_381 = arith.constant 8 : index
    %1131 = vector.load %arg10[%c0_380, %c8_381] : memref<2x158xf32, #tpu.memory_space<vmem>>, vector<2x128xf32>
    %c11_382 = arith.constant 11 : index
    %1132 = memref.load %arg6[%c11_382] : memref<98xf32, #tpu.memory_space<smem>>
    %c60_383 = arith.constant 60 : index
    %1133 = memref.load %arg6[%c60_383] : memref<98xf32, #tpu.memory_space<smem>>
    %1134 = vector.extract_strided_slice %1131 {offsets = [0, 0], sizes = [1, 128], strides = [1, 1]} : vector<2x128xf32> to vector<1x128xf32>
    %1135 = vector.broadcast %1132 : f32 to vector<1x128xf32>
    %1136 = arith.mulf %1135, %1134 : vector<1x128xf32>
    %1137 = arith.addf %1130, %1136 : vector<1x128xf32>
    %1138 = vector.extract_strided_slice %1131 {offsets = [1, 0], sizes = [1, 128], strides = [1, 1]} : vector<2x128xf32> to vector<1x128xf32>
    %1139 = vector.broadcast %1133 : f32 to vector<1x128xf32>
    %1140 = arith.mulf %1139, %1138 : vector<1x128xf32>
    %1141 = arith.addf %1137, %1140 : vector<1x128xf32>
    %c0_384 = arith.constant 0 : index
    %c12_385 = arith.constant 12 : index
    %1142 = vector.load %arg10[%c0_384, %c12_385] : memref<2x158xf32, #tpu.memory_space<vmem>>, vector<2x128xf32>
    %c18_386 = arith.constant 18 : index
    %1143 = memref.load %arg6[%c18_386] : memref<98xf32, #tpu.memory_space<smem>>
    %c67_387 = arith.constant 67 : index
    %1144 = memref.load %arg6[%c67_387] : memref<98xf32, #tpu.memory_space<smem>>
    %1145 = vector.extract_strided_slice %1142 {offsets = [0, 0], sizes = [1, 128], strides = [1, 1]} : vector<2x128xf32> to vector<1x128xf32>
    %1146 = vector.broadcast %1143 : f32 to vector<1x128xf32>
    %1147 = arith.mulf %1146, %1145 : vector<1x128xf32>
    %1148 = arith.addf %1141, %1147 : vector<1x128xf32>
    %1149 = vector.extract_strided_slice %1142 {offsets = [1, 0], sizes = [1, 128], strides = [1, 1]} : vector<2x128xf32> to vector<1x128xf32>
    %1150 = vector.broadcast %1144 : f32 to vector<1x128xf32>
    %1151 = arith.mulf %1150, %1149 : vector<1x128xf32>
    %1152 = arith.addf %1148, %1151 : vector<1x128xf32>
    %c0_388 = arith.constant 0 : index
    %c16_389 = arith.constant 16 : index
    %1153 = vector.load %arg10[%c0_388, %c16_389] : memref<2x158xf32, #tpu.memory_space<vmem>>, vector<2x128xf32>
    %c25_390 = arith.constant 25 : index
    %1154 = memref.load %arg6[%c25_390] : memref<98xf32, #tpu.memory_space<smem>>
    %c74_391 = arith.constant 74 : index
    %1155 = memref.load %arg6[%c74_391] : memref<98xf32, #tpu.memory_space<smem>>
    %1156 = vector.extract_strided_slice %1153 {offsets = [0, 0], sizes = [1, 128], strides = [1, 1]} : vector<2x128xf32> to vector<1x128xf32>
    %1157 = vector.broadcast %1154 : f32 to vector<1x128xf32>
    %1158 = arith.mulf %1157, %1156 : vector<1x128xf32>
    %1159 = arith.addf %1152, %1158 : vector<1x128xf32>
    %1160 = vector.extract_strided_slice %1153 {offsets = [1, 0], sizes = [1, 128], strides = [1, 1]} : vector<2x128xf32> to vector<1x128xf32>
    %1161 = vector.broadcast %1155 : f32 to vector<1x128xf32>
    %1162 = arith.mulf %1161, %1160 : vector<1x128xf32>
    %1163 = arith.addf %1159, %1162 : vector<1x128xf32>
    %c0_392 = arith.constant 0 : index
    %c20_393 = arith.constant 20 : index
    %1164 = vector.load %arg10[%c0_392, %c20_393] : memref<2x158xf32, #tpu.memory_space<vmem>>, vector<2x128xf32>
    %c32_394 = arith.constant 32 : index
    %1165 = memref.load %arg6[%c32_394] : memref<98xf32, #tpu.memory_space<smem>>
    %c81_395 = arith.constant 81 : index
    %1166 = memref.load %arg6[%c81_395] : memref<98xf32, #tpu.memory_space<smem>>
    %1167 = vector.extract_strided_slice %1164 {offsets = [0, 0], sizes = [1, 128], strides = [1, 1]} : vector<2x128xf32> to vector<1x128xf32>
    %1168 = vector.broadcast %1165 : f32 to vector<1x128xf32>
    %1169 = arith.mulf %1168, %1167 : vector<1x128xf32>
    %1170 = arith.addf %1163, %1169 : vector<1x128xf32>
    %1171 = vector.extract_strided_slice %1164 {offsets = [1, 0], sizes = [1, 128], strides = [1, 1]} : vector<2x128xf32> to vector<1x128xf32>
    %1172 = vector.broadcast %1166 : f32 to vector<1x128xf32>
    %1173 = arith.mulf %1172, %1171 : vector<1x128xf32>
    %1174 = arith.addf %1170, %1173 : vector<1x128xf32>
    %c0_396 = arith.constant 0 : index
    %c24_397 = arith.constant 24 : index
    %1175 = vector.load %arg10[%c0_396, %c24_397] : memref<2x158xf32, #tpu.memory_space<vmem>>, vector<2x128xf32>
    %c39_398 = arith.constant 39 : index
    %1176 = memref.load %arg6[%c39_398] : memref<98xf32, #tpu.memory_space<smem>>
    %c88_399 = arith.constant 88 : index
    %1177 = memref.load %arg6[%c88_399] : memref<98xf32, #tpu.memory_space<smem>>
    %1178 = vector.extract_strided_slice %1175 {offsets = [0, 0], sizes = [1, 128], strides = [1, 1]} : vector<2x128xf32> to vector<1x128xf32>
    %1179 = vector.broadcast %1176 : f32 to vector<1x128xf32>
    %1180 = arith.mulf %1179, %1178 : vector<1x128xf32>
    %1181 = arith.addf %1174, %1180 : vector<1x128xf32>
    %1182 = vector.extract_strided_slice %1175 {offsets = [1, 0], sizes = [1, 128], strides = [1, 1]} : vector<2x128xf32> to vector<1x128xf32>
    %1183 = vector.broadcast %1177 : f32 to vector<1x128xf32>
    %1184 = arith.mulf %1183, %1182 : vector<1x128xf32>
    %1185 = arith.addf %1181, %1184 : vector<1x128xf32>
    %c0_400 = arith.constant 0 : index
    %c28_401 = arith.constant 28 : index
    %1186 = vector.load %arg10[%c0_400, %c28_401] : memref<2x158xf32, #tpu.memory_space<vmem>>, vector<2x128xf32>
    %c46_402 = arith.constant 46 : index
    %1187 = memref.load %arg6[%c46_402] : memref<98xf32, #tpu.memory_space<smem>>
    %c95_403 = arith.constant 95 : index
    %1188 = memref.load %arg6[%c95_403] : memref<98xf32, #tpu.memory_space<smem>>
    %1189 = vector.extract_strided_slice %1186 {offsets = [0, 0], sizes = [1, 128], strides = [1, 1]} : vector<2x128xf32> to vector<1x128xf32>
    %1190 = vector.broadcast %1187 : f32 to vector<1x128xf32>
    %1191 = arith.mulf %1190, %1189 : vector<1x128xf32>
    %1192 = arith.addf %1185, %1191 : vector<1x128xf32>
    %1193 = vector.extract_strided_slice %1186 {offsets = [1, 0], sizes = [1, 128], strides = [1, 1]} : vector<2x128xf32> to vector<1x128xf32>
    %1194 = vector.broadcast %1188 : f32 to vector<1x128xf32>
    %1195 = arith.mulf %1194, %1193 : vector<1x128xf32>
    %1196 = arith.addf %1192, %1195 : vector<1x128xf32>
    %c4_404 = arith.constant 4 : index
    %c0_405 = arith.constant 0 : index
    %1197 = vector.load %arg5[%c4_404, %c0_405] : memref<7x128xf32, #tpu.memory_space<vmem>>, vector<1x128xf32>
    %1198 = arith.mulf %1196, %1197 : vector<1x128xf32>
    %cst_406 = arith.constant 0.000000e+00 : f32
    %1199 = vector.broadcast %cst_406 : f32 to vector<1x128xf32>
    %c0_407 = arith.constant 0 : index
    %c5_408 = arith.constant 5 : index
    %1200 = vector.load %arg10[%c0_407, %c5_408] : memref<2x158xf32, #tpu.memory_space<vmem>>, vector<2x128xf32>
    %c5_409 = arith.constant 5 : index
    %1201 = memref.load %arg6[%c5_409] : memref<98xf32, #tpu.memory_space<smem>>
    %c54_410 = arith.constant 54 : index
    %1202 = memref.load %arg6[%c54_410] : memref<98xf32, #tpu.memory_space<smem>>
    %1203 = vector.extract_strided_slice %1200 {offsets = [0, 0], sizes = [1, 128], strides = [1, 1]} : vector<2x128xf32> to vector<1x128xf32>
    %1204 = vector.broadcast %1201 : f32 to vector<1x128xf32>
    %1205 = arith.mulf %1204, %1203 : vector<1x128xf32>
    %1206 = arith.addf %1199, %1205 : vector<1x128xf32>
    %1207 = vector.extract_strided_slice %1200 {offsets = [1, 0], sizes = [1, 128], strides = [1, 1]} : vector<2x128xf32> to vector<1x128xf32>
    %1208 = vector.broadcast %1202 : f32 to vector<1x128xf32>
    %1209 = arith.mulf %1208, %1207 : vector<1x128xf32>
    %1210 = arith.addf %1206, %1209 : vector<1x128xf32>
    %c0_411 = arith.constant 0 : index
    %c9_412 = arith.constant 9 : index
    %1211 = vector.load %arg10[%c0_411, %c9_412] : memref<2x158xf32, #tpu.memory_space<vmem>>, vector<2x128xf32>
    %c12_413 = arith.constant 12 : index
    %1212 = memref.load %arg6[%c12_413] : memref<98xf32, #tpu.memory_space<smem>>
    %c61_414 = arith.constant 61 : index
    %1213 = memref.load %arg6[%c61_414] : memref<98xf32, #tpu.memory_space<smem>>
    %1214 = vector.extract_strided_slice %1211 {offsets = [0, 0], sizes = [1, 128], strides = [1, 1]} : vector<2x128xf32> to vector<1x128xf32>
    %1215 = vector.broadcast %1212 : f32 to vector<1x128xf32>
    %1216 = arith.mulf %1215, %1214 : vector<1x128xf32>
    %1217 = arith.addf %1210, %1216 : vector<1x128xf32>
    %1218 = vector.extract_strided_slice %1211 {offsets = [1, 0], sizes = [1, 128], strides = [1, 1]} : vector<2x128xf32> to vector<1x128xf32>
    %1219 = vector.broadcast %1213 : f32 to vector<1x128xf32>
    %1220 = arith.mulf %1219, %1218 : vector<1x128xf32>
    %1221 = arith.addf %1217, %1220 : vector<1x128xf32>
    %c0_415 = arith.constant 0 : index
    %c13_416 = arith.constant 13 : index
    %1222 = vector.load %arg10[%c0_415, %c13_416] : memref<2x158xf32, #tpu.memory_space<vmem>>, vector<2x128xf32>
    %c19_417 = arith.constant 19 : index
    %1223 = memref.load %arg6[%c19_417] : memref<98xf32, #tpu.memory_space<smem>>
    %c68_418 = arith.constant 68 : index
    %1224 = memref.load %arg6[%c68_418] : memref<98xf32, #tpu.memory_space<smem>>
    %1225 = vector.extract_strided_slice %1222 {offsets = [0, 0], sizes = [1, 128], strides = [1, 1]} : vector<2x128xf32> to vector<1x128xf32>
    %1226 = vector.broadcast %1223 : f32 to vector<1x128xf32>
    %1227 = arith.mulf %1226, %1225 : vector<1x128xf32>
    %1228 = arith.addf %1221, %1227 : vector<1x128xf32>
    %1229 = vector.extract_strided_slice %1222 {offsets = [1, 0], sizes = [1, 128], strides = [1, 1]} : vector<2x128xf32> to vector<1x128xf32>
    %1230 = vector.broadcast %1224 : f32 to vector<1x128xf32>
    %1231 = arith.mulf %1230, %1229 : vector<1x128xf32>
    %1232 = arith.addf %1228, %1231 : vector<1x128xf32>
    %c0_419 = arith.constant 0 : index
    %c17_420 = arith.constant 17 : index
    %1233 = vector.load %arg10[%c0_419, %c17_420] : memref<2x158xf32, #tpu.memory_space<vmem>>, vector<2x128xf32>
    %c26_421 = arith.constant 26 : index
    %1234 = memref.load %arg6[%c26_421] : memref<98xf32, #tpu.memory_space<smem>>
    %c75_422 = arith.constant 75 : index
    %1235 = memref.load %arg6[%c75_422] : memref<98xf32, #tpu.memory_space<smem>>
    %1236 = vector.extract_strided_slice %1233 {offsets = [0, 0], sizes = [1, 128], strides = [1, 1]} : vector<2x128xf32> to vector<1x128xf32>
    %1237 = vector.broadcast %1234 : f32 to vector<1x128xf32>
    %1238 = arith.mulf %1237, %1236 : vector<1x128xf32>
    %1239 = arith.addf %1232, %1238 : vector<1x128xf32>
    %1240 = vector.extract_strided_slice %1233 {offsets = [1, 0], sizes = [1, 128], strides = [1, 1]} : vector<2x128xf32> to vector<1x128xf32>
    %1241 = vector.broadcast %1235 : f32 to vector<1x128xf32>
    %1242 = arith.mulf %1241, %1240 : vector<1x128xf32>
    %1243 = arith.addf %1239, %1242 : vector<1x128xf32>
    %c0_423 = arith.constant 0 : index
    %c21_424 = arith.constant 21 : index
    %1244 = vector.load %arg10[%c0_423, %c21_424] : memref<2x158xf32, #tpu.memory_space<vmem>>, vector<2x128xf32>
    %c33_425 = arith.constant 33 : index
    %1245 = memref.load %arg6[%c33_425] : memref<98xf32, #tpu.memory_space<smem>>
    %c82_426 = arith.constant 82 : index
    %1246 = memref.load %arg6[%c82_426] : memref<98xf32, #tpu.memory_space<smem>>
    %1247 = vector.extract_strided_slice %1244 {offsets = [0, 0], sizes = [1, 128], strides = [1, 1]} : vector<2x128xf32> to vector<1x128xf32>
    %1248 = vector.broadcast %1245 : f32 to vector<1x128xf32>
    %1249 = arith.mulf %1248, %1247 : vector<1x128xf32>
    %1250 = arith.addf %1243, %1249 : vector<1x128xf32>
    %1251 = vector.extract_strided_slice %1244 {offsets = [1, 0], sizes = [1, 128], strides = [1, 1]} : vector<2x128xf32> to vector<1x128xf32>
    %1252 = vector.broadcast %1246 : f32 to vector<1x128xf32>
    %1253 = arith.mulf %1252, %1251 : vector<1x128xf32>
    %1254 = arith.addf %1250, %1253 : vector<1x128xf32>
    %c0_427 = arith.constant 0 : index
    %c25_428 = arith.constant 25 : index
    %1255 = vector.load %arg10[%c0_427, %c25_428] : memref<2x158xf32, #tpu.memory_space<vmem>>, vector<2x128xf32>
    %c40_429 = arith.constant 40 : index
    %1256 = memref.load %arg6[%c40_429] : memref<98xf32, #tpu.memory_space<smem>>
    %c89_430 = arith.constant 89 : index
    %1257 = memref.load %arg6[%c89_430] : memref<98xf32, #tpu.memory_space<smem>>
    %1258 = vector.extract_strided_slice %1255 {offsets = [0, 0], sizes = [1, 128], strides = [1, 1]} : vector<2x128xf32> to vector<1x128xf32>
    %1259 = vector.broadcast %1256 : f32 to vector<1x128xf32>
    %1260 = arith.mulf %1259, %1258 : vector<1x128xf32>
    %1261 = arith.addf %1254, %1260 : vector<1x128xf32>
    %1262 = vector.extract_strided_slice %1255 {offsets = [1, 0], sizes = [1, 128], strides = [1, 1]} : vector<2x128xf32> to vector<1x128xf32>
    %1263 = vector.broadcast %1257 : f32 to vector<1x128xf32>
    %1264 = arith.mulf %1263, %1262 : vector<1x128xf32>
    %1265 = arith.addf %1261, %1264 : vector<1x128xf32>
    %c0_431 = arith.constant 0 : index
    %c29_432 = arith.constant 29 : index
    %1266 = vector.load %arg10[%c0_431, %c29_432] : memref<2x158xf32, #tpu.memory_space<vmem>>, vector<2x128xf32>
    %c47_433 = arith.constant 47 : index
    %1267 = memref.load %arg6[%c47_433] : memref<98xf32, #tpu.memory_space<smem>>
    %c96_434 = arith.constant 96 : index
    %1268 = memref.load %arg6[%c96_434] : memref<98xf32, #tpu.memory_space<smem>>
    %1269 = vector.extract_strided_slice %1266 {offsets = [0, 0], sizes = [1, 128], strides = [1, 1]} : vector<2x128xf32> to vector<1x128xf32>
    %1270 = vector.broadcast %1267 : f32 to vector<1x128xf32>
    %1271 = arith.mulf %1270, %1269 : vector<1x128xf32>
    %1272 = arith.addf %1265, %1271 : vector<1x128xf32>
    %1273 = vector.extract_strided_slice %1266 {offsets = [1, 0], sizes = [1, 128], strides = [1, 1]} : vector<2x128xf32> to vector<1x128xf32>
    %1274 = vector.broadcast %1268 : f32 to vector<1x128xf32>
    %1275 = arith.mulf %1274, %1273 : vector<1x128xf32>
    %1276 = arith.addf %1272, %1275 : vector<1x128xf32>
    %c5_435 = arith.constant 5 : index
    %c0_436 = arith.constant 0 : index
    %1277 = vector.load %arg5[%c5_435, %c0_436] : memref<7x128xf32, #tpu.memory_space<vmem>>, vector<1x128xf32>
    %1278 = arith.mulf %1276, %1277 : vector<1x128xf32>
    %cst_437 = arith.constant 0.000000e+00 : f32
    %1279 = vector.broadcast %cst_437 : f32 to vector<1x128xf32>
    %c0_438 = arith.constant 0 : index
    %c6_439 = arith.constant 6 : index
    %1280 = vector.load %arg10[%c0_438, %c6_439] : memref<2x158xf32, #tpu.memory_space<vmem>>, vector<2x128xf32>
    %c6_440 = arith.constant 6 : index
    %1281 = memref.load %arg6[%c6_440] : memref<98xf32, #tpu.memory_space<smem>>
    %c55_441 = arith.constant 55 : index
    %1282 = memref.load %arg6[%c55_441] : memref<98xf32, #tpu.memory_space<smem>>
    %1283 = vector.extract_strided_slice %1280 {offsets = [0, 0], sizes = [1, 128], strides = [1, 1]} : vector<2x128xf32> to vector<1x128xf32>
    %1284 = vector.broadcast %1281 : f32 to vector<1x128xf32>
    %1285 = arith.mulf %1284, %1283 : vector<1x128xf32>
    %1286 = arith.addf %1279, %1285 : vector<1x128xf32>
    %1287 = vector.extract_strided_slice %1280 {offsets = [1, 0], sizes = [1, 128], strides = [1, 1]} : vector<2x128xf32> to vector<1x128xf32>
    %1288 = vector.broadcast %1282 : f32 to vector<1x128xf32>
    %1289 = arith.mulf %1288, %1287 : vector<1x128xf32>
    %1290 = arith.addf %1286, %1289 : vector<1x128xf32>
    %c0_442 = arith.constant 0 : index
    %c10_443 = arith.constant 10 : index
    %1291 = vector.load %arg10[%c0_442, %c10_443] : memref<2x158xf32, #tpu.memory_space<vmem>>, vector<2x128xf32>
    %c13_444 = arith.constant 13 : index
    %1292 = memref.load %arg6[%c13_444] : memref<98xf32, #tpu.memory_space<smem>>
    %c62_445 = arith.constant 62 : index
    %1293 = memref.load %arg6[%c62_445] : memref<98xf32, #tpu.memory_space<smem>>
    %1294 = vector.extract_strided_slice %1291 {offsets = [0, 0], sizes = [1, 128], strides = [1, 1]} : vector<2x128xf32> to vector<1x128xf32>
    %1295 = vector.broadcast %1292 : f32 to vector<1x128xf32>
    %1296 = arith.mulf %1295, %1294 : vector<1x128xf32>
    %1297 = arith.addf %1290, %1296 : vector<1x128xf32>
    %1298 = vector.extract_strided_slice %1291 {offsets = [1, 0], sizes = [1, 128], strides = [1, 1]} : vector<2x128xf32> to vector<1x128xf32>
    %1299 = vector.broadcast %1293 : f32 to vector<1x128xf32>
    %1300 = arith.mulf %1299, %1298 : vector<1x128xf32>
    %1301 = arith.addf %1297, %1300 : vector<1x128xf32>
    %c0_446 = arith.constant 0 : index
    %c14_447 = arith.constant 14 : index
    %1302 = vector.load %arg10[%c0_446, %c14_447] : memref<2x158xf32, #tpu.memory_space<vmem>>, vector<2x128xf32>
    %c20_448 = arith.constant 20 : index
    %1303 = memref.load %arg6[%c20_448] : memref<98xf32, #tpu.memory_space<smem>>
    %c69_449 = arith.constant 69 : index
    %1304 = memref.load %arg6[%c69_449] : memref<98xf32, #tpu.memory_space<smem>>
    %1305 = vector.extract_strided_slice %1302 {offsets = [0, 0], sizes = [1, 128], strides = [1, 1]} : vector<2x128xf32> to vector<1x128xf32>
    %1306 = vector.broadcast %1303 : f32 to vector<1x128xf32>
    %1307 = arith.mulf %1306, %1305 : vector<1x128xf32>
    %1308 = arith.addf %1301, %1307 : vector<1x128xf32>
    %1309 = vector.extract_strided_slice %1302 {offsets = [1, 0], sizes = [1, 128], strides = [1, 1]} : vector<2x128xf32> to vector<1x128xf32>
    %1310 = vector.broadcast %1304 : f32 to vector<1x128xf32>
    %1311 = arith.mulf %1310, %1309 : vector<1x128xf32>
    %1312 = arith.addf %1308, %1311 : vector<1x128xf32>
    %c0_450 = arith.constant 0 : index
    %c18_451 = arith.constant 18 : index
    %1313 = vector.load %arg10[%c0_450, %c18_451] : memref<2x158xf32, #tpu.memory_space<vmem>>, vector<2x128xf32>
    %c27_452 = arith.constant 27 : index
    %1314 = memref.load %arg6[%c27_452] : memref<98xf32, #tpu.memory_space<smem>>
    %c76_453 = arith.constant 76 : index
    %1315 = memref.load %arg6[%c76_453] : memref<98xf32, #tpu.memory_space<smem>>
    %1316 = vector.extract_strided_slice %1313 {offsets = [0, 0], sizes = [1, 128], strides = [1, 1]} : vector<2x128xf32> to vector<1x128xf32>
    %1317 = vector.broadcast %1314 : f32 to vector<1x128xf32>
    %1318 = arith.mulf %1317, %1316 : vector<1x128xf32>
    %1319 = arith.addf %1312, %1318 : vector<1x128xf32>
    %1320 = vector.extract_strided_slice %1313 {offsets = [1, 0], sizes = [1, 128], strides = [1, 1]} : vector<2x128xf32> to vector<1x128xf32>
    %1321 = vector.broadcast %1315 : f32 to vector<1x128xf32>
    %1322 = arith.mulf %1321, %1320 : vector<1x128xf32>
    %1323 = arith.addf %1319, %1322 : vector<1x128xf32>
    %c0_454 = arith.constant 0 : index
    %c22_455 = arith.constant 22 : index
    %1324 = vector.load %arg10[%c0_454, %c22_455] : memref<2x158xf32, #tpu.memory_space<vmem>>, vector<2x128xf32>
    %c34_456 = arith.constant 34 : index
    %1325 = memref.load %arg6[%c34_456] : memref<98xf32, #tpu.memory_space<smem>>
    %c83_457 = arith.constant 83 : index
    %1326 = memref.load %arg6[%c83_457] : memref<98xf32, #tpu.memory_space<smem>>
    %1327 = vector.extract_strided_slice %1324 {offsets = [0, 0], sizes = [1, 128], strides = [1, 1]} : vector<2x128xf32> to vector<1x128xf32>
    %1328 = vector.broadcast %1325 : f32 to vector<1x128xf32>
    %1329 = arith.mulf %1328, %1327 : vector<1x128xf32>
    %1330 = arith.addf %1323, %1329 : vector<1x128xf32>
    %1331 = vector.extract_strided_slice %1324 {offsets = [1, 0], sizes = [1, 128], strides = [1, 1]} : vector<2x128xf32> to vector<1x128xf32>
    %1332 = vector.broadcast %1326 : f32 to vector<1x128xf32>
    %1333 = arith.mulf %1332, %1331 : vector<1x128xf32>
    %1334 = arith.addf %1330, %1333 : vector<1x128xf32>
    %c0_458 = arith.constant 0 : index
    %c26_459 = arith.constant 26 : index
    %1335 = vector.load %arg10[%c0_458, %c26_459] : memref<2x158xf32, #tpu.memory_space<vmem>>, vector<2x128xf32>
    %c41_460 = arith.constant 41 : index
    %1336 = memref.load %arg6[%c41_460] : memref<98xf32, #tpu.memory_space<smem>>
    %c90_461 = arith.constant 90 : index
    %1337 = memref.load %arg6[%c90_461] : memref<98xf32, #tpu.memory_space<smem>>
    %1338 = vector.extract_strided_slice %1335 {offsets = [0, 0], sizes = [1, 128], strides = [1, 1]} : vector<2x128xf32> to vector<1x128xf32>
    %1339 = vector.broadcast %1336 : f32 to vector<1x128xf32>
    %1340 = arith.mulf %1339, %1338 : vector<1x128xf32>
    %1341 = arith.addf %1334, %1340 : vector<1x128xf32>
    %1342 = vector.extract_strided_slice %1335 {offsets = [1, 0], sizes = [1, 128], strides = [1, 1]} : vector<2x128xf32> to vector<1x128xf32>
    %1343 = vector.broadcast %1337 : f32 to vector<1x128xf32>
    %1344 = arith.mulf %1343, %1342 : vector<1x128xf32>
    %1345 = arith.addf %1341, %1344 : vector<1x128xf32>
    %c0_462 = arith.constant 0 : index
    %c30_463 = arith.constant 30 : index
    %1346 = vector.load %arg10[%c0_462, %c30_463] : memref<2x158xf32, #tpu.memory_space<vmem>>, vector<2x128xf32>
    %c48_464 = arith.constant 48 : index
    %1347 = memref.load %arg6[%c48_464] : memref<98xf32, #tpu.memory_space<smem>>
    %c97_465 = arith.constant 97 : index
    %1348 = memref.load %arg6[%c97_465] : memref<98xf32, #tpu.memory_space<smem>>
    %1349 = vector.extract_strided_slice %1346 {offsets = [0, 0], sizes = [1, 128], strides = [1, 1]} : vector<2x128xf32> to vector<1x128xf32>
    %1350 = vector.broadcast %1347 : f32 to vector<1x128xf32>
    %1351 = arith.mulf %1350, %1349 : vector<1x128xf32>
    %1352 = arith.addf %1345, %1351 : vector<1x128xf32>
    %1353 = vector.extract_strided_slice %1346 {offsets = [1, 0], sizes = [1, 128], strides = [1, 1]} : vector<2x128xf32> to vector<1x128xf32>
    %1354 = vector.broadcast %1348 : f32 to vector<1x128xf32>
    %1355 = arith.mulf %1354, %1353 : vector<1x128xf32>
    %1356 = arith.addf %1352, %1355 : vector<1x128xf32>
    %c6_466 = arith.constant 6 : index
    %c0_467 = arith.constant 0 : index
    %1357 = vector.load %arg5[%c6_466, %c0_467] : memref<7x128xf32, #tpu.memory_space<vmem>>, vector<1x128xf32>
    %1358 = arith.mulf %1356, %1357 : vector<1x128xf32>
    %1359 = arith.addf %878, %958 : vector<1x128xf32>
    %1360 = arith.addf %1038, %1118 : vector<1x128xf32>
    %1361 = arith.addf %1198, %1278 : vector<1x128xf32>
    %1362 = arith.addf %1359, %1360 : vector<1x128xf32>
    %1363 = arith.addf %1361, %1358 : vector<1x128xf32>
    %1364 = arith.addf %1362, %1363 : vector<1x128xf32>
    %cst_468 = arith.constant 5.000000e-01 : f32
    %1365 = vector.broadcast %cst_468 : f32 to vector<1x128xf32>
    %1366 = arith.mulf %1365, %1364 : vector<1x128xf32>
    %1367 = math.tanh %1366 : vector<1x128xf32>
    %cst_469 = arith.constant 5.000000e-01 : f32
    %1368 = vector.broadcast %cst_469 : f32 to vector<1x128xf32>
    %1369 = arith.mulf %1368, %1367 : vector<1x128xf32>
    %cst_470 = arith.constant 5.000000e-01 : f32
    %1370 = vector.broadcast %cst_470 : f32 to vector<1x128xf32>
    %1371 = arith.addf %1369, %1370 : vector<1x128xf32>
    %c0_i32_471 = arith.constant 0 : i32
    %c8_i32_472 = arith.constant 8 : i32
    %1372 = arith.muli %c0_i32_471, %c8_i32_472 : i32
    %1373 = tpu.assume_multiple %1372, 8 : i32
    %c1_473 = arith.constant 1 : index
    %1374 = arith.index_cast %1373 : i32 to index
    %c0_474 = arith.constant 0 : index
    %1375 = vector.load %arg1[%c1_473, %1374, %c0_474] : memref<2x16x128xf32, #tpu.memory_space<vmem>>, vector<1x8x128xf32>
    %1376 = vector.shape_cast %1375 : vector<1x8x128xf32> to vector<8x128xf32>
    %1377 = arith.index_cast %1373 : i32 to index
    %c0_475 = arith.constant 0 : index
    %1378 = vector.load %arg9[%1377, %c0_475] : memref<16x1xf32, #tpu.memory_space<vmem>>, vector<8x1xf32>
    %1379 = arith.index_cast %1373 : i32 to index
    %c0_476 = arith.constant 0 : index
    %1380 = vector.load %arg4[%1379, %c0_476] : memref<16x2xf32, #tpu.memory_space<vmem>>, vector<8x1xf32>
    %1381 = arith.mulf %1378, %1380 : vector<8x1xf32>
    %1382 = arith.index_cast %1373 : i32 to index
    %c1_477 = arith.constant 1 : index
    %1383 = vector.load %arg4[%1382, %c1_477] : memref<16x2xf32, #tpu.memory_space<vmem>>, vector<8x1xf32>
    %1384 = vector.broadcast %1371 : vector<1x128xf32> to vector<8x128xf32>
    %1385 = arith.mulf %1376, %1384 : vector<8x128xf32>
    %1386 = vector.broadcast %1381 : vector<8x1xf32> to vector<8x128xf32>
    %1387 = arith.mulf %1385, %1386 : vector<8x128xf32>
    %1388 = vector.broadcast %1383 : vector<8x1xf32> to vector<8x128xf32>
    %1389 = arith.addf %1387, %1388 : vector<8x128xf32>
    %cst_478 = arith.constant 0.000000e+00 : f32
    %1390 = vector.broadcast %cst_478 : f32 to vector<8x128xf32>
    %1391 = arith.maximumf %1389, %1390 : vector<8x128xf32>
    %c1_479 = arith.constant 1 : index
    %1392 = arith.index_cast %1373 : i32 to index
    %c0_480 = arith.constant 0 : index
    %1393 = vector.load %arg7[%c1_479, %1392, %c0_480] : memref<2x16x128xf32, #tpu.memory_space<vmem>>, vector<1x8x128xf32>
    %1394 = vector.shape_cast %1393 : vector<1x8x128xf32> to vector<8x128xf32>
    %1395 = vector.shape_cast %1391 : vector<8x128xf32> to vector<1x8x128xf32>
    tpu.vector_store %arg7[%c1_479, %1392, %c0_480], %1395 {strides = array<i32>} : memref<2x16x128xf32, #tpu.memory_space<vmem>>, vector<1x8x128xf32>,
    %c1_i32_481 = arith.constant 1 : i32
    %c8_i32_482 = arith.constant 8 : i32
    %1396 = arith.muli %c1_i32_481, %c8_i32_482 : i32
    %1397 = tpu.assume_multiple %1396, 8 : i32
    %c1_483 = arith.constant 1 : index
    %1398 = arith.index_cast %1397 : i32 to index
    %c0_484 = arith.constant 0 : index
    %1399 = vector.load %arg1[%c1_483, %1398, %c0_484] : memref<2x16x128xf32, #tpu.memory_space<vmem>>, vector<1x8x128xf32>
    %1400 = vector.shape_cast %1399 : vector<1x8x128xf32> to vector<8x128xf32>
    %1401 = arith.index_cast %1397 : i32 to index
    %c0_485 = arith.constant 0 : index
    %1402 = vector.load %arg9[%1401, %c0_485] : memref<16x1xf32, #tpu.memory_space<vmem>>, vector<8x1xf32>
    %1403 = arith.index_cast %1397 : i32 to index
    %c0_486 = arith.constant 0 : index
    %1404 = vector.load %arg4[%1403, %c0_486] : memref<16x2xf32, #tpu.memory_space<vmem>>, vector<8x1xf32>
    %1405 = arith.mulf %1402, %1404 : vector<8x1xf32>
    %1406 = arith.index_cast %1397 : i32 to index
    %c1_487 = arith.constant 1 : index
    %1407 = vector.load %arg4[%1406, %c1_487] : memref<16x2xf32, #tpu.memory_space<vmem>>, vector<8x1xf32>
    %1408 = vector.broadcast %1371 : vector<1x128xf32> to vector<8x128xf32>
    %1409 = arith.mulf %1400, %1408 : vector<8x128xf32>
    %1410 = vector.broadcast %1405 : vector<8x1xf32> to vector<8x128xf32>
    %1411 = arith.mulf %1409, %1410 : vector<8x128xf32>
    %1412 = vector.broadcast %1407 : vector<8x1xf32> to vector<8x128xf32>
    %1413 = arith.addf %1411, %1412 : vector<8x128xf32>
    %cst_488 = arith.constant 0.000000e+00 : f32
    %1414 = vector.broadcast %cst_488 : f32 to vector<8x128xf32>
    %1415 = arith.maximumf %1413, %1414 : vector<8x128xf32>
    %c1_489 = arith.constant 1 : index
    %1416 = arith.index_cast %1397 : i32 to index
    %c0_490 = arith.constant 0 : index
    %1417 = vector.load %arg7[%c1_489, %1416, %c0_490] : memref<2x16x128xf32, #tpu.memory_space<vmem>>, vector<1x8x128xf32>
    %1418 = vector.shape_cast %1417 : vector<1x8x128xf32> to vector<8x128xf32>
    %1419 = vector.shape_cast %1415 : vector<8x128xf32> to vector<1x8x128xf32>
    tpu.vector_store %arg7[%c1_489, %1416, %c0_490], %1419 {strides = array<i32>} : memref<2x16x128xf32, #tpu.memory_space<vmem>>, vector<1x8x128xf32>,
    %c2_i32_491 = arith.constant 2 : i32
    return
  }
  func.func @transform_0(%arg0: i32) -> (i32, i32, i32) {
    %c0_i32 = arith.constant 0 : i32
    %c0_i32_0 = arith.constant 0 : i32
    %c0_i32_1 = arith.constant 0 : i32
    return %arg0, %c0_i32, %c0_i32_0 : i32, i32, i32
  }
  func.func @transform_1(%arg0: i32) -> (i32, i32) {
    %c0_i32 = arith.constant 0 : i32
    %c0_i32_0 = arith.constant 0 : i32
    %c0_i32_1 = arith.constant 0 : i32
    return %c0_i32, %c0_i32_0 : i32, i32
  }
  func.func @transform_2(%arg0: i32) -> (i32, i32) {
    %c0_i32 = arith.constant 0 : i32
    %c0_i32_0 = arith.constant 0 : i32
    %c0_i32_1 = arith.constant 0 : i32
    return %c0_i32, %c0_i32_0 : i32, i32
  }
  func.func @transform_3(%arg0: i32) -> (i32, i32) {
    %c0_i32 = arith.constant 0 : i32
    %c0_i32_0 = arith.constant 0 : i32
    %c0_i32_1 = arith.constant 0 : i32
    return %c0_i32, %c0_i32_0 : i32, i32
  }
  func.func @transform_4(%arg0: i32) -> (i32, i32) {
    %c0_i32 = arith.constant 0 : i32
    %c0_i32_0 = arith.constant 0 : i32
    %c0_i32_1 = arith.constant 0 : i32
    return %c0_i32, %c0_i32_0 : i32, i32
  }
  func.func @transform_5(%arg0: i32) -> i32 {
    %c0_i32 = arith.constant 0 : i32
    %c0_i32_0 = arith.constant 0 : i32
    return %c0_i32 : i32
  }
  func.func @transform_6(%arg0: i32) -> (i32, i32, i32) {
    %c0_i32 = arith.constant 0 : i32
    %c0_i32_0 = arith.constant 0 : i32
    %c0_i32_1 = arith.constant 0 : i32
    return %arg0, %c0_i32, %c0_i32_0 : i32, i32, i32
  }
}

</mosaic_0001>

<bundles_post_ra>
// kernel: tpu_custom_call.1
= control target key start
LH: loop header
LB: loop body
LE: loop exit
PB: predicated region body
PF: predicated region fallthrough
CT: control target
= control target key end

     0   :  { %11 = vsyncpa [#allocation7], 0  ;;  %s5053_s0 = inlined_call_operand.vmem [shape: f32[2,16,128], index: 0, kind: input, shape index: {}]   ;;  %s5054_s1 = inlined_call_operand.hbm [shape: f32[2,16], index: 1, kind: input, shape index: {}]   ;;  %s5055_s2 = inlined_call_operand.vmem [shape: f32[16,2], index: 2, kind: input, shape index: {}]   ;;  %s5056_s3 = inlined_call_operand.vmem [shape: f32[16,2], index: 3, kind: input, shape index: {}]   ;;  %s5057_s4 = inlined_call_operand.vmem [shape: f32[7,128], index: 4, kind: input, shape index: {}]   ;;  %s5058_s5 = inlined_call_operand.vmem [shape: f32[98], index: 5, kind: input, shape index: {}]   ;;  %s5059_s6 = inlined_call_operand.hbm [shape: f32[2,16,128], index: 6, kind: output, shape index: {}]  }
   0x1   :  { %12 = vsyncpa [#allocation9], 0 }
   0x2   :  { %13 = vsyncpa [#allocation8], 0  ;;  %s38_s23 = sshll.u32 %s5058_s5, 4  ;;  %s3491_s24 = smov [#allocation6]   ;;  %s39_s23 = int_to_ptr.vmem [resolvable:$true] %s38_s23 }
   0x3   :  { %s22_s25 = sshll.u32 %s3491_s24, 4  ;;  %s23_s25 = int_to_ptr.vmem [resolvable:$true] %s22_s25 }
   0x4   :  { %s3441_s26 = scalar_lea.vmem %s23_s25, 32  ;;  %p3446_p1 = scmp.lt.s32.totalorder %s23_s25, %s23_s25 }
   0x5   :  { %p3442_p0 = scmp.ne.s32.totalorder %s23_s25, %s3441_s26  ;;  %p3447_p2 = scmp.lt.s32.totalorder %s3441_s26, %s3441_s26 }
   0x7   :  { %p3448_p3 = por %p3447_p2, %p3446_p1 }
   0x9   :  { %p3449_p4 = pnand %p3448_p3, %p3442_p0 }
   0xb   :  { %3452 = shalt.err (!%p3449_p4)
}
   0xc   :  { %25 = dma.hbm_to_vmem [thread:$0]  %s5054_s1, 32, %s23_s25, [#allocation7]  }
   0xd   :  { %s3453_s29 = scalar_lea.vmem %s39_s23, 16  ;;  %p3458_p6 = scmp.lt.s32.totalorder %s39_s23, %s39_s23 }
   0xe   :  { %p3454_p5 = scmp.ne.s32.totalorder %s39_s23, %s3453_s29  ;;  %p3459_p7 = scmp.lt.s32.totalorder %s3453_s29, %s3453_s29 }
  0x10   :  { %p3460_p8 = por %p3459_p7, %p3458_p6 }
  0x12   :  { %p3461_p9 = pnand %p3460_p8, %p3454_p5 }
  0x14   :  { %3464 = shalt.err (!%p3461_p9)
}
  0x15   :  { %s3492_s5 = smov [#allocation10]  }
  0x16   :  { %41 = dma.vmem_to_smem %s39_s23, 16, %s3492_s5, [#allocation9]  }
  0x17   :  { %3485 = dma.done.wait [#allocation7], 32  }
  0x18   :  { %3486 = vsyncadd [#allocation7], 4294967264 }
  0x19   :  { %3487 = dma.done.wait [#allocation9], 16  }
  0x1a   :  { %3488 = vsyncadd [#allocation9], 4294967280 }
  0x1b   :  { %48 = sfence }
  0x1c   :  { %v3561_v0 = vld [vmem:[%s5053_s0 + $0x8] sm:$0xff]  ;;  %v49_v1 = vlaneseq  ;;  %v3568_v3 = vld [vmem:[%s5053_s0] sm:$0xff]  ;;  %v3493_v4 = vmov -3e+38   ;;  %v3494_v8 = vmov 0.0   ;;  %vm3495_vm1 = vmmov 0  }
  0x1d   :  { %70 = vadd.xlane.f32.xlu0 %v3561_v0  ;;  %3360 = vmatprep.subr.mxu0 %v3494_v8  ;;  %v3186_v9 = vld [vmem:[%s5053_s0 + $0x18] sm:$0xff]  ;;  %v3185_v10 = vld [vmem:[%s5053_s0 + $0x10] sm:$0xff]  ;;  %vm61_vm2 = vcmask 7168   ;;  %vm66_vm3 = vcmask 15368   ;;  %v81_v20 = vld [vmem:[#allocation6] sm:$0x3] }
  0x1e   :  { %v50_v2 = vand.u32 127, %v49_v1  ;;  %3364 = vmatprep.mubr.msk.f32.mxu0 %vm3495_vm1, %v3494_v8  ;;  %vm82_vm4 = vcmask 130048   ;;  %v157_v28 = vld [vmem:[%s5055_s2] sm:$0xff]  ;;  %vm159_vm5 = vcmask 15360   ;;  %s3496_s17 = smov 2   ;;  %s5095_s22 = smov 1  }
  0x1f   :  { %3369 = vmatprep.mubr.msk.f32.mxu1 %vm159_vm5, %v157_v28  ;;  %v3094_v29 = vld.sshfl [vmem:[%s5057_s4 + $0x2] sm:$0x1 pattern:$0x76325410]  ;;  %s5092_s25 = smov 4   ;;  %s3499_s28 = smov 3  }
  0x20   :  { %vm51_vm0 = vcmp.lt.s32.totalorder %v50_v2, 64  ;;  %v3138_v30 = vld.sshfl [vmem:[%s5057_s4 + $0x4] sm:$0x1 pattern:$0x76325410]  ;;  %s3500_s30 = smov 6  }
  0x21   :  { %v52_v5 = vsel %vm51_vm0, 0.0, %v3493_v4  ;;  %58 = vadd.xlane.f32.xlu0 %v3568_v3  ;;  %v3072_v31 = vld.sshfl [vmem:[%s5057_s4 + $0x1] sm:$0x1 pattern:$0x76325410]  ;;  %s3501_s7 = smov 5  }
  0x22   :  { %v75_v6 = vadd.f32 %v3561_v0, %v52_v5  ;;  %v63_v7 = vadd.f32 %v3568_v3, %v52_v5  ;;  %v1558_v11 = vadd.f32 %v3186_v9, %v52_v5  ;;  %v1547_v12 = vadd.f32 %v3185_v10, %v52_v5  ;;  %v3116_v32 = vld.sshfl [vmem:[%s5057_s4 + $0x3] sm:$0x1 pattern:$0x76325410]  ;;  %v158_v38 = vld [vmem:[%s5055_s2 + $0x8] sm:$0xff]  ;;  %s5093_s2 = smov 127  }
  0x23   :  { %v3182_v33 = vld.sshfl [vmem:[%s5057_s4 + $0x6] sm:$0x1 pattern:$0x76325410]  ;;  %vm166_vm6 = vcmask 1041408   ;;  %v3503_v47 = vmov 0  }
  0x24   :  { %76 = vmax.xlane.f32.xlu1 %v75_v6  ;;  %v3322_v34 = vld.sshfl [vmem:[%s5057_s4 + $0x5] sm:$0x1 pattern:$0x76325410]  ;;  %3411 = vset.pattern.permute.xlu0 %v3503_v47  ;;  %vm53_vm7 = vcmask 115712   ;;  %vm55_vm8 = vcmask 238712  }
  0x25   :  { %1554 = vadd.xlane.f32.xlu0 %v3186_v9  ;;  %v1564_v41 = vld [vmem:[#allocation6] sm:$0x3]  ;;  %3410 = vset.pattern.permute.xlu1 %v3503_v47  ;;  %54 = vst.msk [vmem:[#allocation4] sm:$0x3] %vm53_vm7, %v3494_v8  ;;  %s3505_s11 = smov 15   ;;  %vm313_vm9 = vcmask 1040504  }
  0x26   :  { %56 = vst.msk [vmem:[#allocation4 + $0x2] sm:$0x3] %vm55_vm8, %v3494_v8  ;;  %vm314_vm10 = vcmask 116738   ;;  %vm310_vm11 = vcmask 121856   ;;  %s3076_s12 = sld [smem:[#allocation10 + $0x9]]  ;;  %s3506_s21 = smov 124  }
  0x27   :  { %vm3680_vm12 = vmor %vm314_vm10, %vm313_vm9  ;;  %s3033_s13 = sld [smem:[#allocation10 + $0x7]]  ;;  %s3507_s26 = smov 120   ;;  %vm353_vm13 = vcmask 1014784   ;;  %vm376_vm14 = vcmask 982016   ;;  %vm399_vm15 = vcmask 949248   ;;  %vm422_vm0 = vcmask 916480  }
  0x28   :  { %64 = vmax.xlane.f32.xlu1 %v63_v7  ;;  %s3079_s14 = sld [smem:[#allocation10 + $0x10]]  ;;  %s3508_s29 = smov 116   ;;  %vm1444_vm7 = vcmask 48128   ;;  %vm1122_vm8 = vcmask 31744   ;;  %vm1452_vm9 = vcmask 1039360   ;;  %vm1474_vm10 = vcmask 1031168  }
  0x29   :  { %1559 = vmax.xlane.f32.xlu0 %v1558_v11  ;;  %s3036_s15 = sld [smem:[#allocation10 + $0xe]]  ;;  %s3510_s9 = smov 108  }
  0x2a   :  { %s3082_s16 = sld [smem:[#allocation10 + $0x17]] }
  0x2b   :  { %s3039_s18 = sld [smem:[#allocation10 + $0x15]] }
  0x2c   :  { %1543 = vadd.xlane.f32.xlu1 %v3185_v10  ;;  %v1498_v10 = vld [vmem:[%s5056_s3] sm:$0xff]  ;;  %s3085_s19 = sld [smem:[#allocation10 + $0x1e]] }
  0x2d   :  { %s3042_s20 = sld [smem:[#allocation10 + $0x1c]] }
  0x2e   :  { %s3088_s23 = sld [smem:[#allocation10 + $0x25]] }
  0x2f   :  { %s3045_s24 = sld [smem:[#allocation10 + $0x23]] }
  0x30   :  { %1548 = vmax.xlane.f32.xlu1 %v1547_v12  ;;  %s3091_s27 = sld [smem:[#allocation10 + $0x2c]] }
  0x31   :  { %s3120_s5 = sld [smem:[#allocation10 + $0xb]] }
  0x32   :  { %s3123_s1 = sld [smem:[#allocation10 + $0x12]] }
  0x33   :  { %s3057_s8 = sld [smem:[#allocation10 + $0xf]] }
  0x34   :  { %s3126_s10 = sld [smem:[#allocation10 + $0x19]] }
  0x3f   :  { %798 = vrot.lane.b32.xlu0 %v3094_v29, %s3496_s17 }
  0x41   :  { %638 = vrot.lane.b32.xlu1 %v3072_v31, %s5095_s22  ;;  %s3269_s22 = sld [smem:[#allocation10 + $0x1f]] }
  0x43   :  { %1119 = vrot.lane.b32.xlu0 %v3138_v30, %s5092_s25  ;;  %v3667_v30 = vshrl.u32 %v49_v1, 7  ;;  %s3266_s25 = sld [smem:[#allocation10 + $0x18]] }
  0x45   :  { %958 = vrot.lane.b32.xlu1 %v3116_v32, %s3499_s28  ;;  %5102 = vst [vmem:[#allocation21_spill] sm:$0xff] %v3667_v30 }
  0x47   :  { %1441 = vrot.lane.b32.xlu0 %v3182_v33, %s3500_s30 }
  0x49   :  { %1280 = vrot.lane.b32.xlu1 %v3322_v34, %s3501_s7 }
  0x4b   :  { %2747 = vrot.lane.b32.xlu0 %v3322_v34, %s3501_s7  ;;  %s3509_s7 = smov 112  }
  0x4d   :  { %2427 = vrot.lane.b32.xlu1 %v3116_v32, %s3499_s28  ;;  %s3048_s28 = sld [smem:[#allocation10 + $0x2a]] }
  0x4f   :  { %2907 = vrot.lane.b32.xlu0 %v3182_v33, %s3500_s30  ;;  %s3054_s30 = sld [smem:[#allocation10 + $0x8]] }
  0xa6   :  { %v71_v13 = vpop.xlane.xlu0 %70 }
  0xa7   :  { %v72_v14 = vmul.f32 0.015625, %v71_v13 }
  0xa9   :  { %74 = vst.msk [vmem:[#allocation2 + $0x8] sm:$0xff] %vm61_vm2, %v72_v14 }
  0xaa   :  { %v59_v15 = vpop.xlane.xlu0 %58 }
  0xab   :  { %v60_v16 = vmul.f32 0.015625, %v59_v15 }
  0xad   :  { %v77_v17 = vpop.xlane.xlu1 %76  ;;  %62 = vst.msk [vmem:[#allocation2] sm:$0xff] %vm61_vm2, %v60_v16 }
  0xae   :  { %78 = vst.msk [vmem:[#allocation2 + $0x8] sm:$0xff] %vm66_vm3, %v77_v17  ;;  %v1555_v22 = vpop.xlane.xlu0 %1554 }
  0xaf   :  { %v1556_v24 = vmul.f32 0.015625, %v1555_v22 }
  0xb1   :  { %v65_v18 = vpop.xlane.xlu1 %64 }
  0xb2   :  { %67 = vst.msk [vmem:[#allocation2] sm:$0xff] %vm66_vm3, %v65_v18  ;;  %v1560_v26 = vpop.xlane.xlu0 %1559 }
  0xb5   :  { %v80_v19 = vld [vmem:[#allocation2 + $0x8] sm:$0xff]  ;;  %v1544_v23 = vpop.xlane.xlu1 %1543 }
  0xb6   :  { %3361 = vmatpush3.msra.mxu0 %v80_v19  ;;  %v1545_v25 = vmul.f32 0.015625, %v1544_v23  ;;  %1557 = vst.msk [vmem:[#allocation2 + $0x8] sm:$0xff] %vm61_vm2, %v1556_v24  ;;  %v3634_v48 = vpop.permute.xlu0 %798  ;;  %v3504_v23 = vmov 1983009808  }
  0xb7   :  { %3362 = vmatprep.subr.mxu0 %v3494_v8  ;;  %1561 = vst.msk [vmem:[#allocation2 + $0x8] sm:$0xff] %vm66_vm3, %v1560_v26  ;;  %5096 = vst [vmem:[#allocation15_spill] sm:$0xff] %v3634_v48  ;;  %v301_v24 = vunpack.c.l.s4 %v3504_v23 }
  0xb9   :  { %v79_v21 = vld [vmem:[#allocation2] sm:$0xff]  ;;  %v1549_v27 = vpop.xlane.xlu1 %1548  ;;  %v302_v29 = vunpack.c.0.s8 %v301_v24  ;;  %v725_v24 = vstv %s3085_s19  ;;  %s3135_s19 = sld [smem:[#allocation10 + $0x2e]] }
  0xba   :  { %3363 = vmatpush3.msra.mxu0 %v79_v21  ;;  %1546 = vst.msk [vmem:[#allocation2] sm:$0xff] %vm61_vm2, %v1545_v25  ;;  %v3638_v50 = vpop.permute.xlu0 %1119 }
  0xbb   :  { %3365 = vmatmul.mubr.msk.f32.vlgmr.msra.gmra.mxu0 %vm82_vm4, %v81_v20  ;;  %1550 = vst.msk [vmem:[#allocation2] sm:$0xff] %vm66_vm3, %v1549_v27  ;;  %5097 = vst [vmem:[#allocation16_spill] sm:$0xff] %v3638_v50  ;;  %vm468_vm3 = vcmask 850944  }
  0xbc   :  { %3381 = vmatprep.mubr.msk.f32.mxu0 %vm159_vm5, %v157_v28 }
  0xbd   :  { %v3636_v49 = vpop.permute.xlu1 %638 }
  0xbe   :  { %v1563_v39 = vld [vmem:[#allocation2 + $0x8] sm:$0xff]  ;;  %v3642_v52 = vpop.permute.xlu0 %1441 }
  0xc1   :  { %v3640_v51 = vpop.permute.xlu1 %958 }
  0xc2   :  { %v1562_v40 = vld [vmem:[#allocation2] sm:$0xff]  ;;  %v3646_v54 = vpop.permute.xlu0 %2747 }
  0xc3   :  { %5098 = vst [vmem:[#allocation17_spill] sm:$0xff] %v3646_v54 }
  0xc5   :  { %v3644_v53 = vpop.permute.xlu1 %1280 }
  0xc6   :  { %v3650_v56 = vpop.permute.xlu0 %2907 }
  0xc7   :  { %5100 = vst [vmem:[#allocation19_spill] sm:$0xff] %v3650_v56 }
  0xc9   :  { %v3648_v55 = vpop.permute.xlu1 %2427 }
  0xca   :  { %5099 = vst [vmem:[#allocation18_spill] sm:$0xff] %v3648_v55 }
 0x17b   :  { %v152_v35 = vpop.f32.mrf.mxu0 }
 0x17c   :  { %v156_v36 = vmax.f32 %v152_v35, 0.0 }
 0x17d   :  { %v3366_v37 = vpop.f32.mrf.mxu0 }
 0x17e   :  { %3367 = vmatprep.subr.msk.mxu1 %vm166_vm6, %v156_v36 }
 0x17f   :  { %3368 = vmatpush3.msk.msra.mxu1 %vm166_vm6, %v156_v36 }
 0x180   :  { %3370 = vmatmul.mubr.msk.f32.vlgmr.msra.gmra.mxu1 %vm159_vm5, %v158_v38  ;;  %3372 = vmatprep.subr.mxu1 %v3494_v8 }
 0x181   :  { %3373 = vmatpush3.msra.mxu1 %v1563_v39  ;;  %3376 = vmatprep.mubr.msk.f32.mxu1 %vm3495_vm1, %v3494_v8  ;;  %vm445_vm1 = vcmask 883712  }
 0x182   :  { %3374 = vmatprep.subr.mxu1 %v3494_v8 }
 0x183   :  { %3375 = vmatpush3.msra.mxu1 %v1562_v40 }
 0x184   :  { %3377 = vmatmul.mubr.msk.f32.vlgmr.msra.gmra.mxu1 %vm82_vm4, %v1564_v41  ;;  %vm961_vm4 = vcmask 23552  }
 0x240   :  { %v3371_v42 = vpop.f32.mrf.mxu1 }
 0x241   :  { %249 = vrot.lane.b32.xlu1 %v3371_v42, %s5093_s2 }
 0x242   :  { %v236_v43 = vpop.f32.mrf.mxu1 }
 0x243   :  { %247 = vrot.lane.b32.xlu0 %v236_v43, %s5093_s2 }
 0x244   :  { %v1634_v44 = vpop.f32.mrf.mxu1 }
 0x245   :  { %v1638_v45 = vmax.f32 %v1634_v44, 0.0 }
 0x246   :  { %v3378_v46 = vpop.f32.mrf.mxu1 }
 0x247   :  { %3379 = vmatprep.subr.msk.mxu0 %vm166_vm6, %v1638_v45 }
 0x248   :  { %3380 = vmatpush3.msk.msra.mxu0 %vm166_vm6, %v1638_v45  ;;  %vm1283_vm6 = vcmask 39936  }
 0x249   :  { %3382 = vmatmul.mubr.msk.f32.vlgmr.msra.gmra.mxu0 %vm159_vm5, %v158_v38 }
 0x2b3   :  { %v250_v57 = vpop.permute.xlu1 %249 }
 0x2b4   :  { %v254_v58 = vadd.f32 %v3371_v42, %v250_v57 }
 0x2b5   :  { %v248_v59 = vpop.permute.xlu0 %247 }
 0x2b6   :  { %v256_v60 = vmul.f32 0.5, %v254_v58  ;;  %v253_v61 = vadd.f32 %v248_v59, %v236_v43 }
 0x2b8   :  { %3414 = vtanh.f32 %v256_v60  ;;  %v255_v62 = vmul.f32 0.5, %v253_v61 }
 0x2ba   :  { %3416 = vtanh.f32 %v255_v62 }
 0x2c5   :  { %v3415_v63 = vpop.eup %3414 }
 0x2c6   :  { %v260_v2 = vmul.f32 0.5, %v3415_v63 }
 0x2c7   :  { %v3417_v4 = vpop.eup %3416 }
 0x2c8   :  { %v262_v5 = vadd.f32 0.5, %v260_v2  ;;  %v259_v6 = vmul.f32 0.5, %v3417_v4 }
 0x2ca   :  { %264 = vst.msk [vmem:[#allocation3 + $0x8] sm:$0xff] %vm61_vm2, %v262_v5  ;;  %v261_v7 = vadd.f32 0.5, %v259_v6 }
 0x2cc   :  { %263 = vst.msk [vmem:[#allocation3] sm:$0xff] %vm61_vm2, %v261_v7 }
 0x2d1   :  { %v3654_v9 = vld [vmem:[#allocation3 + $0x8] sm:$0xff] }
 0x2d2   :  { %5101 = vst [vmem:[#allocation20_spill] sm:$0xff] %v3654_v9  ;;  %280 = vperm.xlu1 %3410, %v3654_v9  }
 0x2d3   :  { %v266_v11 = vld [vmem:[#allocation3] sm:$0xff] }
 0x2d4   :  { %269 = vperm.xlu0 %3411, %v266_v11   ;;  %v1499_v12 = vmul.f32 %v1498_v10, %v266_v11  ;;  %v659_v10 = vstv %s3076_s12  ;;  %v347_v11 = vstv %s3033_s13  ;;  %s3060_s12 = sld [smem:[#allocation10 + $0x16]]  ;;  %s3511_s13 = smov 104  }
 0x2d6   :  { %1507 = vperm.xlu1 %3410, %v1499_v12  }
 0x309   :  { %v3383_v13 = vpop.f32.mrf.mxu0 }
 0x30a   :  { %1729 = vrot.lane.b32.xlu1 %v3383_v13, %s5093_s2 }
 0x30b   :  { %v1716_v14 = vpop.f32.mrf.mxu0 }
 0x30e   :  { %1727 = vrot.lane.b32.xlu1 %v1716_v14, %s5093_s2 }
 0x34d   :  { %v281_v15 = vpop.permute.xlu1 %280 }
 0x34e   :  { %v283_v17 = vmul.f32 %v3561_v0, %v281_v15 }
 0x34f   :  { %v270_v16 = vpop.permute.xlu0 %269 }
 0x350   :  { %v272_v18 = vmul.f32 %v270_v16, %v3568_v3  ;;  %v3670_v3 = vsub.s32 %v302_v29, %v3667_v30  ;;  %v681_v16 = vstv %s3079_s14  ;;  %v439_v29 = vstv %s3045_s24  ;;  %s3129_s14 = sld [smem:[#allocation10 + $0x20]] }
 0x351   :  { %v3676_v1 = vpop.permute.xlu1 %1507  ;;  %s3098_s24 = sld [smem:[#allocation10 + $0xa]] }
 0x352   :  { %v274_v19 = vmax.f32 %v272_v18, -3e+38  ;;  %v284_v20 = vadd.f32 %v283_v17, %v272_v18  ;;  %5103 = vst [vmem:[#allocation22_spill] sm:$0xff] %v3676_v1 }
 0x354   :  { %v285_v21 = vmax.f32 %v274_v19, %v283_v17  ;;  %v286_v22 = vrot.slane %v284_v20, 4  ;;  %v370_v17 = vstv %s3036_s15  ;;  %s3063_s15 = sld [smem:[#allocation10 + $0x1d]] }
 0x356   :  { %v287_v25 = vadd.f32 %v286_v22, %v284_v20  ;;  %v292_v26 = vrot.slane %v285_v21, 4  ;;  %v703_v20 = vstv %s3082_s16  ;;  %s3132_s16 = sld [smem:[#allocation10 + $0x27]] }
 0x358   :  { %v288_v27 = vrot.slane %v287_v25, 2  ;;  %v293_v28 = vmax.f32 %v285_v21, %v292_v26  ;;  %v393_v21 = vstv %s3039_s18  ;;  %s3066_s18 = sld [smem:[#allocation10 + $0x24]] }
 0x35a   :  { %v289_v8 = vadd.f32 %v288_v27, %v287_v25  ;;  %v294_v31 = vrot.slane %v293_v28, 2  ;;  %v416_v25 = vstv %s3042_s20  ;;  %s3069_s20 = sld [smem:[#allocation10 + $0x2b]] }
 0x35c   :  { %v295_v32 = vmax.f32 %v293_v28, %v294_v31  ;;  %v290_v0 = vrot.slane %v289_v8, 1  ;;  %v747_v28 = vstv %s3088_s23  ;;  %s3164_s23 = sld [smem:[#allocation10 + $0xd]] }
 0x35e   :  { %v296_v33 = vrot.slane %v295_v32, 1  ;;  %v291_v34 = vadd.f32 %v290_v0, %v289_v8  ;;  %v462_v0 = vstv %s3048_s28  ;;  %s3101_s28 = sld [smem:[#allocation10 + $0x11]] }
 0x360   :  { %v297_v35 = vmax.f32 %v295_v32, %v296_v33  ;;  %v298_v36 = vmul.f32 0.0625, %v291_v34  ;;  %v769_v32 = vstv %s3091_s27  ;;  %s3167_s27 = sld [smem:[#allocation10 + $0x14]] }
 0x362   :  { %v324_v37 = vrot.slane %v297_v35, %v3670_v3  ;;  %v306_v38 = vrot.slane %v298_v36, %v3670_v3  ;;  %v979_v35 = vstv %s3120_s5  ;;  %v499_v36 = vstv %s3054_s30  ;;  %s3170_s5 = sld [smem:[#allocation10 + $0x1b]] }
 0x363   :  { %s3104_s30 = sld [smem:[#allocation10 + $0x18]] }
 0x364   :  { %325 = vrot.lane.b32.xlu0 %v324_v37, %s3505_s11  ;;  %307 = vrot.lane.b32.xlu1 %v306_v38, %s3505_s11 }
 0x37c   :  { %v1730_v39 = vpop.permute.xlu1 %1729 }
 0x37d   :  { %v1734_v40 = vadd.f32 %v3383_v13, %v1730_v39  ;;  %v1001_v39 = vstv %s3123_s1  ;;  %s3173_s1 = sld [smem:[#allocation10 + $0x22]] }
 0x37f   :  { %v1736_v41 = vmul.f32 0.5, %v1734_v40  ;;  %v521_v40 = vstv %s3057_s8  ;;  %s3107_s8 = sld [smem:[#allocation10 + $0x1f]] }
 0x380   :  { %v1728_v42 = vpop.permute.xlu1 %1727 }
 0x381   :  { %3418 = vtanh.f32 %v1736_v41  ;;  %v1733_v43 = vadd.f32 %v1728_v42, %v1716_v14 }
 0x383   :  { %v1735_v44 = vmul.f32 0.5, %v1733_v43  ;;  %v1023_v43 = vstv %s3126_s10  ;;  %s3176_s10 = sld [smem:[#allocation10 + $0x29]] }
 0x385   :  { %3420 = vtanh.f32 %v1735_v44  ;;  %v543_v44 = vstv %s3060_s12  ;;  %s3110_s12 = sld [smem:[#allocation10 + $0x26]] }
 0x38e   :  { %v3419_v45 = vpop.eup %3418 }
 0x38f   :  { %v1740_v46 = vmul.f32 0.5, %v3419_v45 }
 0x391   :  { %v1742_v47 = vadd.f32 0.5, %v1740_v46 }
 0x392   :  { %v3421_v57 = vpop.eup %3420 }
 0x393   :  { %1744 = vst.msk [vmem:[#allocation3 + $0x8] sm:$0xff] %vm61_vm2, %v1742_v47  ;;  %v1739_v58 = vmul.f32 0.5, %v3421_v57  ;;  %v1045_v47 = vstv %s3129_s14  ;;  %v565_v57 = vstv %s3063_s15  ;;  %s3179_s14 = sld [smem:[#allocation10 + $0x30]] }
 0x394   :  { %s3113_s15 = sld [smem:[#allocation10 + $0x2d]] }
 0x395   :  { %v1741_v59 = vadd.f32 0.5, %v1739_v58 }
 0x397   :  { %1743 = vst.msk [vmem:[#allocation3] sm:$0xff] %vm61_vm2, %v1741_v59 }
 0x39a   :  { %v1756_v60 = vld [vmem:[#allocation3 + $0x8] sm:$0xff] }
 0x39b   :  { %1759 = vperm.xlu0 %3411, %v1756_v60   ;;  %v1067_v60 = vstv %s3132_s16  ;;  %s3034_s16 = sld [smem:[#allocation10 + $0x38]] }
 0x39e   :  { %v1746_v61 = vld [vmem:[#allocation3] sm:$0xff] }
 0x39f   :  { %1749 = vperm.xlu1 %3410, %v1746_v61   ;;  %v587_v61 = vstv %s3066_s18  ;;  %s3142_s18 = sld [smem:[#allocation10 + $0xc]] }
 0x3d6   :  { %v326_v62 = vpop.permute.xlu0 %325  ;;  %v308_v63 = vpop.permute.xlu1 %307 }
 0x3d7   :  { %v327_v4 = vrot.slane %v326_v62, 6  ;;  %v309_v5 = vrot.slane %v308_v63, 6 }
 0x3d9   :  { %v328_v6 = vsel %vm310_vm11, %v327_v4, %v326_v62  ;;  %v311_v7 = vsel %vm310_vm11, %v309_v5, %v308_v63  ;;  %v1090_v5 = vstv %s3135_s19  ;;  %s3037_s19 = sld [smem:[#allocation10 + $0x3f]] }
 0x3da   :  { %330 = vst.msk [vmem:[#allocation4 + $0x1] sm:$0x5] %vm3680_vm12, %v328_v6  ;;  %316 = vst.msk [vmem:[#allocation4] sm:$0x5] %vm3680_vm12, %v311_v7  ;;  %v609_v6 = vstv %s3069_s20  ;;  %s3145_s20 = sld [smem:[#allocation10 + $0x13]] }
 0x3e1   :  { %v3690_v12 = vld [vmem:[#allocation4] sm:$0xf] }
 0x3e2   :  { %v3692_v13 = vld [vmem:[#allocation4] sm:$0xf]  ;;  %v348_v15 = vmul.f32 %v347_v11, %v3690_v12  ;;  %v371_v19 = vmul.f32 %v370_v17, %v3690_v12  ;;  %v394_v23 = vmul.f32 %v393_v21, %v3690_v12  ;;  %v417_v27 = vmul.f32 %v416_v25, %v3690_v12 }
 0x3e3   :  { %v660_v14 = vmul.f32 %v659_v10, %v3692_v13  ;;  %v682_v18 = vmul.f32 %v681_v16, %v3692_v13  ;;  %v704_v22 = vmul.f32 %v703_v20, %v3692_v13  ;;  %v726_v26 = vmul.f32 %v725_v24, %v3692_v13  ;;  %v3736_v4 = vld [vmem:[#allocation4] sm:$0xf] }
 0x3e4   :  { %350 = vrot.lane.b32.xlu1 %v348_v15, %s3506_s21  ;;  %v748_v8 = vmul.f32 %v747_v28, %v3692_v13  ;;  %v440_v31 = vmul.f32 %v439_v29, %v3690_v12  ;;  %v770_v33 = vmul.f32 %v769_v32, %v3692_v13  ;;  %v463_v34 = vmul.f32 %v462_v0, %v3690_v12  ;;  %v3742_v11 = vld [vmem:[#allocation4] sm:$0xf] }
 0x3e5   :  { %662 = vrot.lane.b32.xlu0 %v660_v14, %s3506_s21  ;;  %v980_v37 = vmul.f32 %v979_v35, %v3690_v12  ;;  %v500_v38 = vmul.f32 %v499_v36, %v3690_v12  ;;  %v1002_v41 = vmul.f32 %v1001_v39, %v3690_v12  ;;  %v522_v42 = vmul.f32 %v521_v40, %v3690_v12 }
 0x3e6   :  { %v1024_v45 = vmul.f32 %v1023_v43, %v3690_v12  ;;  %v544_v46 = vmul.f32 %v543_v44, %v3690_v12  ;;  %v1046_v58 = vmul.f32 %v1045_v47, %v3690_v12  ;;  %v566_v59 = vmul.f32 %v565_v57, %v3690_v12 }
 0x3e7   :  { %v1068_v62 = vmul.f32 %v1067_v60, %v3690_v12  ;;  %v588_v63 = vmul.f32 %v587_v61, %v3690_v12  ;;  %v1091_v7 = vmul.f32 %v1090_v5, %v3736_v4  ;;  %v610_v10 = vmul.f32 %v609_v6, %v3690_v12 }
 0x3e8   :  { %373 = vrot.lane.b32.xlu1 %v371_v19, %s3507_s26  ;;  %v1301_v14 = vstv %s3164_s23  ;;  %v819_v15 = vstv %s3098_s24  ;;  %v841_v19 = vstv %s3101_s28  ;;  %s3040_s23 = sld [smem:[#allocation10 + $0x46]] }
 0x3e9   :  { %684 = vrot.lane.b32.xlu0 %v682_v18, %s3507_s26  ;;  %v1302_v16 = vmul.f32 %v1301_v14, %v3692_v13  ;;  %v820_v17 = vmul.f32 %v819_v15, %v3742_v11  ;;  %v1323_v18 = vstv %s3167_s27  ;;  %v842_v21 = vmul.f32 %v841_v19, %v3742_v11  ;;  %s3148_s24 = sld [smem:[#allocation10 + $0x1a]] }
 0x3ea   :  { %v1324_v20 = vmul.f32 %v1323_v18, %v3692_v13  ;;  %v929_v35 = vstv %s3113_s15  ;;  %v357_v36 = vstv %s3034_s16  ;;  %v1140_v40 = vstv %s3142_s18  ;;  %s3043_s27 = sld [smem:[#allocation10 + $0x4d]] }
 0x3eb   :  { %v358_v39 = vmul.f32 %v357_v36, %v3690_v12  ;;  %v1141_v43 = vmul.f32 %v1140_v40, %v3690_v12  ;;  %s3151_s28 = sld [smem:[#allocation10 + $0x21]] }
 0x3ec   :  { %396 = vrot.lane.b32.xlu1 %v394_v23, %s3508_s29  ;;  %v863_v23 = vstv %s3104_s30  ;;  %s3154_s30 = sld [smem:[#allocation10 + $0x28]] }
 0x3ed   :  { %706 = vrot.lane.b32.xlu0 %v704_v22, %s3508_s29  ;;  %v1345_v22 = vstv %s3170_s5  ;;  %v864_v25 = vmul.f32 %v863_v23, %v3742_v11  ;;  %s3046_s5 = sld [smem:[#allocation10 + $0x54]] }
 0x3ee   :  { %v1346_v24 = vmul.f32 %v1345_v22, %v3692_v13  ;;  %s3080_s15 = sld [smem:[#allocation10 + $0x41]] }
 0x3ef   :  { %s3061_s16 = sld [smem:[#allocation10 + $0x47]] }
 0x3f0   :  { %419 = vrot.lane.b32.xlu1 %v417_v27, %s3509_s7  ;;  %v885_v27 = vstv %s3107_s8  ;;  %v426_v60 = vstv %s3043_s27  ;;  %s3781_s8 = sld [smem:[#allocation10 + $0x2f]] }
 0x3f1   :  { %728 = vrot.lane.b32.xlu0 %v726_v26, %s3509_s7  ;;  %v1367_v26 = vstv %s3173_s1  ;;  %v886_v29 = vmul.f32 %v885_v27, %v3742_v11  ;;  %s3049_s1 = sld [smem:[#allocation10 + $0x5b]]  ;;  %v1206_v5 = vstv %s3151_s28 }
 0x3f2   :  { %v1368_v28 = vmul.f32 %v1367_v26, %v3692_v13  ;;  %v1228_v15 = vstv %s3154_s30  ;;  %s3083_s18 = sld [smem:[#allocation10 + $0x48]] }
 0x3f3   :  { %v449_v6 = vstv %s3046_s5  ;;  %v1229_v18 = vmul.f32 %v1228_v15, %v3690_v12  ;;  %s3070_s27 = sld [smem:[#allocation10 + $0x5c]] }
 0x3f4   :  { %442 = vrot.lane.b32.xlu1 %v440_v31, %s3510_s9  ;;  %v907_v31 = vstv %s3110_s12  ;;  %s3077_s12 = sld [smem:[#allocation10 + $0x3a]]  ;;  %v450_v14 = vmul.f32 %v449_v6, %v3690_v12 }
 0x3f5   :  { %750 = vrot.lane.b32.xlu0 %v748_v8, %s3510_s9  ;;  %v1389_v8 = vstv %s3176_s10  ;;  %v908_v0 = vmul.f32 %v907_v31, %v3742_v11  ;;  %s3055_s10 = sld [smem:[#allocation10 + $0x39]] }
 0x3f6   :  { %v1390_v32 = vmul.f32 %v1389_v8, %v3692_v13  ;;  %s3092_s28 = sld [smem:[#allocation10 + $0x5d]] }
 0x3f7   :  { %s3813_s5 = sld [smem:[#allocation10 + $0x3b]] }
 0x3f8   :  { %465 = vrot.lane.b32.xlu1 %v463_v34, %s3511_s13  ;;  %v1412_v34 = vstv %s3179_s14  ;;  %s3058_s14 = sld [smem:[#allocation10 + $0x40]] }
 0x3f9   :  { %772 = vrot.lane.b32.xlu0 %v770_v33, %s3511_s13  ;;  %v3764_v33 = vld [vmem:[#allocation4] sm:$0xf]  ;;  %s3121_s30 = sld [smem:[#allocation10 + $0x3c]] }
 0x3fa   :  { %v668_v23 = vstv %s3077_s12  ;;  %s3834_s12 = sld [smem:[#allocation10 + $0x4a]] }
 0x3fb   :  { %v508_v22 = vstv %s3055_s10  ;;  %v669_v27 = vmul.f32 %v668_v23, %v3692_v13  ;;  %s3831_s10 = sld [smem:[#allocation10 + $0x49]] }
 0x3fc   :  { %502 = vrot.lane.b32.xlu1 %v500_v38, %s3506_s21  ;;  %v930_v38 = vmul.f32 %v929_v35, %v3742_v11  ;;  %v509_v26 = vmul.f32 %v508_v22, %v3690_v12  ;;  %v712_v35 = vstv %s3083_s18  ;;  %s3854_s18 = sld [smem:[#allocation10 + $0x58]] }
 0x3fd   :  { %982 = vrot.lane.b32.xlu0 %v980_v37, %s3506_s21  ;;  %v1413_v37 = vmul.f32 %v1412_v34, %v3764_v33  ;;  %v3078_v31 = vrot.slane %v669_v27, 9  ;;  %v552_v34 = vstv %s3061_s16  ;;  %v828_v15 = vstv %s3813_s5  ;;  %s3852_s16 = sld [smem:[#allocation10 + $0x57]] }
 0x3fe   :  { %v3056_v8 = vrot.slane %v509_v26, 9  ;;  %v829_v22 = vmul.f32 %v828_v15, %v3742_v11  ;;  %s3051_s5 = sld [smem:[#allocation10 + $0x1]] }
 0x400   :  { %524 = vrot.lane.b32.xlu1 %v522_v42, %s3507_s26  ;;  %v3035_v42 = vrot.slane %v358_v39, 9  ;;  %v713_v39 = vmul.f32 %v712_v35, %v3692_v13 }
 0x401   :  { %1004 = vrot.lane.b32.xlu0 %v1002_v41, %s3507_s26  ;;  %v380_v41 = vstv %s3037_s19  ;;  %s3064_s19 = sld [smem:[#allocation10 + $0x4e]] }
 0x402   :  { %v381_v44 = vmul.f32 %v380_v41, %v3690_v12 }
 0x404   :  { %546 = vrot.lane.b32.xlu1 %v544_v46, %s3508_s29  ;;  %v403_v46 = vstv %s3040_s23  ;;  %v3038_v47 = vrot.slane %v381_v44, 9  ;;  %s3067_s23 = sld [smem:[#allocation10 + $0x55]] }
 0x405   :  { %1026 = vrot.lane.b32.xlu0 %v1024_v45, %s3508_s29  ;;  %v1162_v45 = vstv %s3145_s20  ;;  %s3086_s20 = sld [smem:[#allocation10 + $0x4f]] }
 0x406   :  { %v1163_v57 = vmul.f32 %v1162_v45, %v3690_v12 }
 0x407   :  { %v574_v40 = vstv %s3064_s19  ;;  %s3872_s19 = sld [smem:[#allocation10 + $0x5e]] }
 0x408   :  { %568 = vrot.lane.b32.xlu1 %v566_v59, %s3509_s7  ;;  %v1184_v59 = vstv %s3148_s24  ;;  %s3089_s24 = sld [smem:[#allocation10 + $0x56]]  ;;  %v575_v44 = vmul.f32 %v574_v40, %v3690_v12 }
 0x409   :  { %1048 = vrot.lane.b32.xlu0 %v1046_v58, %s3509_s7  ;;  %v404_v58 = vmul.f32 %v403_v46, %v3690_v12 }
 0x40a   :  { %v596_v46 = vstv %s3067_s23  ;;  %s3880_s23 = sld [smem:[#allocation10 + $0x3d]] }
 0x40b   :  { %v3041_v61 = vrot.slane %v404_v58, 9  ;;  %v734_v41 = vstv %s3086_s20  ;;  %s3876_s20 = sld [smem:[#allocation10 + $0x5f]] }
 0x40c   :  { %590 = vrot.lane.b32.xlu1 %v588_v63, %s3510_s9  ;;  %v427_v63 = vmul.f32 %v426_v60, %v3690_v12  ;;  %v735_v45 = vmul.f32 %v734_v41, %v3692_v13 }
 0x40d   :  { %1070 = vrot.lane.b32.xlu0 %v1068_v62, %s3510_s9  ;;  %v1185_v62 = vmul.f32 %v1184_v59, %v3690_v12  ;;  %v597_v59 = vmul.f32 %v596_v46, %v3690_v12  ;;  %v938_v15 = vstv %s3872_s19  ;;  %s3978_s19 = sld [smem:[#allocation10 + $0x60]] }
 0x40e   :  { %v3087_v58 = vrot.slane %v735_v45, 9 }
 0x40f   :  { %v3068_v6 = vrot.slane %v597_v59, 9 }
 0x410   :  { %612 = vrot.lane.b32.xlu1 %v610_v10, %s3511_s13  ;;  %v1207_v10 = vmul.f32 %v1206_v5, %v3690_v12 }
 0x411   :  { %1093 = vrot.lane.b32.xlu0 %v1091_v7, %s3511_s13  ;;  %v3044_v7 = vrot.slane %v427_v63, 9 }
 0x414   :  { %822 = vrot.lane.b32.xlu1 %v820_v17, %s3506_s21  ;;  %v3047_v17 = vrot.slane %v450_v14, 9 }
 0x415   :  { %1304 = vrot.lane.b32.xlu0 %v1302_v16, %s3506_s21  ;;  %v472_v16 = vstv %s3049_s1  ;;  %s3819_s1 = sld [smem:[#allocation10 + $0x42]] }
 0x416   :  { %v473_v19 = vmul.f32 %v472_v16, %v3690_v12  ;;  %v3825_v63 = vpop.permute.xlu0 %1759  ;;  %v988_v16 = vstv %s3121_s30  ;;  %s3096_s30 = sld [smem:[#allocation10 + $0x34]] }
 0x417   :  { %v989_v23 = vmul.f32 %v988_v16, %v3690_v12  ;;  %v1099_v16 = vstv %s3876_s20  ;;  %s3980_s20 = sld [smem:[#allocation10 + $0x61]] }
 0x418   :  { %844 = vrot.lane.b32.xlu1 %v842_v21, %s3507_s26  ;;  %v1251_v21 = vstv %s3781_s8  ;;  %s3821_s8 = sld [smem:[#allocation10 + $0x43]] }
 0x419   :  { %1326 = vrot.lane.b32.xlu0 %v1324_v20, %s3507_s26  ;;  %v3793_v20 = vld [vmem:[#allocation4] sm:$0xf] }
 0x41a   :  { %v3827_v5 = vpop.permute.xlu1 %1749 }
 0x41c   :  { %866 = vrot.lane.b32.xlu1 %v864_v25, %s3508_s29  ;;  %v1252_v25 = vmul.f32 %v1251_v21, %v3793_v20 }
 0x41d   :  { %1348 = vrot.lane.b32.xlu0 %v1346_v24, %s3508_s29  ;;  %v3050_v24 = vrot.slane %v473_v19, 9 }
 0x420   :  { %888 = vrot.lane.b32.xlu1 %v886_v29, %s3509_s7  ;;  %v690_v29 = vstv %s3080_s15  ;;  %s3848_s15 = sld [smem:[#allocation10 + $0x51]] }
 0x421   :  { %1370 = vrot.lane.b32.xlu0 %v1368_v28, %s3509_s7  ;;  %v530_v28 = vstv %s3058_s14  ;;  %s3844_s14 = sld [smem:[#allocation10 + $0x50]] }
 0x424   :  { %910 = vrot.lane.b32.xlu1 %v908_v0, %s3510_s9  ;;  %v691_v0 = vmul.f32 %v690_v29, %v3692_v13  ;;  %v3122_v29 = vrot.slane %v989_v23, 9  ;;  %v5070_v23 = vstv %s3880_s23 }
 0x425   :  { %1392 = vrot.lane.b32.xlu0 %v1390_v32, %s3510_s9  ;;  %v531_v32 = vmul.f32 %v530_v28, %v3690_v12  ;;  %v3100_v28 = vrot.slane %v829_v22, 9 }
 0x426   :  { %v1054_v41 = vstv %s3848_s15  ;;  %s3940_s15 = sld [smem:[#allocation10 + $0x53]] }
 0x427   :  { %v3059_v36 = vrot.slane %v531_v32, 9  ;;  %v872_v32 = vstv %s3831_s10  ;;  %v894_v40 = vstv %s3844_s14  ;;  %s3924_s10 = sld [smem:[#allocation10 + $0x4b]] }
 0x428   :  { %932 = vrot.lane.b32.xlu1 %v930_v38, %s3511_s13  ;;  %v553_v38 = vmul.f32 %v552_v34, %v3690_v12  ;;  %s3930_s14 = sld [smem:[#allocation10 + $0x52]] }
 0x429   :  { %1415 = vrot.lane.b32.xlu0 %v1413_v37, %s3511_s13  ;;  %v3081_v37 = vrot.slane %v691_v0, 9  ;;  %v1032_v0 = vstv %s3834_s12  ;;  %s3926_s12 = sld [smem:[#allocation10 + $0x4c]] }
 0x42c   :  { %1143 = vrot.lane.b32.xlu1 %v1141_v43, %s3506_s21  ;;  %v3084_v43 = vrot.slane %v713_v39, 9  ;;  %v1033_v39 = vmul.f32 %v1032_v0, %v3690_v12 }
 0x42d   :  { %362 = vrot.lane.b32.xlu0 %v3035_v42, %s3506_s21  ;;  %v3062_v42 = vrot.slane %v553_v38, 9  ;;  %v873_v38 = vmul.f32 %v872_v32, %v3742_v11  ;;  %v1150_v32 = vmul.f32 %v5070_v23, %v3690_v12  ;;  %v487_v23 = vstv %s3051_s5  ;;  %s4145_s5 = sld [smem:[#allocation10 + $0x5]] }
 0x42f   :  { %v3106_v46 = vrot.slane %v873_v38, 9 }
 0x430   :  { %1165 = vrot.lane.b32.xlu1 %v1163_v57, %s3507_s26  ;;  %v3065_v57 = vrot.slane %v575_v44, 9 }
 0x431   :  { %385 = vrot.lane.b32.xlu0 %v3038_v47, %s3507_s26  ;;  %v756_v47 = vstv %s3089_s24  ;;  %s3884_s24 = sld [smem:[#allocation10 + $0x3e]] }
 0x432   :  { %v757_v60 = vmul.f32 %v756_v47, %v3692_v13  ;;  %v3128_v47 = vrot.slane %v1033_v39, 9 }
 0x434   :  { %1187 = vrot.lane.b32.xlu1 %v1185_v62, %s3508_s29  ;;  %v778_v62 = vstv %s3092_s28  ;;  %s3898_s28 = sld [smem:[#allocation10 + $0x45]] }
 0x435   :  { %408 = vrot.lane.b32.xlu0 %v3041_v61, %s3508_s29  ;;  %v618_v61 = vstv %s3070_s27  ;;  %v779_v14 = vmul.f32 %v778_v62, %v3692_v13  ;;  %s3894_s27 = sld [smem:[#allocation10 + $0x44]] }
 0x437   :  { %v3093_v21 = vrot.slane %v779_v14, 9 }
 0x438   :  { %1209 = vrot.lane.b32.xlu1 %v1207_v10, %s3509_s7  ;;  %v619_v10 = vmul.f32 %v618_v61, %v3690_v12  ;;  %v3426_v61 = vld [vmem:[%s5053_s0 + $0x10] sm:$0xff] }
 0x439   :  { %431 = vrot.lane.b32.xlu0 %v3044_v7, %s3509_s7  ;;  %v3090_v7 = vrot.slane %v757_v60, 9  ;;  %v1752_v62 = vmul.f32 %v3426_v61, %v3827_v5 }
 0x43a   :  { %v3071_v19 = vrot.slane %v619_v10, 9 }
 0x43c   :  { %1231 = vrot.lane.b32.xlu1 %v1229_v18, %s3510_s9 }
 0x43d   :  { %454 = vrot.lane.b32.xlu0 %v3047_v17, %s3510_s9 }
 0x440   :  { %1254 = vrot.lane.b32.xlu1 %v1252_v25, %s3511_s13  ;;  %v1010_v25 = vstv %s3821_s8  ;;  %s4129_s8 = sld [smem:[#allocation10 + $0x37]] }
 0x441   :  { %477 = vrot.lane.b32.xlu0 %v3050_v24, %s3511_s13  ;;  %v850_v24 = vstv %s3819_s1  ;;  %s4096_s1 = sld [smem:[#allocation10 + $0x3]] }
 0x444   :  { %673 = vrot.lane.b32.xlu1 %v3078_v31, %s3506_s21  ;;  %v1011_v31 = vmul.f32 %v1010_v25, %v3690_v12  ;;  %v1754_v25 = vmax.f32 %v1752_v62, -3e+38 }
 0x445   :  { %513 = vrot.lane.b32.xlu0 %v3056_v8, %s3506_s21  ;;  %v851_v8 = vmul.f32 %v850_v24, %v3742_v11  ;;  %v5069_v24 = vstv %s3884_s24 }
 0x446   :  { %v1311_v0 = vmul.f32 %v5069_v24, %v3692_v13 }
 0x448   :  { %695 = vrot.lane.b32.xlu1 %v3081_v37, %s3507_s26  ;;  %v3125_v37 = vrot.slane %v1011_v31, 9  ;;  %v1100_v31 = vmul.f32 %v1099_v16, %v3736_v4  ;;  %v5067_v4 = vstv %s3898_s28  ;;  %v3166_v61 = vrot.slane %v1311_v0, 9 }
 0x449   :  { %535 = vrot.lane.b32.xlu0 %v3059_v36, %s3507_s26  ;;  %v3103_v36 = vrot.slane %v851_v8, 9  ;;  %v5061_v16 = vstv %s3930_s14 }
 0x44c   :  { %717 = vrot.lane.b32.xlu1 %v3084_v43, %s3508_s29  ;;  %v1076_v43 = vstv %s3854_s18  ;;  %s3956_s18 = sld [smem:[#allocation10 + $0x5a]] }
 0x44d   :  { %557 = vrot.lane.b32.xlu0 %v3062_v42, %s3508_s29  ;;  %v916_v42 = vstv %s3852_s16  ;;  %v1077_v60 = vmul.f32 %v1076_v43, %v3690_v12  ;;  %s3948_s16 = sld [smem:[#allocation10 + $0x59]] }
 0x44e   :  { %v917_v59 = vmul.f32 %v916_v42, %v3742_v11  ;;  %v3137_v42 = vrot.slane %v1100_v31, 9  ;;  %v1216_v31 = vmul.f32 %v5061_v16, %v3690_v12  ;;  %v5063_v16 = vstv %s3980_s20 }
 0x44f   :  { %v3134_v22 = vrot.slane %v1077_v60, 9  ;;  %v3144_v60 = vrot.slane %v1150_v32, 9 }
 0x450   :  { %739 = vrot.lane.b32.xlu1 %v3087_v58, %s3509_s7  ;;  %v1055_v58 = vmul.f32 %v1054_v41, %v3690_v12  ;;  %v3112_v5 = vrot.slane %v917_v59, 9 }
 0x451   :  { %579 = vrot.lane.b32.xlu0 %v3065_v57, %s3509_s7  ;;  %v895_v57 = vmul.f32 %v894_v40, %v3742_v11 }
 0x452   :  { %v3131_v14 = vrot.slane %v1055_v58, 9 }
 0x453   :  { %v3109_v10 = vrot.slane %v895_v57, 9  ;;  %v5062_v0 = vstv %s3948_s16 }
 0x454   :  { %761 = vrot.lane.b32.xlu1 %v3090_v7, %s3510_s9 }
 0x455   :  { %601 = vrot.lane.b32.xlu0 %v3068_v6, %s3510_s9 }
 0x456   :  { %v3840_v18 = vpop.permute.xlu1 %350 }
 0x457   :  { %v3838_v17 = vpop.permute.xlu0 %662  ;;  %5106 = vst [vmem:[#allocation23_spill] sm:$0xff] %v3840_v18  ;;  %v807_v18 = vstv %s4096_s1  ;;  %s3304_s1 = sld [smem:[#allocation10 + $0xc]] }
 0x458   :  { %783 = vrot.lane.b32.xlu1 %v3093_v21, %s3511_s13 }
 0x459   :  { %623 = vrot.lane.b32.xlu0 %v3071_v19, %s3511_s13  ;;  %v3427_v19 = vld [vmem:[%s5053_s0 + $0x18] sm:$0xff] }
 0x45a   :  { %v3858_v27 = vpop.permute.xlu1 %373  ;;  %v1762_v21 = vmul.f32 %v3427_v19, %v3825_v63  ;;  %v939_v63 = vmul.f32 %v938_v15, %v3742_v11  ;;  %v5060_v19 = vstv %s3940_s15 }
 0x45b   :  { %v3856_v26 = vpop.permute.xlu0 %684  ;;  %5107 = vst [vmem:[#allocation24_spill] sm:$0xff] %v3858_v27  ;;  %v1377_v32 = vmul.f32 %v5060_v19, %v3692_v13  ;;  %v3153_v19 = vrot.slane %v1216_v31, 9  ;;  %v1422_v31 = vmul.f32 %v5063_v16, %v3764_v33 }
 0x45c   :  { %993 = vrot.lane.b32.xlu1 %v3122_v29, %s3506_s21  ;;  %v3115_v41 = vrot.slane %v939_v63, 9 }
 0x45d   :  { %833 = vrot.lane.b32.xlu0 %v3100_v28, %s3506_s21  ;;  %v1763_v28 = vadd.f32 %v1762_v21, %v1752_v62  ;;  %v5066_v62 = vstv %s3924_s10 }
 0x45e   :  { %v3868_v35 = vpop.permute.xlu1 %396 }
 0x45f   :  { %v3866_v34 = vpop.permute.xlu0 %706  ;;  %5108 = vst [vmem:[#allocation25_spill] sm:$0xff] %v3868_v35  ;;  %v1765_v38 = vrot.slane %v1763_v28, 4 }
 0x460   :  { %1015 = vrot.lane.b32.xlu1 %v3125_v37, %s3507_s26  ;;  %v1764_v37 = vmax.f32 %v1754_v25, %v1762_v21 }
 0x461   :  { %855 = vrot.lane.b32.xlu0 %v3103_v36, %s3507_s26  ;;  %v5068_v36 = vstv %s3894_s27 }
 0x462   :  { %v3888_v45 = vpop.permute.xlu1 %419  ;;  %v1172_v43 = vmul.f32 %v5068_v36, %v3690_v12  ;;  %v1771_v57 = vrot.slane %v1764_v37, 4 }
 0x463   :  { %v3886_v44 = vpop.permute.xlu0 %728  ;;  %5109 = vst [vmem:[#allocation26_spill] sm:$0xff] %v3888_v45 }
 0x464   :  { %1037 = vrot.lane.b32.xlu1 %v3128_v47, %s3508_s29  ;;  %v1766_v47 = vadd.f32 %v1765_v38, %v1763_v28  ;;  %v1194_v28 = vmul.f32 %v5066_v62, %v3690_v12 }
 0x465   :  { %877 = vrot.lane.b32.xlu0 %v3106_v46, %s3508_s29  ;;  %v1333_v46 = vmul.f32 %v5067_v4, %v3692_v13 }
 0x466   :  { %v3906_v7 = vpop.permute.xlu1 %442  ;;  %v1767_v21 = vrot.slane %v1766_v47, 2 }
 0x467   :  { %v3904_v6 = vpop.permute.xlu0 %750  ;;  %5110 = vst [vmem:[#allocation27_spill] sm:$0xff] %v3906_v7  ;;  %v3169_v15 = vrot.slane %v1333_v46, 9  ;;  %v3150_v46 = vrot.slane %v1194_v28, 9  ;;  %v3175_v28 = vrot.slane %v1377_v32, 9  ;;  %v488_v7 = vmul.f32 %v487_v23, %v3690_v12 }
 0x468   :  { %1059 = vrot.lane.b32.xlu1 %v3131_v14, %s3509_s7  ;;  %v3147_v14 = vrot.slane %v1172_v43, 9  ;;  %v1768_v38 = vadd.f32 %v1767_v21, %v1766_v47 }
 0x469   :  { %899 = vrot.lane.b32.xlu0 %v3109_v10, %s3509_s7  ;;  %v5065_v10 = vstv %s3926_s12 }
 0x46a   :  { %v3920_v8 = vpop.permute.xlu1 %465  ;;  %v1355_v63 = vmul.f32 %v5065_v10, %v3692_v13  ;;  %v1769_v47 = vrot.slane %v1768_v38, 1 }
 0x46b   :  { %v3918_v29 = vpop.permute.xlu0 %772  ;;  %5111 = vst [vmem:[#allocation28_spill] sm:$0xff] %v3920_v8 }
 0x46c   :  { %1081 = vrot.lane.b32.xlu1 %v3134_v22, %s3510_s9 }
 0x46d   :  { %921 = vrot.lane.b32.xlu0 %v3112_v5, %s3510_s9  ;;  %v1772_v5 = vmax.f32 %v1764_v37, %v1771_v57  ;;  %v1398_v37 = vstv %s3956_s18  ;;  %v3172_v57 = vrot.slane %v1355_v63, 9  ;;  %v5064_v63 = vstv %s3978_s19  ;;  %s3140_s18 = sld [smem:[#allocation10 + $0x36]] }
 0x46e   :  { %v3944_v40 = vpop.permute.xlu1 %502 }
 0x46f   :  { %v3942_v39 = vpop.permute.xlu0 %982  ;;  %v504_v1 = vrot.slane %v3944_v40, 2 }
 0x470   :  { %1104 = vrot.lane.b32.xlu1 %v3137_v42, %s3511_s13 }
 0x471   :  { %943 = vrot.lane.b32.xlu0 %v3115_v41, %s3511_s13  ;;  %v1773_v41 = vrot.slane %v1772_v5, 2 }
 0x472   :  { %v3960_v59 = vpop.permute.xlu1 %524 }
 0x473   :  { %v3958_v58 = vpop.permute.xlu0 %1004 }
 0x474   :  { %1315 = vrot.lane.b32.xlu1 %v3166_v61, %s3506_s21  ;;  %v1399_v61 = vmul.f32 %v1398_v37, %v3692_v13 }
 0x475   :  { %1154 = vrot.lane.b32.xlu0 %v3144_v60, %s3506_s21  ;;  %v1238_v60 = vmul.f32 %v5062_v0, %v3690_v12  ;;  %v1770_v0 = vadd.f32 %v1769_v47, %v1768_v38 }
 0x476   :  { %v3970_v25 = vpop.permute.xlu1 %546 }
 0x477   :  { %v3968_v22 = vpop.permute.xlu0 %1026 }
 0x478   :  { %1337 = vrot.lane.b32.xlu1 %v3169_v15, %s3507_s26 }
 0x479   :  { %1176 = vrot.lane.b32.xlu0 %v3147_v14, %s3507_s26  ;;  %v1774_v14 = vmax.f32 %v1772_v5, %v1773_v41  ;;  %v1261_v5 = vmul.f32 %v5064_v63, %v3793_v20 }
 0x47a   :  { %v3994_v43 = vpop.permute.xlu1 %568 }
 0x47b   :  { %v3992_v42 = vpop.permute.xlu0 %1048  ;;  %v1775_v32 = vrot.slane %v1774_v14, 1  ;;  %v3159_v38 = vrot.slane %v1261_v5, 9 }
 0x47c   :  { %1359 = vrot.lane.b32.xlu1 %v3172_v57, %s3508_s29  ;;  %v3178_v57 = vrot.slane %v1399_v61, 9  ;;  %v1777_v61 = vmul.f32 0.0625, %v1770_v0 }
 0x47d   :  { %1198 = vrot.lane.b32.xlu0 %v3150_v46, %s3508_s29  ;;  %v3156_v46 = vrot.slane %v1238_v60, 9  ;;  %v3181_v60 = vrot.slane %v1422_v31, 9  ;;  %v1776_v47 = vmax.f32 %v1774_v14, %v1775_v32 }
 0x47e   :  { %v4004_v21 = vpop.permute.xlu1 %590 }
 0x47f   :  { %v4002_v15 = vpop.permute.xlu0 %1070 }
 0x480   :  { %1381 = vrot.lane.b32.xlu1 %v3175_v28, %s3509_s7  ;;  %v1785_v28 = vrot.slane %v1777_v61, %v3670_v3 }
 0x481   :  { %1220 = vrot.lane.b32.xlu0 %v3153_v19, %s3509_s7 }
 0x482   :  { %v4012_v37 = vpop.permute.xlu1 %612 }
 0x483   :  { %v4010_v13 = vpop.permute.xlu0 %1093 }
 0x484   :  { %1403 = vrot.lane.b32.xlu1 %v3178_v57, %s3510_s9 }
 0x485   :  { %1242 = vrot.lane.b32.xlu0 %v3156_v46, %s3510_s9  ;;  %v1799_v46 = vrot.slane %v1776_v47, %v3670_v3 }
 0x486   :  { %v4024_v41 = vpop.permute.xlu1 %822 }
 0x487   :  { %v4022_v19 = vpop.permute.xlu0 %1304  ;;  %v824_v56 = vrot.slane %v4024_v41, 2 }
 0x488   :  { %1426 = vrot.lane.b32.xlu1 %v3181_v60, %s3511_s13 }
 0x489   :  { %1265 = vrot.lane.b32.xlu0 %v3159_v38, %s3511_s13 }
 0x48a   :  { %v4030_v33 = vpop.permute.xlu1 %844 }
 0x48b   :  { %v4028_v20 = vpop.permute.xlu0 %1326  ;;  %v846_v55 = vrot.slane %v4030_v33, 2 }
 0x48c   :  { %1800 = vrot.lane.b32.xlu1 %v1799_v46, %s3505_s11 }
 0x48d   :  { %1786 = vrot.lane.b32.xlu0 %v1785_v28, %s3505_s11  ;;  %s3052_s11 = sld [smem:[#allocation10 + $0x32]] }
 0x48e   :  { %v4038_v0 = vpop.permute.xlu1 %866 }
 0x48f   :  { %v4036_v57 = vpop.permute.xlu0 %1348 }
 0x492   :  { %v4042_v5 = vpop.permute.xlu1 %888 }
 0x493   :  { %v4040_v14 = vpop.permute.xlu0 %1370  ;;  %v490_v62 = vstv %s3052_s11  ;;  %s4143_s11 = sld [smem:[#allocation10 + $0x6]] }
 0x494   :  { %v491_v4 = vmul.f32 %v490_v62, %v3690_v12 }
 0x496   :  { %v4046_v32 = vpop.permute.xlu1 %910  ;;  %v3053_v30 = vrot.slane %v491_v4, 9 }
 0x497   :  { %v4044_v31 = vpop.permute.xlu0 %1392 }
 0x498   :  { %v496_v45 = vadd.f32 %v3053_v30, %v488_v7 }
 0x49a   :  { %v4050_v60 = vpop.permute.xlu1 %932 }
 0x49b   :  { %v4048_v38 = vpop.permute.xlu0 %1415 }
 0x49e   :  { %v4054_v61 = vpop.permute.xlu1 %1143 }
 0x49f   :  { %v4052_v3 = vpop.permute.xlu0 %362 }
 0x4a0   :  { %5112 = vst [vmem:[#allocation29_spill] sm:$0xff] %v4052_v3 }
 0x4a2   :  { %v4058_v28 = vpop.permute.xlu1 %1165 }
 0x4a3   :  { %v4056_v47 = vpop.permute.xlu0 %385 }
 0x4a4   :  { %5113 = vst [vmem:[#allocation30_spill] sm:$0xff] %v4056_v47 }
 0x4a6   :  { %v4062_v16 = vpop.permute.xlu1 %1187 }
 0x4a7   :  { %v4060_v46 = vpop.permute.xlu0 %408 }
 0x4a8   :  { %5114 = vst [vmem:[#allocation31_spill] sm:$0xff] %v4060_v46 }
 0x4aa   :  { %v4066_v10 = vpop.permute.xlu1 %1209 }
 0x4ab   :  { %v4064_v63 = vpop.permute.xlu0 %431 }
 0x4ac   :  { %5115 = vst [vmem:[#allocation32_spill] sm:$0xff] %v4064_v63  ;;  %v505_v63 = vsel %vm353_vm13, %v3944_v40, %v504_v1  ;;  %v548_v1 = vrot.slane %v3970_v25, 2 }
 0x4ad   :  { %v507_v47 = vadd.f32 %v505_v63, %v496_v45 }
 0x4ae   :  { %v4071_v24 = vpop.permute.xlu1 %1231 }
 0x4af   :  { %v4069_v36 = vpop.permute.xlu0 %454 }
 0x4b0   :  { %5116 = vst [vmem:[#allocation33_spill] sm:$0xff] %v4069_v36  ;;  %v526_v36 = vrot.slane %v3960_v59, 2 }
 0x4b2   :  { %v4076_v8 = vpop.permute.xlu1 %1254  ;;  %v527_v12 = vsel %vm376_vm14, %v3960_v59, %v526_v36 }
 0x4b3   :  { %v4074_v9 = vpop.permute.xlu0 %477 }
 0x4b4   :  { %5117 = vst [vmem:[#allocation34_spill] sm:$0xff] %v4074_v9 }
 0x4b6   :  { %v4081_v46 = vpop.permute.xlu1 %673 }
 0x4b7   :  { %v514_v62 = vpop.permute.xlu0 %513 }
 0x4b8   :  { %v515_v35 = vrot.slane %v514_v62, 2 }
 0x4ba   :  { %v516_v4 = vsel %vm353_vm13, %v514_v62, %v515_v35  ;;  %v4085_v3 = vpop.permute.xlu1 %695  ;;  %v549_v35 = vsel %vm399_vm15, %v3970_v25, %v548_v1  ;;  %v810_v25 = vstv %s3096_s30  ;;  %s3260_s30 = sld [smem:[#allocation10 + $0xa]] }
 0x4bb   :  { %v518_v9 = vadd.f32 %v516_v4, %v507_v47  ;;  %v536_v27 = vpop.permute.xlu0 %535  ;;  %v570_v47 = vrot.slane %v3994_v43, 2 }
 0x4bc   :  { %v537_v30 = vrot.slane %v536_v27, 2 }
 0x4bd   :  { %v529_v7 = vadd.f32 %v527_v12, %v518_v9  ;;  %v571_v12 = vsel %vm422_vm0, %v3994_v43, %v570_v47 }
 0x4be   :  { %v538_v23 = vsel %vm376_vm14, %v536_v27, %v537_v30  ;;  %v4091_v63 = vpop.permute.xlu1 %717  ;;  %v592_v30 = vrot.slane %v4004_v21, 2 }
 0x4bf   :  { %v540_v40 = vadd.f32 %v538_v23, %v529_v7  ;;  %v558_v45 = vpop.permute.xlu0 %557 }
 0x4c0   :  { %v559_v62 = vrot.slane %v558_v45, 2 }
 0x4c1   :  { %v551_v4 = vadd.f32 %v549_v35, %v540_v40  ;;  %v811_v40 = vmul.f32 %v810_v25, %v3742_v11 }
 0x4c2   :  { %v560_v36 = vsel %vm399_vm15, %v558_v45, %v559_v62  ;;  %v4099_v27 = vpop.permute.xlu1 %739 }
 0x4c3   :  { %v562_v9 = vadd.f32 %v560_v36, %v551_v4  ;;  %v580_v59 = vpop.permute.xlu0 %579  ;;  %v593_v4 = vsel %vm445_vm1, %v4004_v21, %v592_v30  ;;  %v614_v36 = vrot.slane %v4012_v37, 2 }
 0x4c4   :  { %v581_v1 = vrot.slane %v580_v59, 2 }
 0x4c5   :  { %v573_v7 = vadd.f32 %v571_v12, %v562_v9  ;;  %v615_v21 = vsel %vm468_vm3, %v4012_v37, %v614_v36 }
 0x4c6   :  { %v582_v23 = vsel %vm422_vm0, %v580_v59, %v581_v1  ;;  %v4106_v62 = vpop.permute.xlu1 %761  ;;  %v3097_v59 = vrot.slane %v811_v40, 9 }
 0x4c7   :  { %v584_v45 = vadd.f32 %v582_v23, %v573_v7  ;;  %v602_v35 = vpop.permute.xlu0 %601  ;;  %v640_v7 = vrot.slane %v3636_v49, 6  ;;  %v808_v23 = vmul.f32 %v807_v18, %v3742_v11 }
 0x4c8   :  { %v603_v43 = vrot.slane %v602_v35, 2 }
 0x4c9   :  { %v595_v47 = vadd.f32 %v593_v4, %v584_v45  ;;  %v825_v4 = vsel %vm353_vm13, %v4024_v41, %v824_v56  ;;  %v641_v54 = vsel %vm61_vm2, %v640_v7, %v3636_v49  ;;  %v868_v49 = vrot.slane %v4038_v0, 2 }
 0x4ca   :  { %v604_v9 = vsel %vm445_vm1, %v602_v35, %v603_v43  ;;  %v4114_v1 = vpop.permute.xlu1 %783  ;;  %v816_v43 = vadd.f32 %v3097_v59, %v808_v23  ;;  %v847_v59 = vsel %vm376_vm14, %v4030_v33, %v846_v55  ;;  %v890_v23 = vrot.slane %v4042_v5, 2 }
 0x4cb   :  { %v606_v12 = vadd.f32 %v604_v9, %v595_v47  ;;  %v624_v25 = vpop.permute.xlu0 %623  ;;  %5118 = vst [vmem:[#allocation35_spill] sm:$0xff] %v4114_v1 }
 0x4cc   :  { %v625_v30 = vrot.slane %v624_v25, 2  ;;  %v827_v36 = vadd.f32 %v825_v4, %v816_v43  ;;  %v1292_v4 = vstv %s4129_s8  ;;  %s3326_s8 = sld [smem:[#allocation10 + $0xd]] }
 0x4cd   :  { %v617_v45 = vadd.f32 %v615_v21, %v606_v12 }
 0x4ce   :  { %v626_v35 = vsel %vm468_vm3, %v624_v25, %v625_v30  ;;  %v4123_v9 = vpop.permute.xlu1 %993 }
 0x4cf   :  { %v628_v40 = vadd.f32 %v626_v35, %v617_v45  ;;  %v834_v47 = vpop.permute.xlu0 %833 }
 0x4d0   :  { %v835_v37 = vrot.slane %v834_v47, 2 }
 0x4d1   :  { %v643_v50 = vmul.f32 %v641_v54, %v628_v40 }
 0x4d2   :  { %v836_v11 = vsel %vm353_vm13, %v834_v47, %v835_v37  ;;  %v4132_v41 = vpop.permute.xlu1 %1015  ;;  %v891_v47 = vsel %vm422_vm0, %v4042_v5, %v890_v23  ;;  %v1131_v37 = vstv %s3140_s18  ;;  %v1289_v23 = vstv %s4143_s11  ;;  %s3263_s18 = sld [smem:[#allocation10 + $0x11]]  ;;  %s3512_s11 = smov 126  }
 0x4d3   :  { %v838_v56 = vadd.f32 %v836_v11, %v827_v36  ;;  %v856_v18 = vpop.permute.xlu0 %855  ;;  %1449 = vrot.lane.b32.xlu1 %v643_v50, %s5093_s2  ;;  %v869_v50 = vsel %vm399_vm15, %v4038_v0, %v868_v49  ;;  %v912_v0 = vrot.slane %v4046_v32, 2  ;;  %v4158_v49 = vld [vmem:[#allocation4] sm:$0xf] }
 0x4d4   :  { %v857_v12 = vrot.slane %v856_v18, 2 }
 0x4d5   :  { %v849_v25 = vadd.f32 %v847_v59, %v838_v56 }
 0x4d6   :  { %v858_v54 = vsel %vm376_vm14, %v856_v18, %v857_v12  ;;  %v4138_v30 = vpop.permute.xlu1 %1037  ;;  %v4155_v18 = vld [vmem:[#allocation4] sm:$0xf]  ;;  %v1132_v12 = vmul.f32 %v4158_v49, %v1131_v37 }
 0x4d7   :  { %v860_v7 = vadd.f32 %v858_v54, %v849_v25  ;;  %v878_v21 = vpop.permute.xlu0 %877  ;;  %v1293_v59 = vmul.f32 %v4155_v18, %v1292_v4  ;;  %v1145_v4 = vrot.slane %v4054_v61, 2 }
 0x4d8   :  { %v879_v45 = vrot.slane %v878_v21, 2 }
 0x4d9   :  { %v871_v55 = vadd.f32 %v869_v50, %v860_v7  ;;  %v913_v7 = vsel %vm445_vm1, %v4046_v32, %v912_v0  ;;  %v960_v32 = vrot.slane %v3640_v51, 6 }
 0x4da   :  { %v880_v33 = vsel %vm399_vm15, %v878_v21, %v879_v45  ;;  %v4149_v40 = vpop.permute.xlu1 %1059  ;;  %v934_v21 = vrot.slane %v4050_v60, 2 }
 0x4db   :  { %v882_v35 = vadd.f32 %v880_v33, %v871_v55  ;;  %v900_v43 = vpop.permute.xlu0 %899  ;;  %v1306_v55 = vrot.slane %v4022_v19, 2  ;;  %v1128_v33 = vstv %s4145_s5  ;;  %s3307_s5 = sld [smem:[#allocation10 + $0x13]] }
 0x4dc   :  { %v901_v36 = vrot.slane %v900_v43, 2  ;;  %v935_v0 = vsel %vm468_vm3, %v4050_v60, %v934_v21 }
 0x4dd   :  { %v893_v11 = vadd.f32 %v891_v47, %v882_v35  ;;  %v3141_v47 = vrot.slane %v1132_v12, 9  ;;  %v1146_v12 = vsel %vm353_vm13, %v4054_v61, %v1145_v4 }
 0x4de   :  { %v902_v56 = vsel %vm422_vm0, %v900_v43, %v901_v36  ;;  %v4161_v5 = vpop.permute.xlu1 %1081  ;;  %v3163_v43 = vrot.slane %v1293_v59, 9  ;;  %v1307_v59 = vsel %vm353_vm13, %v4022_v19, %v1306_v55 }
 0x4df   :  { %v904_v25 = vadd.f32 %v902_v56, %v893_v11  ;;  %v922_v54 = vpop.permute.xlu0 %921 }
 0x4e0   :  { %v923_v50 = vrot.slane %v922_v54, 2 }
 0x4e1   :  { %v915_v45 = vadd.f32 %v913_v7, %v904_v25  ;;  %v1290_v25 = vmul.f32 %v4155_v18, %v1289_v23  ;;  %v1129_v7 = vmul.f32 %v4158_v49, %v1128_v33  ;;  %v962_v23 = vsel %vm961_vm4, %v960_v32, %v3640_v51 }
 0x4e2   :  { %v924_v35 = vsel %vm445_vm1, %v922_v54, %v923_v50  ;;  %v4171_v11 = vpop.permute.xlu1 %1104  ;;  %v1167_v33 = vrot.slane %v4058_v28, 2 }
 0x4e3   :  { %v926_v37 = vadd.f32 %v924_v35, %v915_v45  ;;  %v944_v36 = vpop.permute.xlu0 %943  ;;  %5119 = vst [vmem:[#allocation36_spill] sm:$0xff] %v4171_v11  ;;  %v1298_v50 = vadd.f32 %v3163_v43, %v1290_v25  ;;  %v1328_v45 = vrot.slane %v4028_v20, 2  ;;  %v1137_v35 = vadd.f32 %v3141_v47, %v1129_v7 }
 0x4e4   :  { %v945_v56 = vrot.slane %v944_v36, 2  ;;  %v1168_v32 = vsel %vm376_vm14, %v4058_v28, %v1167_v33  ;;  %v1189_v25 = vrot.slane %v4062_v16, 2 }
 0x4e5   :  { %v937_v1 = vadd.f32 %v935_v0, %v926_v37  ;;  %v1309_v19 = vadd.f32 %v1307_v59, %v1298_v50  ;;  %v1148_v55 = vadd.f32 %v1146_v12, %v1137_v35  ;;  %v1329_v43 = vsel %vm376_vm14, %v4028_v20, %v1328_v45 }
 0x4e6   :  { %v946_v54 = vsel %vm468_vm3, %v944_v36, %v945_v56  ;;  %v1316_v11 = vpop.permute.xlu1 %1315  ;;  %v1372_v45 = vrot.slane %v4040_v14, 2  ;;  %v1190_v28 = vsel %vm399_vm15, %v4062_v16, %v1189_v25 }
 0x4e7   :  { %v948_v60 = vadd.f32 %v946_v54, %v937_v1  ;;  %v1155_v21 = vpop.permute.xlu0 %1154  ;;  %v1317_v0 = vrot.slane %v1316_v11, 2  ;;  %v1350_v1 = vrot.slane %v4036_v57, 2 }
 0x4e8   :  { %v1156_v37 = vrot.slane %v1155_v21, 2 }
 0x4e9   :  { %v964_v48 = vmul.f32 %v962_v23, %v948_v60  ;;  %v1318_v4 = vsel %vm353_vm13, %v1316_v11, %v1317_v0  ;;  %v1351_v50 = vsel %vm399_vm15, %v4036_v57, %v1350_v1  ;;  %v1211_v23 = vrot.slane %v4066_v10, 2 }
 0x4ea   :  { %v1157_v61 = vsel %vm353_vm13, %v1155_v21, %v1156_v37  ;;  %v1320_v36 = vadd.f32 %v1318_v4, %v1309_v19  ;;  %v1338_v51 = vpop.permute.xlu1 %1337  ;;  %v1373_v57 = vsel %vm422_vm0, %v4040_v14, %v1372_v45  ;;  %v1394_v4 = vrot.slane %v4044_v31, 2 }
 0x4eb   :  { %v1159_v47 = vadd.f32 %v1157_v61, %v1148_v55  ;;  %v1177_v56 = vpop.permute.xlu0 %1176  ;;  %1457 = vrot.lane.b32.xlu0 %v964_v48, %s5093_s2  ;;  %v1339_v59 = vrot.slane %v1338_v51, 2  ;;  %v1212_v16 = vsel %vm422_vm0, %v4066_v10, %v1211_v23 }
 0x4ec   :  { %v1178_v7 = vrot.slane %v1177_v56, 2  ;;  %v1331_v11 = vadd.f32 %v1329_v43, %v1320_v36  ;;  %v1395_v14 = vsel %vm445_vm1, %v4044_v31, %v1394_v4  ;;  %v1282_v31 = vrot.slane %v3644_v53, 6 }
 0x4ed   :  { %v1170_v12 = vadd.f32 %v1168_v32, %v1159_v47  ;;  %v1340_v20 = vsel %vm376_vm14, %v1338_v51, %v1339_v59 }
 0x4ee   :  { %v1179_v54 = vsel %vm376_vm14, %v1177_v56, %v1178_v7  ;;  %v1342_v35 = vadd.f32 %v1340_v20, %v1331_v11  ;;  %v1360_v21 = vpop.permute.xlu1 %1359  ;;  %v1233_v56 = vrot.slane %v4071_v24, 2  ;;  %v1417_v11 = vrot.slane %v4048_v38, 2 }
 0x4ef   :  { %v1181_v48 = vadd.f32 %v1179_v54, %v1170_v12  ;;  %v1199_v60 = vpop.permute.xlu0 %1198  ;;  %v1361_v37 = vrot.slane %v1360_v21, 2 }
 0x4f0   :  { %v1200_v33 = vrot.slane %v1199_v60, 2  ;;  %v1353_v19 = vadd.f32 %v1351_v50, %v1342_v35  ;;  %v1234_v10 = vsel %vm445_vm1, %v4071_v24, %v1233_v56 }
 0x4f1   :  { %v1192_v0 = vadd.f32 %v1190_v28, %v1181_v48  ;;  %v1362_v61 = vsel %vm399_vm15, %v1360_v21, %v1361_v37  ;;  %v1256_v48 = vrot.slane %v4076_v8, 2 }
 0x4f2   :  { %v1201_v55 = vsel %vm399_vm15, %v1199_v60, %v1200_v33  ;;  %v1364_v1 = vadd.f32 %v1362_v61, %v1353_v19  ;;  %v1382_v36 = vpop.permute.xlu1 %1381  ;;  %v1418_v61 = vsel %vm468_vm3, %v4048_v38, %v1417_v11  ;;  %v1284_v38 = vsel %vm1283_vm6, %v1282_v31, %v3644_v53 }
 0x4f3   :  { %v1203_v43 = vadd.f32 %v1201_v55, %v1192_v0  ;;  %v1221_v47 = vpop.permute.xlu0 %1220  ;;  %v1383_v32 = vrot.slane %v1382_v36, 2  ;;  %v1257_v24 = vsel %vm468_vm3, %v4076_v8, %v1256_v48 }
 0x4f4   :  { %v1222_v51 = vrot.slane %v1221_v47, 2  ;;  %v1375_v7 = vadd.f32 %v1373_v57, %v1364_v1 }
 0x4f5   :  { %v1214_v25 = vadd.f32 %v1212_v16, %v1203_v43  ;;  %v1384_v12 = vsel %vm422_vm0, %v1382_v36, %v1383_v32  ;;  %v1443_v32 = vrot.slane %v3642_v52, 6 }
 0x4f6   :  { %v1223_v59 = vsel %vm422_vm0, %v1221_v47, %v1222_v51  ;;  %v1386_v20 = vadd.f32 %v1384_v12, %v1375_v7  ;;  %v1404_v45 = vpop.permute.xlu1 %1403  ;;  %v4232_v12 = vld [vmem:[#allocation4] sm:$0x3] }
 0x4f7   :  { %v1225_v54 = vadd.f32 %v1223_v59, %v1214_v25  ;;  %v1243_v50 = vpop.permute.xlu0 %1242  ;;  %v1405_v60 = vrot.slane %v1404_v45, 2  ;;  %v1445_v53 = vsel %vm1444_vm7, %v1443_v32, %v3642_v52  ;;  %v2767_v52 = vstv %s3326_s8  ;;  %s3332_s8 = sld [smem:[#allocation10 + $0x1b]] }
 0x4f8   :  { %v1244_v35 = vrot.slane %v1243_v50, 2  ;;  %v1397_v28 = vadd.f32 %v1395_v14, %v1386_v20  ;;  %v2288_v20 = vstv %s3260_s30  ;;  %s3310_s30 = sld [smem:[#allocation10 + $0x1a]] }
 0x4f9   :  { %v1236_v21 = vadd.f32 %v1234_v10, %v1225_v54  ;;  %v1406_v33 = vsel %vm445_vm1, %v1404_v45, %v1405_v60  ;;  %v2310_v60 = vstv %s3263_s18  ;;  %s3275_s18 = sld [smem:[#allocation10 + $0x2d]] }
 0x4fa   :  { %v1245_v23 = vsel %vm445_vm1, %v1243_v50, %v1244_v35  ;;  %v1408_v0 = vadd.f32 %v1406_v33, %v1397_v28  ;;  %v1427_v55 = vpop.permute.xlu1 %1426  ;;  %v2607_v50 = vstv %s3304_s1  ;;  %v2332_v33 = vstv %s3266_s25  ;;  %s3272_s1 = sld [smem:[#allocation10 + $0x26]] }
 0x4fb   :  { %v1247_v37 = vadd.f32 %v1245_v23, %v1236_v21  ;;  %v1266_v19 = vpop.permute.xlu0 %1265  ;;  %v1428_v4 = vrot.slane %v1427_v55, 2  ;;  %v2629_v23 = vstv %s3307_s5  ;;  %s3313_s25 = sld [smem:[#allocation10 + $0x21]] }
 0x4fc   :  { %v1267_v57 = vrot.slane %v1266_v19, 2  ;;  %v1420_v1 = vadd.f32 %v1418_v61, %v1408_v0  ;;  %s3216_s5 = sld [smem:[#allocation10 + $0x8]] }
 0x4fd   :  { %v1259_v43 = vadd.f32 %v1257_v24, %v1247_v37  ;;  %v1429_v36 = vsel %vm468_vm3, %v1427_v55, %v1428_v4 }
 0x4fe   :  { %v1268_v47 = vsel %vm468_vm3, %v1266_v19, %v1267_v57  ;;  %v1801_v51 = vpop.permute.xlu1 %1800  ;;  %v1431_v59 = vadd.f32 %v1429_v36, %v1420_v1  ;;  %v2354_v19 = vstv %s3269_s22  ;;  %v2651_v24 = vstv %s3310_s30  ;;  %s3335_s22 = sld [smem:[#allocation10 + $0x22]] }
 0x4ff   :  { %v1270_v16 = vadd.f32 %v1268_v47, %v1259_v43  ;;  %v1787_v56 = vpop.permute.xlu0 %1786  ;;  %v1802_v8 = vrot.slane %v1801_v51, 6  ;;  %v2811_v1 = vstv %s3332_s8  ;;  %v2398_v47 = vstv %s3275_s18  ;;  %s3316_s30 = sld [smem:[#allocation10 + $0x28]] }
 0x500   :  { %v1788_v25 = vrot.slane %v1787_v56, 6  ;;  %v1447_v54 = vmul.f32 %v1445_v53, %v1431_v59  ;;  %v2376_v57 = vstv %s3272_s1  ;;  %s3219_s1 = sld [smem:[#allocation10 + $0xf]] }
 0x501   :  { %v1286_v7 = vmul.f32 %v1284_v38, %v1270_v16  ;;  %v1803_v11 = vsel %vm310_vm11, %v1802_v8, %v1801_v51  ;;  %s3338_s8 = sld [smem:[#allocation10 + $0x29]] }
 0x502   :  { %v1789_v14 = vsel %vm310_vm11, %v1788_v25, %v1787_v56  ;;  %1805 = vst.msk [vmem:[#allocation4 + $0x1] sm:$0x5] %vm3680_vm12, %v1803_v11  ;;  %v2673_v56 = vstv %s3313_s25  ;;  %v1968_v51 = vstv %s3216_s5  ;;  %s3285_s18 = sld [smem:[#allocation10 + $0x12]] }
 0x503   :  { %1791 = vst.msk [vmem:[#allocation4] sm:$0x5] %vm3680_vm12, %v1789_v14  ;;  %1464 = vrot.lane.b32.xlu1 %v1286_v7, %s5093_s2  ;;  %s3329_s2 = sld [smem:[#allocation10 + $0x14]] }
 0x504   :  { %v2833_v25 = vstv %s3335_s22  ;;  %s3319_s25 = sld [smem:[#allocation10 + $0x2f]] }
 0x505   :  { %v2695_v14 = vstv %s3316_s30  ;;  %s3222_s5 = sld [smem:[#allocation10 + $0x16]] }
 0x506   :  { %v1990_v11 = vstv %s3219_s1  ;;  %s3341_s22 = sld [smem:[#allocation10 + $0x30]] }
 0x507   :  { %1479 = vrot.lane.b32.xlu1 %v1447_v54, %s3512_s11  ;;  %s3241_s30 = sld [smem:[#allocation10 + $0x10]] }
 0x508   :  { %s3244_s1 = sld [smem:[#allocation10 + $0x17]] }
 0x509   :  { %v2789_v0 = vstv %s3329_s2  ;;  %s3282_s2 = sld [smem:[#allocation10 + $0xb]] }
 0x50a   :  { %v4244_v45 = vld [vmem:[#allocation4] sm:$0xf] }
 0x50b   :  { %v4246_v10 = vld [vmem:[#allocation4] sm:$0xf]  ;;  %v2608_v48 = vmul.f32 %v2607_v50, %v4244_v45  ;;  %v2630_v31 = vmul.f32 %v2629_v23, %v4244_v45  ;;  %v2652_v4 = vmul.f32 %v2651_v24, %v4244_v45  ;;  %v2674_v32 = vmul.f32 %v2673_v56, %v4244_v45 }
 0x50c   :  { %v2289_v2 = vmul.f32 %v2288_v20, %v4246_v10  ;;  %v4250_v35 = vld [vmem:[#allocation4] sm:$0xf]  ;;  %v2311_v28 = vmul.f32 %v2310_v60, %v4246_v10  ;;  %v2333_v37 = vmul.f32 %v2332_v33, %v4246_v10  ;;  %v2355_v61 = vmul.f32 %v2354_v19, %v4246_v10 }
 0x50d   :  { %2610 = vrot.lane.b32.xlu1 %v2608_v48, %s3506_s21  ;;  %v2768_v21 = vmul.f32 %v2767_v52, %v4250_v35  ;;  %v2790_v55 = vmul.f32 %v2789_v0, %v4250_v35  ;;  %v2377_v43 = vmul.f32 %v2376_v57, %v4246_v10  ;;  %v2812_v36 = vmul.f32 %v2811_v1, %v4250_v35  ;;  %v4288_v52 = vld [vmem:[#allocation4] sm:$0xf] }
 0x50e   :  { %2291 = vrot.lane.b32.xlu0 %v2289_v2, %s3506_s21  ;;  %v2399_v16 = vmul.f32 %v2398_v47, %v4246_v10  ;;  %v1969_v38 = vmul.f32 %v1968_v51, %v4244_v45  ;;  %v2834_v7 = vmul.f32 %v2833_v25, %v4250_v35  ;;  %v2696_v53 = vmul.f32 %v2695_v14, %v4244_v45 }
 0x50f   :  { %v2447_v8 = vstv %s3282_s2  ;;  %v1991_v54 = vmul.f32 %v1990_v11, %v4244_v45  ;;  %v2855_v20 = vstv %s3338_s8  ;;  %v2469_v50 = vstv %s3285_s18  ;;  %s3238_s2 = sld [smem:[#allocation10 + $0x9]] }
 0x510   :  { %v2448_v59 = vmul.f32 %v2447_v8, %v4244_v45  ;;  %v2856_v2 = vmul.f32 %v2855_v20, %v4250_v35  ;;  %v2470_v48 = vmul.f32 %v2469_v50, %v4244_v45  ;;  %v2718_v60 = vstv %s3319_s25  ;;  %s3264_s8 = sld [smem:[#allocation10 + $0x42]] }
 0x511   :  { %2313 = vrot.lane.b32.xlu1 %v2311_v28, %s3507_s26  ;;  %v2719_v28 = vmul.f32 %v2718_v60, %v4288_v52  ;;  %v5120_v33 = vstv %s3880_s23  ;;  %v2878_v0 = vstv %s3341_s22  ;;  %s3261_s23 = sld [smem:[#allocation10 + $0x3b]]  ;;  %v5122_v1 = vstv %s3894_s27 }
 0x512   :  { %2770 = vrot.lane.b32.xlu0 %v2768_v21, %s3506_s21  ;;  %v2012_v21 = vstv %s3222_s5  ;;  %v2639_v47 = vmul.f32 %v4244_v45, %v5122_v1  ;;  %v5123_v51 = vstv %s3898_s28  ;;  %v5124_v14 = vstv %s3924_s10  ;;  %s3270_s27 = sld [smem:[#allocation10 + $0x50]] }
 0x513   :  { %v2013_v23 = vmul.f32 %v2012_v21, %v4244_v45  ;;  %v2661_v11 = vmul.f32 %v4244_v45, %v5124_v14  ;;  %s3273_s28 = sld [smem:[#allocation10 + $0x57]]  ;;  %v5129_v14 = vstv %s3978_s19 }
 0x514   :  { %v3309_v56 = vrot.slane %v2639_v47, 9  ;;  %s3276_s10 = sld [smem:[#allocation10 + $0x5e]] }
 0x515   :  { %2335 = vrot.lane.b32.xlu1 %v2333_v37, %s3508_s29  ;;  %v4297_v37 = vld [vmem:[#allocation4] sm:$0xf]  ;;  %v2128_v57 = vstv %s3238_s2  ;;  %v3312_v20 = vrot.slane %v2661_v11, 9  ;;  %s3074_s18 = sld [smem:[#allocation10 + $0x33]]  ;;  %v2728_v11 = vmul.f32 %v4288_v52, %v5129_v14 }
 0x516   :  { %2632 = vrot.lane.b32.xlu0 %v2630_v31, %s3507_s26  ;;  %v2617_v31 = vmul.f32 %v4244_v45, %v5120_v33  ;;  %v2879_v19 = vmul.f32 %v2878_v0, %v4297_v37  ;;  %v5126_v33 = vstv %s3930_s14  ;;  %s3247_s14 = sld [smem:[#allocation10 + $0x1e]] }
 0x517   :  { %v2297_v25 = vstv %s3261_s23  ;;  %s3253_s25 = sld [smem:[#allocation10 + $0x2c]] }
 0x518   :  { %v2363_v0 = vstv %s3270_s27  ;;  %s3288_s5 = sld [smem:[#allocation10 + $0x19]] }
 0x519   :  { %2357 = vrot.lane.b32.xlu1 %v2355_v61, %s3509_s7  ;;  %v5121_v61 = vstv %s3884_s24  ;;  %s3267_s24 = sld [smem:[#allocation10 + $0x49]] }
 0x51a   :  { %2792 = vrot.lane.b32.xlu0 %v2790_v55, %s3507_s26  ;;  %v3306_v55 = vrot.slane %v2617_v31, 9  ;;  %v2777_v24 = vmul.f32 %v4250_v35, %v5121_v61  ;;  %v2683_v31 = vmul.f32 %v4244_v45, %v5126_v33  ;;  %v2364_v61 = vmul.f32 %v2363_v0, %v4246_v10  ;;  %s4361_s22 = sld [smem:[#allocation10 + $0x2]] }
 0x51b   :  { %s4367_s2 = sld [smem:[#allocation10 + $0x1d]]  ;;  %v650_v52 = vstv %s3074_s18 }
 0x51c   :  { %s4369_s19 = sld [smem:[#allocation10 + $0x39]] }
 0x51d   :  { %2379 = vrot.lane.b32.xlu1 %v2377_v43, %s3510_s9  ;;  %v3328_v43 = vrot.slane %v2777_v24, 9  ;;  %v5127_v24 = vstv %s3940_s15  ;;  %s3250_s15 = sld [smem:[#allocation10 + $0x25]] }
 0x51e   :  { %2654 = vrot.lane.b32.xlu0 %v2652_v4, %s3508_s29  ;;  %v2129_v4 = vmul.f32 %v2128_v57, %v4250_v35  ;;  %v2843_v57 = vmul.f32 %v4250_v35, %v5127_v24  ;;  %v2491_v33 = vstv %s3288_s5  ;;  %s4389_s23 = sld [smem:[#allocation10 + $0x24]] }
 0x51f   :  { %v2341_v60 = vstv %s3267_s24  ;;  %s4465_s18 = sld [smem:[#allocation10 + $0x4e]] }
 0x520   :  { %v3337_v1 = vrot.slane %v2843_v57, 9  ;;  %v647_v0 = vstv %s4361_s22  ;;  %s4502_s5 = sld [smem:[#allocation10 + $0x55]] }
 0x521   :  { %2401 = vrot.lane.b32.xlu1 %v2399_v16, %s3511_s13  ;;  %v2034_v57 = vstv %s4367_s2  ;;  %s4506_s22 = sld [smem:[#allocation10 + $0x41]] }
 0x522   :  { %2814 = vrot.lane.b32.xlu0 %v2812_v36, %s3508_s29  ;;  %v2150_v36 = vstv %s3241_s30  ;;  %s4371_s30 = sld [smem:[#allocation10 + $0x4]] }
 0x523   :  { %v2151_v16 = vmul.f32 %v2150_v36, %v4250_v35  ;;  %v5128_v36 = vstv %s3948_s16  ;;  %s4354_s16 = sld [smem:[#allocation10 + $0x35]] }
 0x524   :  { %s4538_s24 = sld [smem:[#allocation10 + $0x32]] }
 0x525   :  { %1971 = vrot.lane.b32.xlu1 %v1969_v38, %s3506_s21  ;;  %v2172_v38 = vstv %s3244_s1  ;;  %s4380_s1 = sld [smem:[#allocation10 + $0x3c]] }
 0x526   :  { %2676 = vrot.lane.b32.xlu0 %v2674_v32, %s3509_s7  ;;  %v2799_v32 = vmul.f32 %v4250_v35, %v5123_v51  ;;  %v2173_v8 = vmul.f32 %v2172_v38, %v4250_v35  ;;  %s4548_s27 = sld [smem:[#allocation10 + $0x5c]] }
 0x527   :  { %s3324_s2 = sld [smem:[#allocation10 + $0x37]] }
 0x529   :  { %2450 = vrot.lane.b32.xlu1 %v2448_v59, %s3506_s21  ;;  %v2298_v59 = vmul.f32 %v2297_v25, %v4246_v10 }
 0x52a   :  { %2836 = vrot.lane.b32.xlu0 %v2834_v7, %s3509_s7  ;;  %v3331_v7 = vrot.slane %v2799_v32, 9 }
 0x52d   :  { %1993 = vrot.lane.b32.xlu1 %v1991_v54, %s3507_s26  ;;  %v3262_v54 = vrot.slane %v2298_v59, 9 }
 0x52e   :  { %2698 = vrot.lane.b32.xlu0 %v2696_v53, %s3510_s9  ;;  %v2319_v53 = vstv %s3264_s8  ;;  %s4393_s8 = sld [smem:[#allocation10 + $0x40]] }
 0x52f   :  { %v2320_v50 = vmul.f32 %v2319_v53, %v4246_v10  ;;  %v2194_v53 = vstv %s3247_s14  ;;  %s4442_s14 = sld [smem:[#allocation10 + $0x2e]] }
 0x531   :  { %2472 = vrot.lane.b32.xlu1 %v2470_v48, %s3507_s26  ;;  %v3265_v21 = vrot.slane %v2320_v50, 9  ;;  %v5130_v50 = vstv %s3980_s20  ;;  %s4377_s20 = sld [smem:[#allocation10 + $0x20]] }
 0x532   :  { %2858 = vrot.lane.b32.xlu0 %v2856_v2, %s3510_s9  ;;  %v5125_v2 = vstv %s3926_s12  ;;  %s3339_s12 = sld [smem:[#allocation10 + $0x5a]] }
 0x533   :  { %v2821_v48 = vmul.f32 %v4250_v35, %v5125_v2  ;;  %v2888_v2 = vmul.f32 %v4297_v37, %v5130_v50  ;;  %v651_v37 = vmul.f32 %v4155_v18, %v650_v52 }
 0x534   :  { %v1999_v52 = vstv %s4393_s8  ;;  %s4764_s8 = sld [smem:[#allocation10 + $0x7]] }
 0x535   :  { %2015 = vrot.lane.b32.xlu1 %v2013_v23, %s3508_s29  ;;  %v2342_v23 = vmul.f32 %v2341_v60, %v4246_v10  ;;  %v970_v60 = vstv %s4354_s16  ;;  %v3075_v24 = vrot.slane %v651_v37, 9  ;;  %v1017_v37 = vrot.slane %v4132_v41, 2  ;;  %s4478_s16 = sld [smem:[#allocation10 + $0x51]] }
 0x536   :  { %2721 = vrot.lane.b32.xlu0 %v2719_v28, %s3511_s13  ;;  %v3334_v28 = vrot.slane %v2821_v48, 9  ;;  %v2216_v48 = vstv %s3250_s15  ;;  %s4448_s15 = sld [smem:[#allocation10 + $0x4a]] }
 0x538   :  { %v2864_v51 = vstv %s3339_s12  ;;  %s4426_s12 = sld [smem:[#allocation10 + $0x2b]] }
 0x539   :  { %2621 = vrot.lane.b32.xlu1 %v3306_v55, %s3506_s21  ;;  %v3315_v55 = vrot.slane %v2683_v31, 9  ;;  %v971_v31 = vmul.f32 %v4158_v49, %v970_v60 }
 0x53a   :  { %2881 = vrot.lane.b32.xlu0 %v2879_v19, %s3511_s13  ;;  %v3268_v19 = vrot.slane %v2342_v23, 9  ;;  %v2238_v23 = vstv %s3253_s25  ;;  %s4486_s25 = sld [smem:[#allocation10 + $0x3a]] }
 0x53d   :  { %2781 = vrot.lane.b32.xlu1 %v3328_v43, %s3506_s21  ;;  %v3271_v43 = vrot.slane %v2364_v61, 9  ;;  %v2492_v61 = vmul.f32 %v2491_v33, %v4244_v45 }
 0x53e   :  { %2131 = vrot.lane.b32.xlu0 %v2129_v4, %s3506_s21  ;;  %v2385_v4 = vstv %s3273_s28  ;;  %s4409_s28 = sld [smem:[#allocation10 + $0x27]] }
 0x53f   :  { %v2386_v47 = vmul.f32 %v2385_v4, %v4246_v10  ;;  %v1977_v4 = vstv %s4369_s19  ;;  %s3258_s19 = sld [smem:[#allocation10 + $0x34]] }
 0x541   :  { %2643 = vrot.lane.b32.xlu1 %v3309_v56, %s3507_s26  ;;  %v2407_v56 = vstv %s3276_s10  ;;  %v3274_v32 = vrot.slane %v2386_v47, 9  ;;  %v648_v47 = vmul.f32 %v4155_v18, %v647_v0  ;;  %s4414_s10 = sld [smem:[#allocation10 + $0x43]] }
 0x542   :  { %2153 = vrot.lane.b32.xlu0 %v2151_v16, %s3507_s26  ;;  %v2705_v16 = vmul.f32 %v4244_v45, %v5128_v36  ;;  %v2408_v25 = vmul.f32 %v2407_v56, %v4246_v10  ;;  %v3119_v36 = vrot.slane %v971_v31, 9  ;;  %v3256_v56 = vld.sshfl [vmem:[%s5057_s4 + $0x2] sm:$0x1 pattern:$0x76325410]  ;;  %v2000_v31 = vmul.f32 %v1999_v52, %v4244_v45 }
 0x544   :  { %v3318_v38 = vrot.slane %v2705_v16, 9  ;;  %v675_v16 = vrot.slane %v4081_v46, 2 }
 0x545   :  { %2803 = vrot.lane.b32.xlu1 %v3331_v7, %s3507_s26  ;;  %v3277_v7 = vrot.slane %v2408_v25, 9  ;;  %v1978_v25 = vmul.f32 %v1977_v4, %v4244_v45 }
 0x546   :  { %2175 = vrot.lane.b32.xlu0 %v2173_v8, %s3508_s29  ;;  %v2865_v8 = vmul.f32 %v2864_v51, %v4250_v35 }
 0x548   :  { %v3340_v59 = vrot.slane %v2865_v8, 9  ;;  %v656_v8 = vadd.f32 %v3075_v24, %v648_v47 }
 0x549   :  { %2665 = vrot.lane.b32.xlu1 %v3312_v20, %s3508_s29  ;;  %v3321_v20 = vrot.slane %v2728_v11, 9 }
 0x54a   :  { %2302 = vrot.lane.b32.xlu0 %v3262_v54, %s3506_s21  ;;  %v2195_v54 = vmul.f32 %v2194_v53, %v4250_v35  ;;  %v676_v53 = vsel %vm353_vm13, %v4081_v46, %v675_v16  ;;  %v1006_v46 = vrot.slane %v3958_v58, 2  ;;  %v2078_v16 = vstv %s4426_s12  ;;  %s4558_s12 = sld [smem:[#allocation10 + $0x1]] }
 0x54d   :  { %2825 = vrot.lane.b32.xlu1 %v3334_v28, %s3508_s29  ;;  %v3343_v28 = vrot.slane %v2888_v2, 9 }
 0x54e   :  { %2324 = vrot.lane.b32.xlu0 %v3265_v21, %s3507_s26  ;;  %v2217_v21 = vmul.f32 %v2216_v48, %v4250_v35  ;;  %v2056_v48 = vstv %s4389_s23  ;;  %s4759_s23 = sld [smem:[#allocation10 + $0x31]] }
 0x54f   :  { %v2057_v33 = vmul.f32 %v2056_v48, %v4244_v45 }
 0x551   :  { %2687 = vrot.lane.b32.xlu1 %v3315_v55, %s3509_s7  ;;  %v2239_v55 = vmul.f32 %v2238_v23, %v4250_v35 }
 0x552   :  { %2346 = vrot.lane.b32.xlu0 %v3268_v19, %s3508_s29  ;;  %v664_v19 = vrot.slane %v3838_v17, 2 }
 0x554   :  { %v665_v51 = vsel %vm353_vm13, %v3838_v17, %v664_v19  ;;  %v2535_v19 = vstv %s4409_s28  ;;  %s4553_s28 = sld [smem:[#allocation10 + $0x4f]] }
 0x555   :  { %2847 = vrot.lane.b32.xlu1 %v3337_v1, %s3509_s7  ;;  %v984_v1 = vrot.slane %v3942_v39, 2  ;;  %v667_v14 = vadd.f32 %v665_v51, %v656_v8  ;;  %v2536_v47 = vmul.f32 %v2535_v19, %v4244_v45  ;;  %v1028_v51 = vrot.slane %v3968_v22, 2 }
 0x556   :  { %2368 = vrot.lane.b32.xlu0 %v3271_v43, %s3509_s7  ;;  %v967_v43 = vstv %s4371_s30  ;;  %s4521_s30 = sld [smem:[#allocation10 + $0x58]] }
 0x557   :  { %v968_v18 = vmul.f32 %v4158_v49, %v967_v43  ;;  %v985_v17 = vsel %vm353_vm13, %v3942_v39, %v984_v1  ;;  %v686_v39 = vrot.slane %v3856_v26, 2  ;;  %v678_v60 = vadd.f32 %v676_v53, %v667_v14  ;;  %v4482_v14 = vld [vmem:[#allocation4] sm:$0xf] }
 0x558   :  { %v1018_v43 = vsel %vm376_vm14, %v4132_v41, %v1017_v37  ;;  %v3221_v1 = vrot.slane %v2000_v31, 9  ;;  %v719_v41 = vrot.slane %v4091_v63, 2  ;;  %v2500_v53 = vstv %s4448_s15  ;;  %v3234_v37 = vld.sshfl [vmem:[%s5057_s4 + $0x1] sm:$0x1 pattern:$0x76325410] }
 0x559   :  { %2709 = vrot.lane.b32.xlu1 %v3318_v38, %s3510_s9  ;;  %v2035_v38 = vmul.f32 %v2034_v57, %v4244_v45  ;;  %v976_v11 = vadd.f32 %v3119_v36, %v968_v18  ;;  %v687_v0 = vsel %vm376_vm14, %v3856_v26, %v686_v39  ;;  %s4576_s15 = sld [smem:[#allocation10 + $0x56]] }
 0x55a   :  { %2390 = vrot.lane.b32.xlu0 %v3274_v32, %s3510_s9  ;;  %v995_v32 = vrot.slane %v4123_v9, 2  ;;  %v689_v24 = vadd.f32 %v687_v0, %v678_v60  ;;  %v2043_v60 = vstv %s4465_s18  ;;  %s4587_s18 = sld [smem:[#allocation10 + $0x4]] }
 0x55b   :  { %v987_v2 = vadd.f32 %v985_v17, %v976_v11  ;;  %v2558_v11 = vstv %s4442_s14  ;;  %v2044_v19 = vmul.f32 %v2043_v60, %v4244_v45  ;;  %s4570_s14 = sld [smem:[#allocation10 + $0x5f]] }
 0x55c   :  { %v996_v49 = vsel %vm353_vm13, %v4123_v9, %v995_v32  ;;  %v4434_v9 = vpop.permute.xlu1 %1449  ;;  %v2559_v52 = vmul.f32 %v2558_v11, %v4482_v14 }
 0x55d   :  { %2869 = vrot.lane.b32.xlu1 %v3340_v59, %s3510_s9  ;;  %v2456_v59 = vstv %s4380_s1  ;;  %s5131_s1 = smov 1  }
 0x55e   :  { %2412 = vrot.lane.b32.xlu0 %v3277_v7, %s3511_s13  ;;  %v2513_v7 = vstv %s4377_s20  ;;  %v2457_v50 = vmul.f32 %v2456_v59, %v4244_v45  ;;  %s4527_s20 = sld [smem:[#allocation10 + $0x48]] }
 0x560   :  { %v3284_v23 = vrot.slane %v2457_v50, 9 }
 0x561   :  { %2732 = vrot.lane.b32.xlu1 %v3321_v20, %s3511_s13  ;;  %v2514_v20 = vmul.f32 %v2513_v7, %v4244_v45  ;;  %v2079_v7 = vmul.f32 %v2078_v16, %v4244_v45 }
 0x562   :  { %2197 = vrot.lane.b32.xlu0 %v2195_v54, %s3509_s7  ;;  %v3218_v54 = vrot.slane %v1978_v25, 9  ;;  %v4472_v25 = vpop.permute.xlu0 %1457 }
 0x565   :  { %2892 = vrot.lane.b32.xlu1 %v3343_v28, %s3511_s13  ;;  %v998_v28 = vadd.f32 %v996_v49, %v987_v2  ;;  %v1029_v49 = vsel %vm399_vm15, %v3968_v22, %v1028_v51  ;;  %v2501_v22 = vmul.f32 %v2500_v53, %v4244_v45  ;;  %v2065_v51 = vstv %s4502_s5  ;;  %s3302_s5 = sld [smem:[#allocation10 + $0x36]] }
 0x566   :  { %2219 = vrot.lane.b32.xlu0 %v2217_v21, %s3510_s9  ;;  %v697_v21 = vrot.slane %v4085_v3, 2  ;;  %v2066_v53 = vmul.f32 %v2065_v51, %v4244_v45 }
 0x567   :  { %v3290_v0 = vrot.slane %v2501_v22, 9 }
 0x568   :  { %v698_v4 = vsel %vm376_vm14, %v4085_v3, %v697_v21  ;;  %v741_v21 = vrot.slane %v4099_v27, 2 }
 0x569   :  { %2494 = vrot.lane.b32.xlu1 %v2492_v61, %s3508_s29  ;;  %v1007_v61 = vsel %vm376_vm14, %v3958_v58, %v1006_v46  ;;  %v708_v58 = vrot.slane %v3866_v34, 2  ;;  %v700_v3 = vadd.f32 %v698_v4, %v689_v24  ;;  %v730_v46 = vrot.slane %v3886_v44, 2 }
 0x56a   :  { %2241 = vrot.lane.b32.xlu0 %v2239_v55, %s3511_s13  ;;  %v2478_v55 = vstv %s4414_s10  ;;  %v1009_v26 = vadd.f32 %v1007_v61, %v998_v28  ;;  %v2522_v61 = vstv %s4478_s16  ;;  %v2137_v24 = vstv %s4486_s25  ;;  %s5132_s10 = smov 4   ;;  %s4599_s16 = sld [smem:[#allocation10 + $0x5d]] }
 0x56b   :  { %v2479_v36 = vmul.f32 %v2478_v55, %v4244_v45  ;;  %v709_v17 = vsel %vm399_vm15, %v3866_v34, %v708_v58  ;;  %v731_v55 = vsel %vm422_vm0, %v3886_v44, %v730_v46  ;;  %v3300_v44 = vld.sshfl [vmem:[%s5057_s4 + $0x4] sm:$0x1 pattern:$0x76325410]  ;;  %v3227_v58 = vrot.slane %v2044_v19, 9  ;;  %s3236_s25 = sld [smem:[#allocation10 + $0x33]] }
 0x56c   :  { %v1020_v32 = vadd.f32 %v1018_v43, %v1009_v26  ;;  %v742_v43 = vsel %vm422_vm0, %v4099_v27, %v741_v21  ;;  %v2523_v16 = vmul.f32 %v2522_v61, %v4244_v45  ;;  %v752_v27 = vrot.slane %v3904_v6, 2  ;;  %v5134_v61 = vld [vmem:[#allocation35_spill] sm:$0xff] }
 0x56d   :  { %2037 = vrot.lane.b32.xlu1 %v2035_v38, %s3509_s7  ;;  %v1039_v38 = vrot.slane %v4138_v30, 2  ;;  %v3287_v18 = vrot.slane %v2479_v36, 9  ;;  %v1959_v46 = vstv %s4538_s24  ;;  %s4770_s24 = sld [smem:[#allocation10 + $0x38]] }
 0x56e   :  { %2267 = vrot.lane.b32.xlu0 %v3256_v56, %s3496_s17  ;;  %s4431_s17 = sld [smem:[#allocation10 + $0x47]]  ;;  %v1031_v50 = vadd.f32 %v1029_v49, %v1020_v32  ;;  %v763_v32 = vrot.slane %v4106_v62, 2 }
 0x56f   :  { %v1040_v34 = vsel %vm399_vm15, %v4138_v30, %v1039_v38 }
 0x570   :  { %v1042_v28 = vadd.f32 %v1040_v34, %v1031_v50  ;;  %v2181_v50 = vstv %s4527_s20  ;;  %s4681_s20 = sld [smem:[#allocation10 + $0x6]] }
 0x571   :  { %2516 = vrot.lane.b32.xlu1 %v2514_v20, %s3509_s7  ;;  %v720_v20 = vsel %vm399_vm15, %v4091_v63, %v719_v41  ;;  %v1050_v63 = vrot.slane %v3992_v42, 2  ;;  %v1072_v41 = vrot.slane %v4002_v15, 2 }
 0x572   :  { %1982 = vrot.lane.b32.xlu0 %v3218_v54, %s3506_s21  ;;  %v711_v54 = vadd.f32 %v709_v17, %v700_v3  ;;  %v2159_v3 = vstv %s4506_s22  ;;  %v3293_v17 = vrot.slane %v2523_v16, 9  ;;  %s3235_s22 = sld [smem:[#allocation10 + $0x2]] }
 0x573   :  { %v1051_v4 = vsel %vm422_vm0, %v3992_v42, %v1050_v63  ;;  %v2160_v49 = vmul.f32 %v2159_v3, %v4250_v35  ;;  %v1073_v34 = vsel %vm445_vm1, %v4002_v15, %v1072_v41  ;;  %v3230_v63 = vrot.slane %v2066_v53, 9 }
 0x574   :  { %v2021_v56 = vstv %s4431_s17  ;;  %v722_v30 = vadd.f32 %v720_v20, %v711_v54  ;;  %s4562_s17 = sld [smem:[#allocation10 + $0x35]]  ;;  %v753_v54 = vsel %vm445_vm1, %v3904_v6, %v752_v27  ;;  %v2544_v20 = vstv %s4521_s30 }
 0x575   :  { %2059 = vrot.lane.b32.xlu1 %v2057_v33, %s3510_s9  ;;  %v4454_v57 = vpop.permute.xlu1 %1464  ;;  %v2022_v59 = vmul.f32 %v2021_v56, %v4244_v45  ;;  %v2138_v56 = vmul.f32 %v2137_v24, %v4250_v35  ;;  %v2545_v21 = vmul.f32 %v2544_v20, %v4244_v45  ;;  %v785_v24 = vrot.slane %v5134_v61, 2  ;;  %s3301_s30 = sld [smem:[#allocation10 + $0x5]] }
 0x576   :  { %2461 = vrot.lane.b32.xlu0 %v3284_v23, %s3506_s21  ;;  %v1061_v23 = vrot.slane %v4149_v40, 2  ;;  %v733_v26 = vadd.f32 %v731_v55, %v722_v30  ;;  %v3243_v30 = vrot.slane %v2160_v49, 9 }
 0x577   :  { %v3224_v48 = vrot.slane %v2022_v59, 9  ;;  %v3240_v11 = vrot.slane %v2138_v56, 9  ;;  %v3296_v56 = vrot.slane %v2545_v21, 9  ;;  %v2247_v21 = vstv %s4599_s16  ;;  %s4833_s16 = sld [smem:[#allocation10 + $0x23]] }
 0x578   :  { %v1062_v42 = vsel %vm422_vm0, %v4149_v40, %v1061_v23  ;;  %v744_v40 = vadd.f32 %v742_v43, %v733_v26  ;;  %v2203_v23 = vstv %s4553_s28  ;;  %v5135_v43 = vld [vmem:[#allocation36_spill] sm:$0xff]  ;;  %s4782_s28 = sld [smem:[#allocation10 + $0xe]] }
 0x579   :  { %2538 = vrot.lane.b32.xlu1 %v2536_v47, %s3510_s9  ;;  %v4474_v8 = vpop.permute.xlu1 %1479  ;;  %v2204_v3 = vmul.f32 %v2203_v23, %v4250_v35  ;;  %v1466_v23 = vrot.slane %v4454_v57, 2 }
 0x57a   :  { %2004 = vrot.lane.b32.xlu0 %v3221_v1, %s3507_s26  ;;  %v1053_v1 = vadd.f32 %v1051_v4, %v1042_v28  ;;  %v2182_v28 = vmul.f32 %v2181_v50, %v4250_v35  ;;  %v1960_v4 = vmul.f32 %v1959_v46, %v4244_v45 }
 0x57c   :  { %v1064_v38 = vadd.f32 %v1062_v42, %v1053_v1  ;;  %v1106_v1 = vrot.slane %v5135_v43, 2  ;;  %v2438_v42 = vstv %s4562_s17  ;;  %v3246_v27 = vrot.slane %v2182_v28, 9  ;;  %s4796_s17 = sld [smem:[#allocation10 + $0x15]] }
 0x57d   :  { %2081 = vrot.lane.b32.xlu1 %v2079_v7, %s3511_s13  ;;  %v2439_v53 = vmul.f32 %v2438_v42, %v4244_v45 }
 0x57e   :  { %2483 = vrot.lane.b32.xlu0 %v3287_v18, %s3507_s26  ;;  %v1083_v18 = vrot.slane %v4161_v5, 2  ;;  %v1075_v22 = vadd.f32 %v1073_v34, %v1064_v38  ;;  %v2225_v38 = vstv %s4576_s15  ;;  %s4815_s15 = sld [smem:[#allocation10 + $0x1c]] }
 0x57f   :  { %v4498_v2 = vpop.permute.xlu1 %2610 }
 0x580   :  { %v4496_v39 = vpop.permute.xlu0 %2291  ;;  %v1084_v6 = vsel %vm445_vm1, %v4161_v5, %v1083_v18  ;;  %v2087_v5 = vstv %s4548_s27  ;;  %s4777_s27 = sld [smem:[#allocation10]] }
 0x581   :  { %2561 = vrot.lane.b32.xlu1 %v2559_v52, %s3511_s13  ;;  %v764_v52 = vsel %vm445_vm1, %v4106_v62, %v763_v32  ;;  %v774_v62 = vrot.slane %v3918_v29, 2  ;;  %v1086_v26 = vadd.f32 %v1084_v6, %v1075_v22  ;;  %v2088_v51 = vmul.f32 %v2087_v5, %v4244_v45  ;;  %v5136_v6 = vld [vmem:[#allocation16_spill] sm:$0xff] }
 0x582   :  { %2026 = vrot.lane.b32.xlu0 %v3224_v48, %s3508_s29  ;;  %v755_v48 = vadd.f32 %v753_v54, %v744_v40  ;;  %v2567_v32 = vstv %s4570_s14  ;;  %v2435_v54 = vstv %s4587_s18  ;;  %v2226_v22 = vmul.f32 %v2225_v38, %v4250_v35  ;;  %s4801_s14 = sld [smem:[#allocation10 + $0x46]] }
 0x583   :  { %v4518_v31 = vpop.permute.xlu1 %2313  ;;  %v775_v41 = vsel %vm468_vm3, %v3918_v29, %v774_v62  ;;  %v1107_v29 = vsel %vm468_vm3, %v5135_v43, %v1106_v1  ;;  %v3233_v34 = vrot.slane %v2088_v51, 9  ;;  %v1121_v46 = vrot.slane %v5136_v6, 6  ;;  %s4821_s18 = sld [smem:[#allocation10 + $0x4d]] }
 0x584   :  { %v4516_v33 = vpop.permute.xlu0 %2770  ;;  %v766_v55 = vadd.f32 %v764_v52, %v755_v48  ;;  %v3249_v48 = vrot.slane %v2204_v3, 9  ;;  %v2568_v52 = vmul.f32 %v2567_v32, %v4482_v14  ;;  %v3252_v43 = vrot.slane %v2226_v22, 9 }
 0x585   :  { %2107 = vrot.lane.b32.xlu1 %v3234_v37, %s5131_s1  ;;  %v1095_v37 = vrot.slane %v4010_v13, 2  ;;  %v2248_v1 = vmul.f32 %v2247_v21, %v4250_v35  ;;  %v2116_v22 = vstv %s3235_s22  ;;  %s4684_s1 = sld [smem:[#allocation10 + $0x3]] }
 0x586   :  { %2505 = vrot.lane.b32.xlu0 %v3290_v0, %s3508_s29  ;;  %v5133_v0 = vld [vmem:[#allocation15_spill] sm:$0xff]  ;;  %v777_v18 = vadd.f32 %v775_v41, %v766_v55  ;;  %v2436_v55 = vmul.f32 %v2435_v54, %v4244_v45  ;;  %v1123_v41 = vsel %vm1122_vm8, %v1121_v46, %v5136_v6  ;;  %s4856_s22 = sld [smem:[#allocation10 + $0x5b]] }
 0x587   :  { %v4544_v36 = vpop.permute.xlu1 %2335  ;;  %v800_v19 = vrot.slane %v5133_v0, 6  ;;  %v1096_v40 = vsel %vm468_vm3, %v4010_v13, %v1095_v37  ;;  %v3281_v37 = vrot.slane %v2439_v53, 9 }
 0x588   :  { %v4542_v47 = vpop.permute.xlu0 %2632  ;;  %v1098_v49 = vadd.f32 %v1096_v40, %v1086_v26  ;;  %v3299_v26 = vrot.slane %v2568_v52, 9  ;;  %v1467_v40 = vsel %vm1452_vm9, %v4454_v57, %v1466_v23 }
 0x589   :  { %2587 = vrot.lane.b32.xlu1 %v3300_v44, %s5132_s10  ;;  %v1956_v44 = vstv %s4558_s12  ;;  %v2444_v3 = vadd.f32 %v3281_v37, %v2436_v55  ;;  %v2595_v37 = vstv %s3301_s30  ;;  %s4785_s10 = sld [smem:[#allocation10 + $0x3f]]  ;;  %s5139_s12 = smov 127  }
 0x58a   :  { %2048 = vrot.lane.b32.xlu0 %v3227_v58, %s3509_s7  ;;  %v1957_v13 = vmul.f32 %v1956_v44, %v4244_v45  ;;  %v1109_v5 = vadd.f32 %v1107_v29, %v1098_v49  ;;  %v801_v44 = vsel %vm159_vm5, %v800_v19, %v5133_v0  ;;  %s3193_s30 = sld [smem:[#allocation10 + $0x31]] }
 0x58b   :  { %v4566_v59 = vpop.permute.xlu1 %2357 }
 0x58c   :  { %v4564_v7 = vpop.permute.xlu0 %2792  ;;  %v1125_v19 = vmul.f32 %v1123_v41, %v1109_v5  ;;  %v2612_v5 = vrot.slane %v4498_v2, 2  ;;  %v2772_v41 = vrot.slane %v4516_v33, 2 }
 0x58d   :  { %2142 = vrot.lane.b32.xlu1 %v3240_v11, %s3506_s21  ;;  %v3215_v11 = vrot.slane %v1960_v4, 9 }
 0x58e   :  { %2527 = vrot.lane.b32.xlu0 %v3293_v17, %s3509_s7  ;;  %v786_v17 = vsel %vm468_vm3, %v5134_v61, %v785_v24  ;;  %v1469_v53 = vadd.f32 %v1467_v40, %v1125_v19  ;;  %v2293_v19 = vrot.slane %v4496_v39, 2 }
 0x58f   :  { %v4591_v15 = vpop.permute.xlu1 %2379  ;;  %v788_v28 = vadd.f32 %v786_v17, %v777_v18  ;;  %v1965_v62 = vadd.f32 %v3215_v11, %v1957_v13  ;;  %v3255_v17 = vrot.slane %v2248_v1, 9  ;;  %v2119_v13 = vstv %s3236_s25  ;;  %s4839_s25 = sld [smem:[#allocation10 + $0x54]] }
 0x590   :  { %v4589_v60 = vpop.permute.xlu0 %2654 }
 0x591   :  { %2164 = vrot.lane.b32.xlu1 %v3243_v30, %s3507_s26  ;;  %v803_v51 = vmul.f32 %v801_v44, %v788_v28  ;;  %v2596_v44 = vmul.f32 %v2595_v37, %v4244_v45 }
 0x592   :  { %2070 = vrot.lane.b32.xlu0 %v3230_v63, %s3510_s9  ;;  %v1459_v63 = vrot.slane %v4472_v25, 2 }
 0x593   :  { %v4611_v16 = vpop.permute.xlu1 %2401 }
 0x594   :  { %v4609_v58 = vpop.permute.xlu0 %2814  ;;  %v1460_v42 = vsel %vm1452_vm9, %v4472_v25, %v1459_v63  ;;  %v2758_v63 = vstv %s3324_s2 }
 0x595   :  { %2186 = vrot.lane.b32.xlu1 %v3246_v27, %s3508_s29  ;;  %v1462_v25 = vadd.f32 %v1460_v42, %v803_v51  ;;  %v2759_v55 = vmul.f32 %v2758_v63, %v4250_v35  ;;  %v2613_v51 = vsel %vm353_vm13, %v4498_v2, %v2612_v5 }
 0x596   :  { %2549 = vrot.lane.b32.xlu0 %v3296_v56, %s3510_s9  ;;  %v1481_v56 = vrot.slane %v4474_v8, 2 }
 0x597   :  { %v1972_v50 = vpop.permute.xlu1 %1971 }
 0x598   :  { %v4630_v20 = vpop.permute.xlu0 %2676  ;;  %v1973_v30 = vrot.slane %v1972_v50, 2  ;;  %v1482_v11 = vsel %vm1474_vm10, %v4474_v8, %v1481_v56 }
 0x599   :  { %2208 = vrot.lane.b32.xlu1 %v3249_v48, %s3509_s7  ;;  %v1484_v57 = vadd.f32 %v1482_v11, %v1469_v53 }
 0x59a   :  { %2092 = vrot.lane.b32.xlu0 %v3233_v34, %s3511_s13  ;;  %v1974_v14 = vsel %vm353_vm13, %v1972_v50, %v1973_v30  ;;  %v2120_v50 = vmul.f32 %v2119_v13, %v4250_v35  ;;  %v2598_v34 = vstv %s3302_s5  ;;  %v2117_v30 = vmul.f32 %v2116_v22, %v4250_v35  ;;  %v3430_v22 = vld [vmem:[#allocation4] sm:$0xf]  ;;  %s4850_s5 = sld [smem:[#allocation10 + $0x2a]] }
 0x59b   :  { %v4642_v61 = vadd.f32 %v1974_v14, %v1965_v62  ;;  %v2451_v4 = vpop.permute.xlu1 %2450  ;;  %v2599_v6 = vmul.f32 %v2598_v34, %v4244_v45  ;;  %v2279_v62 = vstv %s3258_s19 }
 0x59c   :  { %v4644_v24 = vpop.permute.xlu0 %2836  ;;  %v2452_v27 = vrot.slane %v2451_v4, 2  ;;  %v3237_v46 = vrot.slane %v2120_v50, 9  ;;  %v2280_v1 = vmul.f32 %v2279_v62, %v4246_v10  ;;  %v2773_v50 = vsel %vm353_vm13, %v4516_v33, %v2772_v41 }
 0x59d   :  { %2230 = vrot.lane.b32.xlu1 %v3252_v43, %s3510_s9  ;;  %v3303_v14 = vrot.slane %v2599_v6, 9  ;;  %v2315_v62 = vrot.slane %v4518_v31, 2  ;;  %v2794_v33 = vrot.slane %v4564_v7, 2 }
 0x59e   :  { %2572 = vrot.lane.b32.xlu0 %v3299_v26, %s3511_s13  ;;  %v2453_v0 = vsel %vm353_vm13, %v2451_v4, %v2452_v27  ;;  %v2125_v4 = vadd.f32 %v3237_v46, %v2117_v30  ;;  %v3259_v45 = vrot.slane %v2280_v1, 9 }
 0x59f   :  { %v4659_v32 = vadd.f32 %v2453_v0, %v2444_v3  ;;  %v4663_v18 = vpop.permute.xlu1 %1993  ;;  %v2755_v3 = vstv %s4681_s20  ;;  %v2604_v40 = vadd.f32 %v3303_v14, %v2596_v44  ;;  %v3325_v0 = vrot.slane %v2759_v55, 9  ;;  %s1807_s20 = sld [smem:[#allocation10]] }
 0x5a0   :  { %v4661_v38 = vpop.permute.xlu0 %2698  ;;  %v2756_v53 = vmul.f32 %v2755_v3, %v4250_v35 }
 0x5a1   :  { %2252 = vrot.lane.b32.xlu1 %v3255_v17, %s3511_s13  ;;  %v2615_v11 = vadd.f32 %v2613_v51, %v2604_v40  ;;  %v2316_v51 = vsel %vm376_vm14, %v4518_v31, %v2315_v62  ;;  %v2816_v31 = vrot.slane %v4609_v58, 2 }
 0x5a2   :  { %1471 = vrot.lane.b32.xlu0 %v1462_v25, %s3512_s11  ;;  %v2276_v25 = vstv %s4684_s1  ;;  %v2764_v46 = vadd.f32 %v3325_v0, %v2756_v53  ;;  %v2337_v0 = vrot.slane %v4544_v36, 2 }
 0x5a3   :  { %v4671_v29 = vpop.permute.xlu1 %2472  ;;  %v2277_v6 = vmul.f32 %v3430_v22, %v2276_v25  ;;  %v2817_v62 = vsel %vm399_vm15, %v4609_v58, %v2816_v31 }
 0x5a4   :  { %v4669_v49 = vpop.permute.xlu0 %2858  ;;  %v2775_v35 = vadd.f32 %v2773_v50, %v2764_v46 }
 0x5a6   :  { %1486 = vrot.lane.b32.xlu0 %v1484_v57, %s3506_s21  ;;  %v2634_v57 = vrot.slane %v4542_v47, 2 }
 0x5a7   :  { %v4676_v8 = vpop.permute.xlu1 %2015 }
 0x5a8   :  { %v4674_v54 = vpop.permute.xlu0 %2721  ;;  %v2635_v37 = vsel %vm376_vm14, %v4542_v47, %v2634_v57 }
 0x5ab   :  { %v2622_v52 = vpop.permute.xlu1 %2621 }
 0x5ac   :  { %v4679_v48 = vpop.permute.xlu0 %2881  ;;  %v2623_v26 = vrot.slane %v2622_v52, 2 }
 0x5ae   :  { %v2624_v10 = vsel %vm353_vm13, %v2622_v52, %v2623_v26  ;;  %v2294_v52 = vsel %vm353_vm13, %v4496_v39, %v2293_v19  ;;  %v2656_v39 = vrot.slane %v4589_v60, 2 }
 0x5af   :  { %v2782_v28 = vpop.permute.xlu1 %2781  ;;  %v2626_v63 = vadd.f32 %v2624_v10, %v2615_v11  ;;  %v2359_v10 = vrot.slane %v4566_v59, 2 }
 0x5b0   :  { %v2132_v21 = vpop.permute.xlu0 %2131  ;;  %v2783_v17 = vrot.slane %v2782_v28, 2 }
 0x5b1   :  { %v2133_v23 = vrot.slane %v2132_v21, 2 }
 0x5b2   :  { %v2784_v30 = vsel %vm353_vm13, %v2782_v28, %v2783_v17  ;;  %v2637_v28 = vadd.f32 %v2635_v37, %v2626_v63  ;;  %v2657_v17 = vsel %vm399_vm15, %v4589_v60, %v2656_v39  ;;  %v2338_v63 = vsel %vm399_vm15, %v4544_v36, %v2337_v0 }
 0x5b3   :  { %v2134_v43 = vsel %vm353_vm13, %v2132_v21, %v2133_v23  ;;  %v2644_v27 = vpop.permute.xlu1 %2643  ;;  %v2285_v21 = vadd.f32 %v3259_v45, %v2277_v6 }
 0x5b4   :  { %v4692_v42 = vadd.f32 %v2134_v43, %v2125_v4  ;;  %v4694_v56 = vpop.permute.xlu0 %2153  ;;  %v2645_v34 = vrot.slane %v2644_v27, 2  ;;  %v2786_v43 = vadd.f32 %v2784_v30, %v2775_v35  ;;  %v2360_v35 = vsel %vm422_vm0, %v4566_v59, %v2359_v10 }
 0x5b5   :  { %v2296_v26 = vadd.f32 %v2294_v52, %v2285_v21 }
 0x5b6   :  { %v2646_v14 = vsel %vm376_vm14, %v2644_v27, %v2645_v34  ;;  %v2795_v27 = vsel %vm376_vm14, %v4564_v7, %v2794_v33  ;;  %v2678_v34 = vrot.slane %v4630_v20, 2 }
 0x5b7   :  { %v2804_v2 = vpop.permute.xlu1 %2803  ;;  %v2648_v47 = vadd.f32 %v2646_v14, %v2637_v28  ;;  %v2797_v45 = vadd.f32 %v2795_v27, %v2786_v43 }
 0x5b8   :  { %v4705_v13 = vpop.permute.xlu0 %2175  ;;  %v2805_v55 = vrot.slane %v2804_v2, 2  ;;  %v2679_v33 = vsel %vm422_vm0, %v4630_v20, %v2678_v34 }
 0x5b9   :  { %v2659_v22 = vadd.f32 %v2657_v17, %v2648_v47  ;;  %v2403_v47 = vrot.slane %v4611_v16, 2 }
 0x5ba   :  { %v2806_v25 = vsel %vm376_vm14, %v2804_v2, %v2805_v55 }
 0x5bb   :  { %v2666_v23 = vpop.permute.xlu1 %2665  ;;  %v2808_v7 = vadd.f32 %v2806_v25, %v2797_v45 }
 0x5bc   :  { %v2303_v5 = vpop.permute.xlu0 %2302  ;;  %v2667_v44 = vrot.slane %v2666_v23, 2 }
 0x5bd   :  { %v2304_v4 = vrot.slane %v2303_v5, 2  ;;  %v2819_v36 = vadd.f32 %v2817_v62, %v2808_v7  ;;  %v5138_v62 = vld [vmem:[#allocation17_spill] sm:$0xff] }
 0x5be   :  { %v2668_v53 = vsel %vm399_vm15, %v2666_v23, %v2667_v44  ;;  %v2381_v23 = vrot.slane %v4591_v15, 2  ;;  %v2700_v44 = vrot.slane %v4661_v38, 2 }
 0x5bf   :  { %v2305_v1 = vsel %vm353_vm13, %v2303_v5, %v2304_v4  ;;  %v2826_v40 = vpop.permute.xlu1 %2825  ;;  %v2670_v30 = vadd.f32 %v2668_v53, %v2659_v22 }
 0x5c0   :  { %v2307_v3 = vadd.f32 %v2305_v1, %v2296_v26  ;;  %v2325_v41 = vpop.permute.xlu0 %2324  ;;  %v2827_v50 = vrot.slane %v2826_v40, 2  ;;  %v2838_v26 = vrot.slane %v4644_v24, 2  ;;  %v2382_v20 = vsel %vm445_vm1, %v4591_v15, %v2381_v23 }
 0x5c1   :  { %v2326_v19 = vrot.slane %v2325_v41, 2  ;;  %v2681_v28 = vadd.f32 %v2679_v33, %v2670_v30  ;;  %v2860_v15 = vrot.slane %v4669_v49, 2 }
 0x5c2   :  { %v2318_v11 = vadd.f32 %v2316_v51, %v2307_v3  ;;  %v2828_v37 = vsel %vm399_vm15, %v2826_v40, %v2827_v50  ;;  %v2839_v27 = vsel %vm422_vm0, %v4644_v24, %v2838_v26 }
 0x5c3   :  { %v2327_v57 = vsel %vm376_vm14, %v2325_v41, %v2326_v19  ;;  %v2688_v46 = vpop.permute.xlu1 %2687  ;;  %v2830_v58 = vadd.f32 %v2828_v37, %v2819_v36  ;;  %v2861_v30 = vsel %vm445_vm1, %v4669_v49, %v2860_v15  ;;  %v2749_v37 = vrot.slane %v5138_v62, 6 }
 0x5c4   :  { %v2329_v2 = vadd.f32 %v2327_v57, %v2318_v11  ;;  %v2347_v6 = vpop.permute.xlu0 %2346  ;;  %v2689_v52 = vrot.slane %v2688_v46, 2  ;;  %v2701_v11 = vsel %vm445_vm1, %v4661_v38, %v2700_v44  ;;  %v5137_v57 = vld [vmem:[#allocation18_spill] sm:$0xff]  ;;  %v2723_v38 = vrot.slane %v4674_v54, 2 }
 0x5c5   :  { %v2348_v60 = vrot.slane %v2347_v6, 2  ;;  %v2841_v17 = vadd.f32 %v2839_v27, %v2830_v58  ;;  %v2429_v50 = vrot.slane %v5137_v57, 6  ;;  %v1831_v27 = vstv %s4770_s24 }
 0x5c6   :  { %v2340_v21 = vadd.f32 %v2338_v63, %v2329_v2  ;;  %v2690_v59 = vsel %vm422_vm0, %v2688_v46, %v2689_v52  ;;  %v2724_v49 = vsel %vm468_vm3, %v4674_v54, %v2723_v38 }
 0x5c7   :  { %v2349_v5 = vsel %vm399_vm15, %v2347_v6, %v2348_v60  ;;  %v2848_v4 = vpop.permute.xlu1 %2847  ;;  %v2692_v3 = vadd.f32 %v2690_v59, %v2681_v28  ;;  %v2404_v6 = vsel %vm468_vm3, %v4611_v16, %v2403_v47  ;;  %v2430_v36 = vsel %vm961_vm4, %v2429_v50, %v5137_v57  ;;  %v5141_v57 = vld [vmem:[#allocation23_spill] sm:$0xff] }
 0x5c8   :  { %v2351_v14 = vadd.f32 %v2349_v5, %v2340_v21  ;;  %v2369_v55 = vpop.permute.xlu0 %2368  ;;  %v2849_v43 = vrot.slane %v2848_v4, 2  ;;  %v352_v50 = vrot.slane %v5141_v57, 2 }
 0x5c9   :  { %v2370_v39 = vrot.slane %v2369_v55, 2  ;;  %v2703_v24 = vadd.f32 %v2701_v11, %v2692_v3  ;;  %v4811_v11 = vld [vmem:[#allocation4] sm:$0xf] }
 0x5ca   :  { %v2362_v1 = vadd.f32 %v2360_v35, %v2351_v14  ;;  %v2850_v25 = vsel %vm422_vm0, %v2848_v4, %v2849_v43  ;;  %v2883_v14 = vrot.slane %v4679_v48, 2  ;;  %v2750_v43 = vsel %vm1283_vm6, %v2749_v37, %v5138_v62 }
 0x5cb   :  { %v2371_v51 = vsel %vm422_vm0, %v2369_v55, %v2370_v39  ;;  %v2710_v0 = vpop.permute.xlu1 %2709  ;;  %v2852_v34 = vadd.f32 %v2850_v25, %v2841_v17 }
 0x5cc   :  { %v2373_v41 = vadd.f32 %v2371_v51, %v2362_v1  ;;  %v2391_v40 = vpop.permute.xlu0 %2390  ;;  %v2711_v10 = vrot.slane %v2710_v0, 2  ;;  %v5140_v1 = vld [vmem:[#allocation19_spill] sm:$0xff]  ;;  %v337_v51 = vstv %s4759_s23 }
 0x5cd   :  { %v2392_v19 = vrot.slane %v2391_v40, 2  ;;  %v2863_v5 = vadd.f32 %v2861_v30, %v2852_v34  ;;  %v2909_v44 = vrot.slane %v5140_v1, 6  ;;  %v338_v25 = vmul.f32 %v337_v51, %v4232_v12  ;;  %v5144_v51 = vld [vmem:[#allocation30_spill] sm:$0xff] }
 0x5ce   :  { %v2384_v45 = vadd.f32 %v2382_v20, %v2373_v41  ;;  %v2712_v53 = vsel %vm445_vm1, %v2710_v0, %v2711_v10  ;;  %v2884_v20 = vsel %vm468_vm3, %v4679_v48, %v2883_v14  ;;  %v1822_v0 = vstv %s4764_s8 }
 0x5cf   :  { %v2393_v31 = vsel %vm445_vm1, %v2391_v40, %v2392_v19  ;;  %v2870_v2 = vpop.permute.xlu1 %2869  ;;  %v2714_v60 = vadd.f32 %v2712_v53, %v2703_v24  ;;  %v2910_v17 = vsel %vm1444_vm7, %v2909_v44, %v5140_v1  ;;  %v1823_v15 = vmul.f32 %v4811_v11, %v1822_v0 }
 0x5d0   :  { %v2395_v7 = vadd.f32 %v2393_v31, %v2384_v45  ;;  %v2413_v22 = vpop.permute.xlu0 %2412  ;;  %v2871_v63 = vrot.slane %v2870_v2, 2  ;;  %v1832_v31 = vmul.f32 %v4811_v11, %v1831_v27  ;;  %v334_v53 = vstv %s4777_s27 }
 0x5d1   :  { %v2414_v46 = vrot.slane %v2413_v22, 2  ;;  %v2726_v59 = vadd.f32 %v2724_v49, %v2714_v60  ;;  %v1844_v34 = vstv %s4782_s28  ;;  %v3032_v24 = vrot.slane %v338_v25, 9 }
 0x5d2   :  { %v2406_v52 = vadd.f32 %v2404_v6, %v2395_v7  ;;  %v2872_v35 = vsel %vm445_vm1, %v2870_v2, %v2871_v63  ;;  %v1853_v7 = vstv %s4785_s10  ;;  %v5142_v6 = vld [vmem:[#allocation29_spill] sm:$0xff]  ;;  %v1845_v63 = vmul.f32 %v4811_v11, %v1844_v34 }
 0x5d3   :  { %v2415_v21 = vsel %vm468_vm3, %v2413_v22, %v2414_v46  ;;  %v2733_v33 = vpop.permute.xlu1 %2732  ;;  %v2874_v26 = vadd.f32 %v2872_v35, %v2863_v5  ;;  %v364_v38 = vrot.slane %v5142_v6, 2  ;;  %v335_v46 = vmul.f32 %v334_v53, %v4232_v12 }
 0x5d4   :  { %v2417_v16 = vadd.f32 %v2415_v21, %v2406_v52  ;;  %v4773_v23 = vpop.permute.xlu0 %2197  ;;  %v2734_v55 = vrot.slane %v2733_v33, 2  ;;  %v3197_v60 = vrot.slane %v1832_v31, 9  ;;  %v1854_v52 = vmul.f32 %v4811_v11, %v1853_v7 }
 0x5d5   :  { %v2886_v41 = vadd.f32 %v2884_v20, %v2874_v26  ;;  %v354_v30 = vsel %vm353_vm13, %v5141_v57, %v352_v50  ;;  %v1866_v21 = vstv %s4796_s17  ;;  %v1875_v35 = vstv %s4801_s14 }
 0x5d6   :  { %v2432_v4 = vmul.f32 %v2430_v36, %v2417_v16  ;;  %v2735_v39 = vsel %vm468_vm3, %v2733_v33, %v2734_v55  ;;  %v343_v62 = vadd.f32 %v3032_v24, %v335_v46  ;;  %v365_v16 = vsel %vm353_vm13, %v5142_v6, %v364_v38 }
 0x5d7   :  { %v2737_v58 = vadd.f32 %v2735_v39, %v2726_v59  ;;  %v2893_v54 = vpop.permute.xlu1 %2892  ;;  %v1995_v5 = vrot.slane %v4663_v18, 2  ;;  %v1867_v49 = vmul.f32 %v4811_v11, %v1866_v21  ;;  %v3200_v14 = vrot.slane %v1854_v52, 9  ;;  %v5145_v52 = vld [vmem:[#allocation25_spill] sm:$0xff] }
 0x5d8   :  { %v4789_v28 = vpop.permute.xlu0 %2219  ;;  %2921 = vrot.lane.b32.xlu0 %v2432_v4, %s5139_s12  ;;  %v2894_v47 = vrot.slane %v2893_v54, 2  ;;  %v356_v36 = vadd.f32 %v354_v30, %v343_v62  ;;  %v1876_v55 = vmul.f32 %v4811_v11, %v1875_v35  ;;  %v5143_v4 = vld [vmem:[#allocation24_spill] sm:$0xff]  ;;  %v1888_v39 = vstv %s4815_s15 }
 0x5d9   :  { %v2752_v3 = vmul.f32 %v2750_v43, %v2737_v58  ;;  %v375_v26 = vrot.slane %v5143_v4, 2  ;;  %v1897_v43 = vstv %s4821_s18  ;;  %v387_v20 = vrot.slane %v5144_v51, 2 }
 0x5da   :  { %v2895_v40 = vsel %vm468_vm3, %v2893_v54, %v2894_v47  ;;  %v367_v58 = vadd.f32 %v365_v16, %v356_v36  ;;  %v1996_v47 = vsel %vm376_vm14, %v4663_v18, %v1995_v5  ;;  %v1889_v0 = vmul.f32 %v4811_v11, %v1888_v39 }
 0x5db   :  { %v2897_v19 = vadd.f32 %v2895_v40, %v2886_v41  ;;  %2928 = vrot.lane.b32.xlu1 %v2752_v3, %s5139_s12  ;;  %v4807_v48 = vpop.permute.xlu1 %2494  ;;  %v2474_v3 = vrot.slane %v4671_v29, 2  ;;  %v1898_v27 = vmul.f32 %v4811_v11, %v1897_v43  ;;  %v377_v25 = vsel %vm376_vm14, %v5143_v4, %v375_v26 }
 0x5dc   :  { %v4804_v10 = vpop.permute.xlu0 %2241  ;;  %v388_v57 = vsel %vm376_vm14, %v5144_v51, %v387_v20  ;;  %v2017_v34 = vrot.slane %v4676_v8, 2  ;;  %v398_v30 = vrot.slane %v5145_v52, 2  ;;  %v2496_v16 = vrot.slane %v4807_v48, 2 }
 0x5dd   :  { %v2912_v45 = vmul.f32 %v2910_v17, %v2897_v19  ;;  %v1910_v17 = vstv %s4833_s16  ;;  %v2475_v50 = vsel %vm376_vm14, %v4671_v29, %v2474_v3 }
 0x5de   :  { %v1911_v6 = vmul.f32 %v4811_v11, %v1910_v17  ;;  %v400_v43 = vsel %vm399_vm15, %v5145_v52, %v398_v30 }
 0x5df   :  { %1825 = vrot.lane.b32.xlu1 %v1823_v15, %s3506_s21  ;;  %2942 = vrot.lane.b32.xlu0 %v2912_v45, %s3512_s11  ;;  %v4827_v2 = vpop.permute.xlu1 %2037  ;;  %v1919_v45 = vstv %s4839_s25  ;;  %v379_v15 = vadd.f32 %v377_v25, %v367_v58  ;;  %v2497_v58 = vsel %vm399_vm15, %v4807_v48, %v2496_v16  ;;  %v5148_v25 = vld [vmem:[#allocation32_spill] sm:$0xff] }
 0x5e0   :  { %v4823_v22 = vpop.permute.xlu0 %2267  ;;  %v1920_v38 = vmul.f32 %v4811_v11, %v1919_v45  ;;  %v433_v48 = vrot.slane %v5148_v25, 2  ;;  %v2039_v45 = vrot.slane %v4827_v2, 2 }
 0x5e1   :  { %v390_v62 = vadd.f32 %v388_v57, %v379_v15 }
 0x5e3   :  { %1847 = vrot.lane.b32.xlu1 %v1845_v63, %s3507_s26  ;;  %1836 = vrot.lane.b32.xlu0 %v3197_v60, %s3506_s21  ;;  %v4843_v12 = vpop.permute.xlu1 %2516  ;;  %v1932_v63 = vstv %s4850_s5  ;;  %v1941_v60 = vstv %s4856_s22 }
 0x5e4   :  { %v1983_v37 = vpop.permute.xlu0 %1982  ;;  %v1933_v36 = vmul.f32 %v4811_v11, %v1932_v63  ;;  %v2155_v63 = vrot.slane %v4694_v56, 2 }
 0x5e5   :  { %v1984_v33 = vrot.slane %v1983_v37, 2 }
 0x5e7   :  { %v1985_v59 = vsel %vm353_vm13, %v1983_v37, %v1984_v33  ;;  %1869 = vrot.lane.b32.xlu1 %v1867_v49, %s3508_s29  ;;  %1858 = vrot.lane.b32.xlu0 %v3200_v14, %s3507_s26  ;;  %v4861_v44 = vpop.permute.xlu1 %2059  ;;  %v2018_v37 = vsel %vm399_vm15, %v4676_v8, %v2017_v34  ;;  %v3209_v49 = vrot.slane %v1920_v38, 9  ;;  %v1942_v14 = vmul.f32 %v4811_v11, %v1941_v60 }
 0x5e8   :  { %v1987_v54 = vadd.f32 %v1985_v59, %v4642_v61  ;;  %v2462_v1 = vpop.permute.xlu0 %2461  ;;  %v3203_v61 = vrot.slane %v1876_v55, 9  ;;  %v5146_v55 = vld [vmem:[#allocation31_spill] sm:$0xff]  ;;  %v2040_v60 = vsel %vm422_vm0, %v4827_v2, %v2039_v45 }
 0x5e9   :  { %v2463_v41 = vrot.slane %v2462_v1, 2  ;;  %v410_v4 = vrot.slane %v5146_v55, 2 }
 0x5ea   :  { %v1998_v40 = vadd.f32 %v1996_v47, %v1987_v54  ;;  %v402_v54 = vadd.f32 %v400_v43, %v390_v62 }
 0x5eb   :  { %v2464_v19 = vsel %vm353_vm13, %v2462_v1, %v2463_v41  ;;  %1891 = vrot.lane.b32.xlu1 %v1889_v0, %s3509_s7  ;;  %1880 = vrot.lane.b32.xlu0 %v3203_v61, %s3508_s29  ;;  %v4877_v53 = vpop.permute.xlu1 %2538  ;;  %v3212_v1 = vrot.slane %v1942_v14, 9  ;;  %v411_v51 = vsel %vm399_vm15, %v5146_v55, %v410_v4  ;;  %v5147_v41 = vld [vmem:[#allocation26_spill] sm:$0xff]  ;;  %v2518_v0 = vrot.slane %v4843_v12, 2 }
 0x5ec   :  { %v2466_v18 = vadd.f32 %v2464_v19, %v4659_v32  ;;  %v2005_v31 = vpop.permute.xlu0 %2004  ;;  %v3206_v32 = vrot.slane %v1898_v27, 9  ;;  %v413_v27 = vadd.f32 %v411_v51, %v402_v54  ;;  %v2177_v55 = vrot.slane %v4705_v13, 2  ;;  %v5151_v51 = vld [vmem:[#allocation28_spill] sm:$0xff] }
 0x5ed   :  { %v2006_v7 = vrot.slane %v2005_v31, 2 }
 0x5ee   :  { %v2477_v24 = vadd.f32 %v2475_v50, %v2466_v18  ;;  %v2519_v50 = vsel %vm422_vm0, %v4843_v12, %v2518_v0 }
 0x5ef   :  { %v2007_v46 = vsel %vm376_vm14, %v2005_v31, %v2006_v7  ;;  %1913 = vrot.lane.b32.xlu1 %v1911_v6, %s3510_s9  ;;  %1902 = vrot.lane.b32.xlu0 %v3206_v32, %s3509_s7  ;;  %v4892_v29 = vpop.permute.xlu1 %2081  ;;  %v5149_v7 = vld [vmem:[#allocation27_spill] sm:$0xff] }
 0x5f0   :  { %v2009_v21 = vadd.f32 %v2007_v46, %v1998_v40  ;;  %v2484_v35 = vpop.permute.xlu0 %2483  ;;  %v421_v40 = vrot.slane %v5147_v41, 2  ;;  %v434_v46 = vsel %vm422_vm0, %v5148_v25, %v433_v48  ;;  %v2083_v45 = vrot.slane %v4892_v29, 2 }
 0x5f1   :  { %v2485_v5 = vrot.slane %v2484_v35, 2 }
 0x5f2   :  { %v2020_v33 = vadd.f32 %v2018_v37, %v2009_v21  ;;  %v423_v57 = vsel %vm422_vm0, %v5147_v41, %v421_v40  ;;  %v2540_v21 = vrot.slane %v4877_v53, 2 }
 0x5f3   :  { %v2486_v26 = vsel %vm376_vm14, %v2484_v35, %v2485_v5  ;;  %1935 = vrot.lane.b32.xlu1 %v1933_v36, %s3511_s13  ;;  %1924 = vrot.lane.b32.xlu0 %v3209_v49, %s3510_s9  ;;  %v4903_v8 = vpop.permute.xlu1 %2561  ;;  %v425_v6 = vadd.f32 %v423_v57, %v413_v27  ;;  %v2061_v49 = vrot.slane %v4861_v44, 2  ;;  %v2199_v27 = vrot.slane %v4773_v23, 2 }
 0x5f4   :  { %v2488_v59 = vadd.f32 %v2486_v26, %v2477_v24  ;;  %v2027_v39 = vpop.permute.xlu0 %2026  ;;  %v444_v24 = vrot.slane %v5149_v7, 2  ;;  %v2541_v54 = vsel %vm445_vm1, %v4877_v53, %v2540_v21  ;;  %v2178_v53 = vsel %vm399_vm15, %v4705_v13, %v2177_v55 }
 0x5f5   :  { %v2028_v20 = vrot.slane %v2027_v39, 2  ;;  %v436_v16 = vadd.f32 %v434_v46, %v425_v6  ;;  %v2200_v46 = vsel %vm422_vm0, %v4773_v23, %v2199_v27 }
 0x5f6   :  { %v2499_v11 = vadd.f32 %v2497_v58, %v2488_v59  ;;  %v446_v37 = vsel %vm445_vm1, %v5149_v7, %v444_v24  ;;  %v2156_v58 = vsel %vm376_vm14, %v4694_v56, %v2155_v63  ;;  %v5152_v24 = vld [vmem:[#allocation34_spill] sm:$0xff]  ;;  %v2221_v63 = vrot.slane %v4789_v28, 2 }
 0x5f7   :  { %1946 = vrot.lane.b32.xlu0 %v3212_v1, %s3511_s13  ;;  %v4912_v3 = vpop.permute.xlu1 %2107  ;;  %v2029_v19 = vsel %vm399_vm15, %v2027_v39, %v2028_v20  ;;  %v467_v20 = vrot.slane %v5151_v51, 2  ;;  %v479_v13 = vrot.slane %v5152_v24, 2 }
 0x5f8   :  { %v2506_v47 = vpop.permute.xlu0 %2505  ;;  %v2031_v32 = vadd.f32 %v2029_v19, %v2020_v33  ;;  %v5150_v33 = vld [vmem:[#allocation33_spill] sm:$0xff]  ;;  %v2109_v6 = vrot.slane %v4912_v3, 6 }
 0x5f9   :  { %v2507_v61 = vrot.slane %v2506_v47, 2  ;;  %v456_v36 = vrot.slane %v5150_v33, 2  ;;  %v480_v23 = vsel %vm468_vm3, %v5152_v24, %v479_v13 }
 0x5fa   :  { %v2042_v5 = vadd.f32 %v2040_v60, %v2031_v32 }
 0x5fb   :  { %v2508_v17 = vsel %vm399_vm15, %v2506_v47, %v2507_v61  ;;  %v4920_v31 = vpop.permute.xlu1 %2587  ;;  %v448_v47 = vadd.f32 %v446_v37, %v436_v16  ;;  %v457_v0 = vsel %vm445_vm1, %v5150_v33, %v456_v36 }
 0x5fc   :  { %v2510_v15 = vadd.f32 %v2508_v17, %v2499_v11  ;;  %v2049_v18 = vpop.permute.xlu0 %2048 }
 0x5fd   :  { %v2050_v34 = vrot.slane %v2049_v18, 2 }
 0x5fe   :  { %v2521_v38 = vadd.f32 %v2519_v50, %v2510_v15  ;;  %v2563_v15 = vrot.slane %v4903_v8, 2  ;;  %v459_v50 = vadd.f32 %v457_v0, %v448_v47 }
 0x5ff   :  { %v2143_v30 = vpop.permute.xlu1 %2142  ;;  %v2051_v12 = vsel %vm422_vm0, %v2049_v18, %v2050_v34 }
 0x600   :  { %v2528_v52 = vpop.permute.xlu0 %2527  ;;  %v2144_v62 = vrot.slane %v2143_v30, 2  ;;  %v2053_v4 = vadd.f32 %v2051_v12, %v2042_v5  ;;  %v2084_v12 = vsel %vm468_vm3, %v4892_v29, %v2083_v45  ;;  %v1451_v29 = vrot.slane %v4434_v9, 2 }
 0x601   :  { %v2529_v35 = vrot.slane %v2528_v52, 2 }
 0x602   :  { %v2145_v2 = vsel %vm353_vm13, %v2143_v30, %v2144_v62 }
 0x603   :  { %v2530_v14 = vsel %vm422_vm0, %v2528_v52, %v2529_v35  ;;  %v2147_v59 = vadd.f32 %v2145_v2, %v4692_v42  ;;  %v2165_v43 = vpop.permute.xlu1 %2164  ;;  %v2062_v42 = vsel %vm445_vm1, %v4861_v44, %v2061_v49  ;;  %v469_v44 = vsel %vm468_vm3, %v5151_v51, %v467_v20 }
 0x604   :  { %v2532_v26 = vadd.f32 %v2530_v14, %v2521_v38  ;;  %v2071_v39 = vpop.permute.xlu0 %2070  ;;  %v2166_v1 = vrot.slane %v2165_v43, 2  ;;  %v2064_v25 = vadd.f32 %v2062_v42, %v2053_v4  ;;  %v2564_v35 = vsel %vm468_vm3, %v4903_v8, %v2563_v15 }
 0x605   :  { %v2072_v11 = vrot.slane %v2071_v39, 2  ;;  %v2158_v41 = vadd.f32 %v2156_v58, %v2147_v59  ;;  %v471_v16 = vadd.f32 %v469_v44, %v459_v50  ;;  %v2110_v49 = vsel %vm61_vm2, %v2109_v6, %v4912_v3  ;;  %v483_v3 = vld [vmem:[%s5057_s4] sm:$0x1] }
 0x606   :  { %v2543_v40 = vadd.f32 %v2541_v54, %v2532_v26  ;;  %v2167_v56 = vsel %vm376_vm14, %v2165_v43, %v2166_v1  ;;  %v2222_v59 = vsel %vm445_vm1, %v4789_v28, %v2221_v63  ;;  %v1453_v51 = vsel %vm1452_vm9, %v4434_v9, %v1451_v29 }
 0x607   :  { %v2073_v61 = vsel %vm445_vm1, %v2071_v39, %v2072_v11  ;;  %v2169_v48 = vadd.f32 %v2167_v56, %v2158_v41  ;;  %v2187_v17 = vpop.permute.xlu1 %2186  ;;  %v2243_v39 = vrot.slane %v4804_v10, 2  ;;  %v482_v58 = vadd.f32 %v480_v23, %v471_v16 }
 0x608   :  { %v2550_v19 = vpop.permute.xlu0 %2549  ;;  %v2188_v57 = vrot.slane %v2187_v17, 2  ;;  %v2075_v34 = vadd.f32 %v2073_v61, %v2064_v25  ;;  %v2589_v50 = vrot.slane %v4920_v31, 6  ;;  %v3513_v23 = vmov 1  }
 0x609   :  { %v2551_v18 = vrot.slane %v2550_v19, 2  ;;  %v2180_v7 = vadd.f32 %v2178_v53, %v2169_v48  ;;  %v2244_v41 = vsel %vm468_vm3, %v4804_v10, %v2243_v39  ;;  %v484_v61 = vmul.f32 %v483_v3, %v482_v58 }
 0x60a   :  { %v2189_v38 = vsel %vm399_vm15, %v2187_v17, %v2188_v57  ;;  %v2086_v5 = vadd.f32 %v2084_v12, %v2075_v34 }
 0x60b   :  { %v2552_v32 = vsel %vm445_vm1, %v2550_v19, %v2551_v18  ;;  %v2191_v52 = vadd.f32 %v2189_v38, %v2180_v7  ;;  %v2209_v21 = vpop.permute.xlu1 %2208  ;;  %v1455_v25 = vadd.f32 %v1453_v51, %v484_v61 }
 0x60c   :  { %v2554_v60 = vadd.f32 %v2552_v32, %v2543_v40  ;;  %v2093_v30 = vpop.permute.xlu0 %2092  ;;  %v2210_v37 = vrot.slane %v2209_v21, 2  ;;  %v2269_v40 = vrot.slane %v4823_v22, 6 }
 0x60d   :  { %v2094_v62 = vrot.slane %v2093_v30, 2  ;;  %v2202_v33 = vadd.f32 %v2200_v46, %v2191_v52  ;;  %v3184_v46 = vld [vmem:[%s5056_s3 + $0x8] sm:$0xff] }
 0x60e   :  { %v2566_v36 = vadd.f32 %v2564_v35, %v2554_v60  ;;  %v2211_v2 = vsel %vm422_vm0, %v2209_v21, %v2210_v37  ;;  %v2270_v19 = vsel %vm159_vm5, %v2269_v40, %v4823_v22  ;;  %v2590_v22 = vsel %vm1122_vm8, %v2589_v50, %v4920_v31  ;;  %v2984_v35 = vld [vmem:[#allocation3 + $0x8] sm:$0xff] }
 0x60f   :  { %v2095_v14 = vsel %vm468_vm3, %v2093_v30, %v2094_v62  ;;  %v2213_v8 = vadd.f32 %v2211_v2, %v2202_v33  ;;  %v2231_v26 = vpop.permute.xlu1 %2230  ;;  %v5153_v30 = vld [vmem:[#allocation20_spill] sm:$0xff]  ;;  %v2986_v16 = vmul.f32 %v3184_v46, %v2984_v35  ;;  %v2961_v33 = vld [vmem:[%s5056_s3] sm:$0xff]  ;;  %v1812_v2 = vstv %s3193_s30 }
 0x610   :  { %v2097_v55 = vadd.f32 %v2095_v14, %v2086_v5  ;;  %v2573_v4 = vpop.permute.xlu0 %2572  ;;  %v2232_v43 = vrot.slane %v2231_v26, 2  ;;  %v1523_v21 = vmul.f32 %v3184_v46, %v5153_v30  ;;  %v2960_v5 = vld [vmem:[#allocation3] sm:$0xff]  ;;  %v1806_v14 = vld [vmem:[#allocation4] sm:$0x3] }
 0x611   :  { %v2224_v11 = vadd.f32 %v2222_v59, %v2213_v8  ;;  %v2574_v57 = vrot.slane %v2573_v4, 2  ;;  %v1813_v29 = vmul.f32 %v1812_v2, %v1806_v14 }
 0x612   :  { %v2112_v54 = vmul.f32 %v2110_v49, %v2097_v55  ;;  %v2233_v1 = vsel %vm445_vm1, %v2231_v26, %v2232_v43  ;;  %v3432_v49 = vld [vmem:[%s5056_s3] sm:$0xff] }
 0x613   :  { %v2235_v20 = vadd.f32 %v2233_v1, %v2224_v11  ;;  %v2253_v28 = vpop.permute.xlu1 %2252  ;;  %v2575_v34 = vsel %vm468_vm3, %v2573_v4, %v2574_v57  ;;  %v1809_v4 = vstv %s1807_s20  ;;  %v3194_v59 = vrot.slane %v1813_v29, 9 }
 0x614   :  { %v1472_v47 = vpop.permute.xlu0 %1471  ;;  %2914 = vrot.lane.b32.xlu1 %v2112_v54, %s5139_s12  ;;  %v2254_v42 = vrot.slane %v2253_v28, 2  ;;  %v2577_v13 = vadd.f32 %v2575_v34, %v2566_v36  ;;  %v2962_v36 = vmul.f32 %v2961_v33, %v2960_v5  ;;  %v1810_v43 = vmul.f32 %v1809_v4, %v1806_v14  ;;  %v1952_v5 = vld [vmem:[%s5057_s4] sm:$0x1]  ;;  %s3514_s12 = smov [#allocation11]  }
 0x615   :  { %v1473_v0 = vrot.slane %v1472_v47, 2  ;;  %v2246_v56 = vadd.f32 %v2244_v41, %v2235_v20  ;;  %s3008_s17 = sshll.u32 %s3514_s12, 4  ;;  %s3009_s17 = int_to_ptr.vmem [resolvable:$true] %s3008_s17 }
 0x616   :  { %v2255_v27 = vsel %vm468_vm3, %v2253_v28, %v2254_v42  ;;  %v2592_v60 = vmul.f32 %v2590_v22, %v2577_v13  ;;  %v1818_v54 = vadd.f32 %v3194_v59, %v1810_v43  ;;  %s3465_s14 = scalar_lea.vmem %s3009_s17, 512  ;;  %p3470_p11 = scmp.lt.s32.totalorder %s3009_s17, %s3009_s17 }
 0x617   :  { %v1475_v53 = vsel %vm1474_vm10, %v1472_v47, %v1473_v0  ;;  %v2257_v9 = vadd.f32 %v2255_v27, %v2246_v56  ;;  %p3466_p10 = scmp.ne.s32.totalorder %s3009_s17, %s3465_s14  ;;  %p3471_p12 = scmp.lt.s32.totalorder %s3465_s14, %s3465_s14 }
 0x618   :  { %v1487_v48 = vpop.permute.xlu0 %1486  ;;  %v1477_v45 = vadd.f32 %v1475_v53, %v1455_v25 }
 0x619   :  { %v1488_v17 = vrot.slane %v1487_v48, 2  ;;  %v2272_v15 = vmul.f32 %v2270_v19, %v2257_v9  ;;  %p3472_p13 = por %p3471_p12, %p3470_p11 }
 0x61b   :  { %v1489_v10 = vsel %vm353_vm13, %v1487_v48, %v1488_v17  ;;  %p3473_p0 = pnand %p3472_p13, %p3466_p10 }
 0x61c   :  { %v4996_v18 = vadd.f32 %v1489_v10, %v1477_v45 }
 0x64a   :  { %v2922_v44 = vpop.permute.xlu0 %2921 }
 0x64b   :  { %v2923_v7 = vrot.slane %v2922_v44, 2 }
 0x64d   :  { %v2924_v24 = vsel %vm1452_vm9, %v2922_v44, %v2923_v7  ;;  %v2929_v32 = vpop.permute.xlu1 %2928 }
 0x64e   :  { %v2926_v6 = vadd.f32 %v2924_v24, %v2272_v15  ;;  %v2930_v38 = vrot.slane %v2929_v32, 2 }
 0x650   :  { %2935 = vrot.lane.b32.xlu0 %v2926_v6, %s3512_s11  ;;  %v2931_v63 = vsel %vm1452_vm9, %v2929_v32, %v2930_v38  ;;  %v1492_v6 = vmul.f32 0.5, %v4996_v18 }
 0x651   :  { %v2943_v52 = vpop.permute.xlu0 %2942  ;;  %v2933_v62 = vadd.f32 %v2931_v63, %v2592_v60  ;;  %v1826_v55 = vpop.permute.xlu1 %1825 }
 0x652   :  { %v2944_v12 = vrot.slane %v2943_v52, 2  ;;  %v1827_v26 = vrot.slane %v1826_v55, 2  ;;  %3422 = vtanh.f32 %v1492_v6 }
 0x654   :  { %1527 = vperm.xlu0 %3411, %v1523_v21   ;;  %v2945_v37 = vsel %vm1474_vm10, %v2943_v52, %v2944_v12  ;;  %v1828_v58 = vsel %vm353_vm13, %v1826_v55, %v1827_v26 }
 0x655   :  { %v2947_v31 = vadd.f32 %v2945_v37, %v2933_v62  ;;  %v1837_v8 = vpop.permute.xlu0 %1836  ;;  %v1848_v11 = vpop.permute.xlu1 %1847  ;;  %v1830_v1 = vadd.f32 %v1828_v58, %v1818_v54 }
 0x656   :  { %v1838_v39 = vrot.slane %v1837_v8, 2  ;;  %v1849_v20 = vrot.slane %v1848_v11, 2 }
 0x657   :  { %2949 = vrot.lane.b32.xlu1 %v2947_v31, %s3506_s21 }
 0x658   :  { %2990 = vperm.xlu0 %3411, %v2986_v16   ;;  %v1839_v3 = vsel %vm353_vm13, %v1837_v8, %v1838_v39  ;;  %v1850_v41 = vsel %vm376_vm14, %v1848_v11, %v1849_v20  ;;  %v5154_v39 = vld [vmem:[#allocation21_spill] sm:$0xff]  ;;  %v1496_v20 = vld [vmem:[%s5053_s0] sm:$0xff] }
 0x659   :  { %v1859_v51 = vpop.permute.xlu0 %1858  ;;  %v1841_v47 = vadd.f32 %v1839_v3, %v1830_v1  ;;  %v1870_v0 = vpop.permute.xlu1 %1869  ;;  %v1502_v43 = vsub.s32 0, %v5154_v39  ;;  %v3183_v1 = vld [vmem:[%s5053_s0 + $0x8] sm:$0xff] }
 0x65a   :  { %v1860_v28 = vrot.slane %v1859_v51, 2  ;;  %v1871_v56 = vrot.slane %v1870_v0, 2 }
 0x65b   :  { %2970 = vperm.xlu1 %3410, %v2962_v36   ;;  %v1852_v40 = vadd.f32 %v1850_v41, %v1841_v47 }
 0x65c   :  { %3413 = vset.pattern.permute.xlu0 %v3513_v23  ;;  %v1861_v42 = vsel %vm376_vm14, %v1859_v51, %v1860_v28  ;;  %v1872_v25 = vsel %vm399_vm15, %v1870_v0, %v1871_v56  ;;  %v5155_v56 = vld [vmem:[#allocation22_spill] sm:$0xff] }
 0x65d   :  { %1533 = vperm.xlu0 %3413, %v3184_v46   ;;  %v1881_v61 = vpop.permute.xlu0 %1880  ;;  %v1863_v53 = vadd.f32 %v1861_v42, %v1852_v40  ;;  %v1892_v48 = vpop.permute.xlu1 %1891 }
 0x65e   :  { %v1882_v27 = vrot.slane %v1881_v61, 2  ;;  %v1893_v45 = vrot.slane %v1892_v48, 2 }
 0x65f   :  { %3412 = vset.pattern.permute.xlu1 %v3513_v23  ;;  %v1874_v9 = vadd.f32 %v1872_v25, %v1863_v53  ;;  %v3423_v36 = vpop.eup %3422 }
 0x660   :  { %1513 = vperm.xlu1 %3412, %v3432_v49   ;;  %v1883_v19 = vsel %vm399_vm15, %v1881_v61, %v1882_v27  ;;  %v1894_v57 = vsel %vm422_vm0, %v1892_v48, %v1893_v45  ;;  %v1494_v2 = vmul.f32 0.5, %v3423_v36  ;;  %v3346_v45 = vld [vmem:[%s5053_s0 + $0x18] sm:$0xff] }
 0x661   :  { %v1903_v17 = vpop.permute.xlu0 %1902  ;;  %v1885_v15 = vadd.f32 %v1883_v19, %v1874_v9  ;;  %v1914_v50 = vpop.permute.xlu1 %1913 }
 0x662   :  { %v1904_v10 = vrot.slane %v1903_v17, 2  ;;  %v1915_v24 = vrot.slane %v1914_v50, 2  ;;  %v1495_v59 = vadd.f32 0.5, %v1494_v2 }
 0x663   :  { %v1896_v44 = vadd.f32 %v1894_v57, %v1885_v15  ;;  %v3345_v15 = vld [vmem:[%s5053_s0 + $0x10] sm:$0xff] }
 0x664   :  { %2976 = vperm.xlu1 %3412, %v2961_v33   ;;  %v1905_v34 = vsel %vm422_vm0, %v1903_v17, %v1904_v10  ;;  %v1916_v22 = vsel %vm445_vm1, %v1914_v50, %v1915_v24  ;;  %v1503_v3 = vrot.slane %v1495_v59, %v1502_v43 }
 0x665   :  { %v1925_v7 = vpop.permute.xlu0 %1924  ;;  %v1907_v13 = vadd.f32 %v1905_v34, %v1896_v44 }
 0x666   :  { %v1926_v32 = vrot.slane %v1925_v7, 2  ;;  %v1524_v47 = vmul.f32 %v3183_v1, %v1503_v3  ;;  %v1504_v40 = vmul.f32 %v1503_v3, %v1496_v20 }
 0x667   :  { %v1918_v38 = vadd.f32 %v1916_v22, %v1907_v13 }
 0x668   :  { %2996 = vperm.xlu1 %3412, %v3184_v46   ;;  %v1936_v46 = vpop.permute.xlu1 %1935  ;;  %v1927_v63 = vsel %vm445_vm1, %v1925_v7, %v1926_v32  ;;  %v1510_v53 = vmul.f32 %v5155_v56, %v1504_v40 }
 0x669   :  { %v1947_v60 = vpop.permute.xlu0 %1946  ;;  %v1937_v52 = vrot.slane %v1936_v46, 2  ;;  %v1929_v30 = vadd.f32 %v1927_v63, %v1918_v38 }
 0x66a   :  { %v1948_v21 = vrot.slane %v1947_v60, 2 }
 0x66b   :  { %v1938_v12 = vsel %vm468_vm3, %v1936_v46, %v1937_v52 }
 0x66c   :  { %v1940_v35 = vadd.f32 %v1938_v12, %v1929_v30  ;;  %v1949_v37 = vsel %vm468_vm3, %v1947_v60, %v1948_v21 }
 0x66e   :  { %v1951_v16 = vadd.f32 %v1949_v37, %v1940_v35 }
 0x670   :  { %v1953_v49 = vmul.f32 %v1952_v5, %v1951_v16 }
 0x686   :  { %v2915_v62 = vpop.permute.xlu1 %2914 }
 0x687   :  { %v2916_v18 = vrot.slane %v2915_v62, 2 }
 0x689   :  { %v2917_v23 = vsel %vm1452_vm9, %v2915_v62, %v2916_v18 }
 0x68a   :  { %v2919_v29 = vadd.f32 %v2917_v23, %v1953_v49 }
 0x6c2   :  { %v2936_v31 = vpop.permute.xlu0 %2935 }
 0x6c3   :  { %v2937_v33 = vrot.slane %v2936_v31, 2 }
 0x6c5   :  { %v2938_v14 = vsel %vm1474_vm10, %v2936_v31, %v2937_v33 }
 0x6c6   :  { %v2940_v4 = vadd.f32 %v2938_v14, %v2919_v29 }
 0x6c9   :  { %v2950_v55 = vpop.permute.xlu1 %2949 }
 0x6ca   :  { %v2951_v8 = vrot.slane %v2950_v55, 2 }
 0x6cc   :  { %v2952_v26 = vsel %vm353_vm13, %v2950_v55, %v2951_v8 }
 0x6cd   :  { %v2954_v58 = vadd.f32 %v2952_v26, %v2940_v4 }
 0x6cf   :  { %v1528_v54 = vpop.permute.xlu0 %1527  ;;  %v2955_v11 = vmul.f32 0.5, %v2954_v58 }
 0x6d0   :  { %v1530_v28 = vmul.f32 %v1528_v54, %v1524_v47 }
 0x6d1   :  { %3424 = vtanh.f32 %v2955_v11 }
 0x6d3   :  { %v2991_v51 = vpop.permute.xlu0 %2990 }
 0x6d6   :  { %v2971_v41 = vpop.permute.xlu1 %2970 }
 0x6d8   :  { %v1534_v0 = vpop.permute.xlu0 %1533 }
 0x6d9   :  { %v1536_v42 = vadd.f32 %v1534_v0, %v1530_v28 }
 0x6db   :  { %v1537_v61 = vmax.f32 %v1536_v42, 0.0  ;;  %v1514_v27 = vpop.permute.xlu1 %1513 }
 0x6dc   :  { %v1516_v25 = vadd.f32 %v1514_v27, %v1510_v53 }
 0x6dd   :  { %1539 = vst [vmem:[#allocation11 + $0x8] sm:$0xff] %v1537_v61 }
 0x6de   :  { %v3425_v9 = vpop.eup %3424  ;;  %v1517_v48 = vmax.f32 %v1516_v25, 0.0 }
 0x6df   :  { %v2957_v19 = vmul.f32 0.5, %v3425_v9  ;;  %v2977_v10 = vpop.permute.xlu1 %2976 }
 0x6e0   :  { %1518 = vst [vmem:[#allocation11] sm:$0xff] %v1517_v48 }
 0x6e1   :  { %v2958_v17 = vadd.f32 0.5, %v2957_v19 }
 0x6e3   :  { %v2966_v57 = vrot.slane %v2958_v17, %v1502_v43  ;;  %v2997_v24 = vpop.permute.xlu1 %2996 }
 0x6e5   :  { %v2987_v44 = vmul.f32 %v3346_v45, %v2966_v57  ;;  %v2967_v50 = vmul.f32 %v3345_v15, %v2966_v57 }
 0x6e7   :  { %v2993_v34 = vmul.f32 %v2991_v51, %v2987_v44  ;;  %v2973_v7 = vmul.f32 %v2971_v41, %v2967_v50 }
 0x6e9   :  { %v2979_v13 = vadd.f32 %v2977_v10, %v2973_v7  ;;  %v2999_v6 = vadd.f32 %v2997_v24, %v2993_v34 }
 0x6eb   :  { %v2980_v32 = vmax.f32 %v2979_v13, 0.0  ;;  %v3000_v22 = vmax.f32 %v2999_v6, 0.0 }
 0x6ed   :  { %2982 = vst [vmem:[#allocation11 + $0x10] sm:$0xff] %v2980_v32  ;;  %3002 = vst [vmem:[#allocation11 + $0x18] sm:$0xff] %v3000_v22 }
 0x6ee   :  { %3476 = shalt.err (!%p3473_p0)
}
 0x6ef   :  { %s3515_s0 = smov 128   ;;  %s3516_s15 = smov 8  }
 0x6f0   :  { %3014 = dma.vmem_to_hbm [thread:$0]  %s3009_s17, 512, %s5059_s6, [#allocation8], %s3515_s0, %s3515_s0, %s3516_s15  }
 0x6f1   :  { %3489 = dma.done.wait [#allocation8], 512  }
 0x6f2   :  { %3490 = vsyncadd [#allocation8], 4294966784 }
 0x6f3   :  { %3018 = vsyncpa [#allocation7], 1 }
 0x6f4   :  { %3019 = vsyncpa [#allocation8], 1 }
 0x6f5   :  { %3020 = vsyncpa [#allocation9], 1 }

</bundles_post_ra>
